<compile_context>
chip_gen: v5e
topology: v5e:2x2
jax: 0.10.0
libtpu: 0.0.40
codegen_flags: <defaults>
</compile_context>

<pallas_src>
import jax
import jax.numpy as jnp
from jax.experimental import pallas as pl
from jax.experimental.pallas import tpu as pltpu

LANE = 128


def _brm_kernel(x_ref, w1_ref, b1_ref, w2_ref, b2_ref, out_ref,
                xpad_ref, rpad_ref):
    """Fused boundary-refine for one image (NHWC, channels padded to Cp).

    x_ref    : (H, W, Cp)       unpadded input image (f32)
    w1_ref   : (9*Cp, Cp)       conv1 weights, rows ordered (dy, dx, cin)
    b1_ref   : (1, Cp)          conv1 bias
    w2_ref   : (9*Cp, Cp)       conv2 weights
    b2_ref   : (1, Cp)          conv2 bias
    out_ref  : (H, W, Cp)       output image
    xpad_ref : (H+2, W+2, Cp)   VMEM scratch: x with 1-pixel zero halo
    rpad_ref : (H+2, W+2, Cp)   VMEM scratch: relu(conv1(x)) with zero halo
    """
    H, W, Cp = x_ref.shape
    Hp, Wp = H + 2, W + 2

    # Zero only the 1-pixel halo strips; the interiors are fully overwritten
    # below.  Done every grid step (not under program_id == 0) so the scratch
    # is valid on every TensorCore when the batch axis runs "parallel".
    zrow = jnp.zeros((1, Wp, Cp), jnp.float32)
    zcol = jnp.zeros((Hp, 1, Cp), jnp.float32)
    for ref in (xpad_ref, rpad_ref):
        ref[0:1, :, :] = zrow
        ref[Hp - 1:Hp, :, :] = zrow
        ref[:, 0:1, :] = zcol
        ref[:, Wp - 1:Wp, :] = zcol

    # Place the (unpadded) input tile into the interior of the haloed scratch.
    xpad_ref[1:1 + H, 1:1 + W, :] = x_ref[...]

    def conv3x3(src_ref, w_ref, b_ref):
        # im2col: 9 shifted (H, W, Cp) views concatenated on the (lane-dense)
        # channel axis, then a single MXU matmul with K = 9*Cp.
        patches = jnp.concatenate(
            [src_ref[dy:dy + H, dx:dx + W, :]
             for dy in range(3) for dx in range(3)],
            axis=-1).reshape(H * W, 9 * Cp)
        acc = jnp.dot(patches, w_ref[...],
                      preferred_element_type=jnp.float32)   # (H*W, Cp)
        return acc + b_ref[...]

    # conv1 -> ReLU, stashed (with halo) for conv2.
    r = jnp.maximum(conv3x3(xpad_ref, w1_ref, b1_ref), 0.0)
    rpad_ref[1:1 + H, 1:1 + W, :] = r.reshape(H, W, Cp)

    # conv2 + residual add.
    y = conv3x3(rpad_ref, w2_ref, b2_ref).reshape(H, W, Cp)
    out_ref[...] = (x_ref[...] + y).astype(out_ref.dtype)


def _round_up(c, m):
    return ((c + m - 1) // m) * m


@jax.jit
def boundary_refine_nhwc(x_nhwc, w1, b1, w2, b2):
    """x_nhwc: (N, H, W, C) f32. Weights HWIO (3, 3, C, C), biases (C,)."""
    N, H, W, C = x_nhwc.shape
    Cp = _round_up(C, LANE)
    Hp, Wp = H + 2, W + 2
    pc = Cp - C

    # Lane-dense layout: carry zero channels up to a multiple of 128 so every
    # load/store in the kernel is a full-width (unmasked) vector op.  Weights
    # are flattened once to (9*Cp, Cp); padded in/out channels stay exactly 0
    # end-to-end, so slicing [..., :C] at the end is exact.
    x_p = jnp.pad(x_nhwc, ((0, 0), (0, 0), (0, 0), (0, pc)))
    w1_m = jnp.pad(w1, ((0, 0), (0, 0), (0, pc), (0, pc))).reshape(9 * Cp, Cp)
    w2_m = jnp.pad(w2, ((0, 0), (0, 0), (0, pc), (0, pc))).reshape(9 * Cp, Cp)
    b1_p = jnp.pad(b1, (0, pc)).reshape(1, Cp)
    b2_p = jnp.pad(b2, (0, pc)).reshape(1, Cp)
    # TODO(synk): optionally cast x_p / w*_m to bf16 (keeping f32 accumulation)
    # to halve HBM/VMEM traffic and hit the MXU's native bf16 rate.

    # TODO(synk): for large H*W add a second (row-tile) grid axis with a 1-row
    # halo so double-buffered tiles + the 9x im2col patch tensor fit v7x's
    # 64 MiB VMEM; whole-image blocks are fine at these shapes.
    grid_spec = pltpu.PrefetchScalarGridSpec(
        num_scalar_prefetch=0,
        grid=(N,),
        in_specs=[
            pl.BlockSpec((pl.Squeezed(), H, W, Cp), lambda n: (n, 0, 0, 0)),
            pl.BlockSpec((9 * Cp, Cp), lambda n: (0, 0)),
            pl.BlockSpec((1, Cp), lambda n: (0, 0)),
            pl.BlockSpec((9 * Cp, Cp), lambda n: (0, 0)),
            pl.BlockSpec((1, Cp), lambda n: (0, 0)),
        ],
        out_specs=pl.BlockSpec((pl.Squeezed(), H, W, Cp),
                               lambda n: (n, 0, 0, 0)),
        scratch_shapes=[
            pltpu.VMEM((Hp, Wp, Cp), jnp.float32),   # haloed x
            pltpu.VMEM((Hp, Wp, Cp), jnp.float32),   # haloed relu(conv1(x))
        ],
    )

    out_p = pl.pallas_call(
        _brm_kernel,
        out_shape=jax.ShapeDtypeStruct((N, H, W, Cp), x_nhwc.dtype),
        grid_spec=grid_spec,
        compiler_params=pltpu.CompilerParams(
            dimension_semantics=("parallel",),        # batch across TCs (v7x)
            vmem_limit_bytes=64 * 1024 * 1024),
    )(x_p, w1_m, b1_p, w2_m, b2_p)

    return out_p[..., :C]


def boundary_refine_nchw(x_nchw, w1, b1, w2, b2):
    """PyTorch-compatible entry: x in NCHW, returns NCHW.

    The transposes here are boundary glue only; if the surrounding model runs
    NHWC, call boundary_refine_nhwc directly and skip both HBM round trips.
    """
    x_nhwc = jnp.transpose(x_nchw, (0, 2, 3, 1))
    out = boundary_refine_nhwc(x_nhwc, w1, b1, w2, b2)
    return jnp.transpose(out, (0, 3, 1, 2))


def _reference_nhwc(x, w1, b1, w2, b2):
    dn = ("NHWC", "HWIO", "NHWC")
    r = jax.lax.conv_general_dilated(x, w1, (1, 1), "SAME",
                                     dimension_numbers=dn) + b1
    r = jnp.maximum(r, 0.0)
    r = jax.lax.conv_general_dilated(r, w2, (1, 1), "SAME",
                                     dimension_numbers=dn) + b2
    return x + r


if __name__ == "__main__":
    N, C, H, W = 2, 4, 16, 16
    key = jax.random.PRNGKey(0)
    kx, kw1, kb1, kw2, kb2 = jax.random.split(key, 5)

    # deterministic synthetic parameters (nn.Conv2d(dim, dim, 3, padding=1))
    x_nchw = jax.random.normal(kx, (N, C, H, W), jnp.float32)
    w1 = jax.random.normal(kw1, (3, 3, C, C), jnp.float32) * 0.1   # HWIO
    b1 = jax.random.normal(kb1, (C,), jnp.float32) * 0.1
    w2 = jax.random.normal(kw2, (3, 3, C, C), jnp.float32) * 0.1   # HWIO
    b2 = jax.random.normal(kb2, (C,), jnp.float32) * 0.1

    out = boundary_refine_nchw(x_nchw, w1, b1, w2, b2)
    out = jax.block_until_ready(out)

    # sanity-check against a pure-JAX reference of the same math
    x_nhwc = jnp.transpose(x_nchw, (0, 2, 3, 1))
    ref = _reference_nhwc(x_nhwc, w1, b1, w2, b2)
    ref = jnp.transpose(ref, (0, 3, 1, 2))
    assert out.shape == x_nchw.shape
    err = float(jnp.max(jnp.abs(out - ref)))
    assert err < 1e-4, err

    print("KERNEL_OK")
</pallas_src>

<mosaic_0001>
module attributes {stable_mosaic.version = 11 : i64} {
  func.func @_brm_kernel(%arg0: i32, %arg1: memref<1x16x16x128xf32, #tpu.memory_space<vmem>>, %arg2: memref<1152x128xf32, #tpu.memory_space<vmem>>, %arg3: memref<1x128xf32, #tpu.memory_space<vmem>>, %arg4: memref<1152x128xf32, #tpu.memory_space<vmem>>, %arg5: memref<1x128xf32, #tpu.memory_space<vmem>>, %arg6: memref<1x16x16x128xf32, #tpu.memory_space<vmem>>, %arg7: memref<18x18x128xf32, #tpu.memory_space<vmem>>, %arg8: memref<18x18x128xf32, #tpu.memory_space<vmem>>) attributes {dimension_semantics = [#tpu.dimension_semantics<parallel>], iteration_bounds = array<i64: 2>, scalar_prefetch = 0 : i64, scratch_operands = 2 : i64, tpu.core_type = #tpu.core_type<tc>, window_params = [{transform_indices = @transform_0, window_bounds = array<i64: 1, 16, 16, 128>}, {pipeline_mode = #tpu.pipeline_mode<synchronous>, transform_indices = @transform_1, window_bounds = array<i64: 1152, 128>}, {pipeline_mode = #tpu.pipeline_mode<synchronous>, transform_indices = @transform_2, window_bounds = array<i64: 1, 128>}, {pipeline_mode = #tpu.pipeline_mode<synchronous>, transform_indices = @transform_3, window_bounds = array<i64: 1152, 128>}, {pipeline_mode = #tpu.pipeline_mode<synchronous>, transform_indices = @transform_4, window_bounds = array<i64: 1, 128>}, {transform_indices = @transform_5, window_bounds = array<i64: 1, 16, 16, 128>}]} {
    %cst = arith.constant 0.000000e+00 : f32
    %0 = vector.broadcast %cst : f32 to vector<1x18x128xf32>
    %cst_0 = arith.constant 0.000000e+00 : f32
    %1 = vector.broadcast %cst_0 : f32 to vector<18x1x128xf32>
    %c0 = arith.constant 0 : index
    %c0_1 = arith.constant 0 : index
    %c0_2 = arith.constant 0 : index
    %2 = vector.load %arg7[%c0, %c0_1, %c0_2] : memref<18x18x128xf32, #tpu.memory_space<vmem>>, vector<1x18x128xf32>
    tpu.vector_store %arg7[%c0, %c0_1, %c0_2], %0 {strides = array<i32>} : memref<18x18x128xf32, #tpu.memory_space<vmem>>, vector<1x18x128xf32>,
    %c17 = arith.constant 17 : index
    %c0_3 = arith.constant 0 : index
    %c0_4 = arith.constant 0 : index
    %3 = vector.load %arg7[%c17, %c0_3, %c0_4] : memref<18x18x128xf32, #tpu.memory_space<vmem>>, vector<1x18x128xf32>
    tpu.vector_store %arg7[%c17, %c0_3, %c0_4], %0 {strides = array<i32>} : memref<18x18x128xf32, #tpu.memory_space<vmem>>, vector<1x18x128xf32>,
    %c0_5 = arith.constant 0 : index
    %c0_6 = arith.constant 0 : index
    %c0_7 = arith.constant 0 : index
    %4 = vector.load %arg7[%c0_5, %c0_6, %c0_7] : memref<18x18x128xf32, #tpu.memory_space<vmem>>, vector<18x1x128xf32>
    tpu.vector_store %arg7[%c0_5, %c0_6, %c0_7], %1 {strides = array<i32>} : memref<18x18x128xf32, #tpu.memory_space<vmem>>, vector<18x1x128xf32>,
    %c0_8 = arith.constant 0 : index
    %c17_9 = arith.constant 17 : index
    %c0_10 = arith.constant 0 : index
    %5 = vector.load %arg7[%c0_8, %c17_9, %c0_10] : memref<18x18x128xf32, #tpu.memory_space<vmem>>, vector<18x1x128xf32>
    tpu.vector_store %arg7[%c0_8, %c17_9, %c0_10], %1 {strides = array<i32>} : memref<18x18x128xf32, #tpu.memory_space<vmem>>, vector<18x1x128xf32>,
    %c0_11 = arith.constant 0 : index
    %c0_12 = arith.constant 0 : index
    %c0_13 = arith.constant 0 : index
    %6 = vector.load %arg8[%c0_11, %c0_12, %c0_13] : memref<18x18x128xf32, #tpu.memory_space<vmem>>, vector<1x18x128xf32>
    tpu.vector_store %arg8[%c0_11, %c0_12, %c0_13], %0 {strides = array<i32>} : memref<18x18x128xf32, #tpu.memory_space<vmem>>, vector<1x18x128xf32>,
    %c17_14 = arith.constant 17 : index
    %c0_15 = arith.constant 0 : index
    %c0_16 = arith.constant 0 : index
    %7 = vector.load %arg8[%c17_14, %c0_15, %c0_16] : memref<18x18x128xf32, #tpu.memory_space<vmem>>, vector<1x18x128xf32>
    tpu.vector_store %arg8[%c17_14, %c0_15, %c0_16], %0 {strides = array<i32>} : memref<18x18x128xf32, #tpu.memory_space<vmem>>, vector<1x18x128xf32>,
    %c0_17 = arith.constant 0 : index
    %c0_18 = arith.constant 0 : index
    %c0_19 = arith.constant 0 : index
    %8 = vector.load %arg8[%c0_17, %c0_18, %c0_19] : memref<18x18x128xf32, #tpu.memory_space<vmem>>, vector<18x1x128xf32>
    tpu.vector_store %arg8[%c0_17, %c0_18, %c0_19], %1 {strides = array<i32>} : memref<18x18x128xf32, #tpu.memory_space<vmem>>, vector<18x1x128xf32>,
    %c0_20 = arith.constant 0 : index
    %c17_21 = arith.constant 17 : index
    %c0_22 = arith.constant 0 : index
    %9 = vector.load %arg8[%c0_20, %c17_21, %c0_22] : memref<18x18x128xf32, #tpu.memory_space<vmem>>, vector<18x1x128xf32>
    tpu.vector_store %arg8[%c0_20, %c17_21, %c0_22], %1 {strides = array<i32>} : memref<18x18x128xf32, #tpu.memory_space<vmem>>, vector<18x1x128xf32>,
    %c0_23 = arith.constant 0 : index
    %c0_24 = arith.constant 0 : index
    %c0_25 = arith.constant 0 : index
    %c0_26 = arith.constant 0 : index
    %10 = vector.load %arg1[%c0_23, %c0_24, %c0_25, %c0_26] : memref<1x16x16x128xf32, #tpu.memory_space<vmem>>, vector<1x16x16x128xf32>
    %11 = vector.shape_cast %10 : vector<1x16x16x128xf32> to vector<16x16x128xf32>
    %c1 = arith.constant 1 : index
    %c1_27 = arith.constant 1 : index
    %c0_28 = arith.constant 0 : index
    %12 = vector.load %arg7[%c1, %c1_27, %c0_28] : memref<18x18x128xf32, #tpu.memory_space<vmem>>, vector<16x16x128xf32>
    tpu.vector_store %arg7[%c1, %c1_27, %c0_28], %11 {strides = array<i32>} : memref<18x18x128xf32, #tpu.memory_space<vmem>>, vector<16x16x128xf32>,
    %c0_29 = arith.constant 0 : index
    %c0_30 = arith.constant 0 : index
    %c0_31 = arith.constant 0 : index
    %13 = vector.load %arg7[%c0_29, %c0_30, %c0_31] : memref<18x18x128xf32, #tpu.memory_space<vmem>>, vector<16x16x128xf32>
    %c0_32 = arith.constant 0 : index
    %c1_33 = arith.constant 1 : index
    %c0_34 = arith.constant 0 : index
    %14 = vector.load %arg7[%c0_32, %c1_33, %c0_34] : memref<18x18x128xf32, #tpu.memory_space<vmem>>, vector<16x16x128xf32>
    %c0_35 = arith.constant 0 : index
    %c2 = arith.constant 2 : index
    %c0_36 = arith.constant 0 : index
    %15 = vector.load %arg7[%c0_35, %c2, %c0_36] : memref<18x18x128xf32, #tpu.memory_space<vmem>>, vector<16x16x128xf32>
    %c1_37 = arith.constant 1 : index
    %c0_38 = arith.constant 0 : index
    %c0_39 = arith.constant 0 : index
    %16 = vector.load %arg7[%c1_37, %c0_38, %c0_39] : memref<18x18x128xf32, #tpu.memory_space<vmem>>, vector<16x16x128xf32>
    %c1_40 = arith.constant 1 : index
    %c1_41 = arith.constant 1 : index
    %c0_42 = arith.constant 0 : index
    %17 = vector.load %arg7[%c1_40, %c1_41, %c0_42] : memref<18x18x128xf32, #tpu.memory_space<vmem>>, vector<16x16x128xf32>
    %c1_43 = arith.constant 1 : index
    %c2_44 = arith.constant 2 : index
    %c0_45 = arith.constant 0 : index
    %18 = vector.load %arg7[%c1_43, %c2_44, %c0_45] : memref<18x18x128xf32, #tpu.memory_space<vmem>>, vector<16x16x128xf32>
    %c2_46 = arith.constant 2 : index
    %c0_47 = arith.constant 0 : index
    %c0_48 = arith.constant 0 : index
    %19 = vector.load %arg7[%c2_46, %c0_47, %c0_48] : memref<18x18x128xf32, #tpu.memory_space<vmem>>, vector<16x16x128xf32>
    %c2_49 = arith.constant 2 : index
    %c1_50 = arith.constant 1 : index
    %c0_51 = arith.constant 0 : index
    %20 = vector.load %arg7[%c2_49, %c1_50, %c0_51] : memref<18x18x128xf32, #tpu.memory_space<vmem>>, vector<16x16x128xf32>
    %c2_52 = arith.constant 2 : index
    %c2_53 = arith.constant 2 : index
    %c0_54 = arith.constant 0 : index
    %21 = vector.load %arg7[%c2_52, %c2_53, %c0_54] : memref<18x18x128xf32, #tpu.memory_space<vmem>>, vector<16x16x128xf32>
    %22 = tpu.concatenate %13, %14, %15, %16, %17, %18, %19, %20, %21 in 2 : vector<16x16x128xf32>, vector<16x16x128xf32>, vector<16x16x128xf32>, vector<16x16x128xf32>, vector<16x16x128xf32>, vector<16x16x128xf32>, vector<16x16x128xf32>, vector<16x16x128xf32>, vector<16x16x128xf32> -> vector<16x16x1152xf32>
    %23 = vector.shape_cast %22 : vector<16x16x1152xf32> to vector<256x1152xf32>
    %c0_55 = arith.constant 0 : index
    %c0_56 = arith.constant 0 : index
    %24 = vector.load %arg2[%c0_55, %c0_56] : memref<1152x128xf32, #tpu.memory_space<vmem>>, vector<1152x128xf32>
    %cst_57 = arith.constant dense<0.000000e+00> : vector<256x128xf32>
    %25 = tpu.matmul %23, %24, %cst_57 {dimension_numbers = #tpu.dot_dimension_numbers<[1], [0], [0], [1], [0, 0, 1, 1], [], []>} : vector<256x1152xf32>, vector<1152x128xf32>, vector<256x128xf32> -> vector<256x128xf32>
    %c0_58 = arith.constant 0 : index
    %c0_59 = arith.constant 0 : index
    %26 = vector.load %arg3[%c0_58, %c0_59] : memref<1x128xf32, #tpu.memory_space<vmem>>, vector<1x128xf32>
    %27 = vector.broadcast %26 : vector<1x128xf32> to vector<256x128xf32>
    %28 = arith.addf %25, %27 : vector<256x128xf32>
    %cst_60 = arith.constant 0.000000e+00 : f32
    %29 = vector.broadcast %cst_60 : f32 to vector<256x128xf32>
    %30 = arith.maximumf %28, %29 : vector<256x128xf32>
    %31 = vector.shape_cast %30 : vector<256x128xf32> to vector<16x16x128xf32>
    %c1_61 = arith.constant 1 : index
    %c1_62 = arith.constant 1 : index
    %c0_63 = arith.constant 0 : index
    %32 = vector.load %arg8[%c1_61, %c1_62, %c0_63] : memref<18x18x128xf32, #tpu.memory_space<vmem>>, vector<16x16x128xf32>
    tpu.vector_store %arg8[%c1_61, %c1_62, %c0_63], %31 {strides = array<i32>} : memref<18x18x128xf32, #tpu.memory_space<vmem>>, vector<16x16x128xf32>,
    %c0_64 = arith.constant 0 : index
    %c0_65 = arith.constant 0 : index
    %c0_66 = arith.constant 0 : index
    %33 = vector.load %arg8[%c0_64, %c0_65, %c0_66] : memref<18x18x128xf32, #tpu.memory_space<vmem>>, vector<16x16x128xf32>
    %c0_67 = arith.constant 0 : index
    %c1_68 = arith.constant 1 : index
    %c0_69 = arith.constant 0 : index
    %34 = vector.load %arg8[%c0_67, %c1_68, %c0_69] : memref<18x18x128xf32, #tpu.memory_space<vmem>>, vector<16x16x128xf32>
    %c0_70 = arith.constant 0 : index
    %c2_71 = arith.constant 2 : index
    %c0_72 = arith.constant 0 : index
    %35 = vector.load %arg8[%c0_70, %c2_71, %c0_72] : memref<18x18x128xf32, #tpu.memory_space<vmem>>, vector<16x16x128xf32>
    %c1_73 = arith.constant 1 : index
    %c0_74 = arith.constant 0 : index
    %c0_75 = arith.constant 0 : index
    %36 = vector.load %arg8[%c1_73, %c0_74, %c0_75] : memref<18x18x128xf32, #tpu.memory_space<vmem>>, vector<16x16x128xf32>
    %c1_76 = arith.constant 1 : index
    %c1_77 = arith.constant 1 : index
    %c0_78 = arith.constant 0 : index
    %37 = vector.load %arg8[%c1_76, %c1_77, %c0_78] : memref<18x18x128xf32, #tpu.memory_space<vmem>>, vector<16x16x128xf32>
    %c1_79 = arith.constant 1 : index
    %c2_80 = arith.constant 2 : index
    %c0_81 = arith.constant 0 : index
    %38 = vector.load %arg8[%c1_79, %c2_80, %c0_81] : memref<18x18x128xf32, #tpu.memory_space<vmem>>, vector<16x16x128xf32>
    %c2_82 = arith.constant 2 : index
    %c0_83 = arith.constant 0 : index
    %c0_84 = arith.constant 0 : index
    %39 = vector.load %arg8[%c2_82, %c0_83, %c0_84] : memref<18x18x128xf32, #tpu.memory_space<vmem>>, vector<16x16x128xf32>
    %c2_85 = arith.constant 2 : index
    %c1_86 = arith.constant 1 : index
    %c0_87 = arith.constant 0 : index
    %40 = vector.load %arg8[%c2_85, %c1_86, %c0_87] : memref<18x18x128xf32, #tpu.memory_space<vmem>>, vector<16x16x128xf32>
    %c2_88 = arith.constant 2 : index
    %c2_89 = arith.constant 2 : index
    %c0_90 = arith.constant 0 : index
    %41 = vector.load %arg8[%c2_88, %c2_89, %c0_90] : memref<18x18x128xf32, #tpu.memory_space<vmem>>, vector<16x16x128xf32>
    %42 = tpu.concatenate %33, %34, %35, %36, %37, %38, %39, %40, %41 in 2 : vector<16x16x128xf32>, vector<16x16x128xf32>, vector<16x16x128xf32>, vector<16x16x128xf32>, vector<16x16x128xf32>, vector<16x16x128xf32>, vector<16x16x128xf32>, vector<16x16x128xf32>, vector<16x16x128xf32> -> vector<16x16x1152xf32>
    %43 = vector.shape_cast %42 : vector<16x16x1152xf32> to vector<256x1152xf32>
    %c0_91 = arith.constant 0 : index
    %c0_92 = arith.constant 0 : index
    %44 = vector.load %arg4[%c0_91, %c0_92] : memref<1152x128xf32, #tpu.memory_space<vmem>>, vector<1152x128xf32>
    %cst_93 = arith.constant dense<0.000000e+00> : vector<256x128xf32>
    %45 = tpu.matmul %43, %44, %cst_93 {dimension_numbers = #tpu.dot_dimension_numbers<[1], [0], [0], [1], [0, 0, 1, 1], [], []>} : vector<256x1152xf32>, vector<1152x128xf32>, vector<256x128xf32> -> vector<256x128xf32>
    %c0_94 = arith.constant 0 : index
    %c0_95 = arith.constant 0 : index
    %46 = vector.load %arg5[%c0_94, %c0_95] : memref<1x128xf32, #tpu.memory_space<vmem>>, vector<1x128xf32>
    %47 = vector.broadcast %46 : vector<1x128xf32> to vector<256x128xf32>
    %48 = arith.addf %45, %47 : vector<256x128xf32>
    %49 = vector.shape_cast %48 : vector<256x128xf32> to vector<16x16x128xf32>
    %c0_96 = arith.constant 0 : index
    %c0_97 = arith.constant 0 : index
    %c0_98 = arith.constant 0 : index
    %c0_99 = arith.constant 0 : index
    %50 = vector.load %arg1[%c0_96, %c0_97, %c0_98, %c0_99] : memref<1x16x16x128xf32, #tpu.memory_space<vmem>>, vector<1x16x16x128xf32>
    %51 = vector.shape_cast %50 : vector<1x16x16x128xf32> to vector<16x16x128xf32>
    %52 = arith.addf %51, %49 : vector<16x16x128xf32>
    %c0_100 = arith.constant 0 : index
    %c0_101 = arith.constant 0 : index
    %c0_102 = arith.constant 0 : index
    %c0_103 = arith.constant 0 : index
    %53 = vector.load %arg6[%c0_100, %c0_101, %c0_102, %c0_103] : memref<1x16x16x128xf32, #tpu.memory_space<vmem>>, vector<1x16x16x128xf32>
    %54 = vector.shape_cast %53 : vector<1x16x16x128xf32> to vector<16x16x128xf32>
    %55 = vector.shape_cast %52 : vector<16x16x128xf32> to vector<1x16x16x128xf32>
    tpu.vector_store %arg6[%c0_100, %c0_101, %c0_102, %c0_103], %55 {strides = array<i32>} : memref<1x16x16x128xf32, #tpu.memory_space<vmem>>, vector<1x16x16x128xf32>,
    return
  }
  func.func @transform_0(%arg0: i32) -> (i32, i32, i32, i32) {
    %c0_i32 = arith.constant 0 : i32
    %c0_i32_0 = arith.constant 0 : i32
    %c0_i32_1 = arith.constant 0 : i32
    %c0_i32_2 = arith.constant 0 : i32
    return %arg0, %c0_i32, %c0_i32_0, %c0_i32_1 : i32, i32, i32, i32
  }
  func.func @transform_1(%arg0: i32) -> (i32, i32) {
    %c0_i32 = arith.constant 0 : i32
    %c0_i32_0 = arith.constant 0 : i32
    %c0_i32_1 = arith.constant 0 : i32
    return %c0_i32, %c0_i32_0 : i32, i32
  }
  func.func @transform_2(%arg0: i32) -> (i32, i32) {
    %c0_i32 = arith.constant 0 : i32
    %c0_i32_0 = arith.constant 0 : i32
    %c0_i32_1 = arith.constant 0 : i32
    return %c0_i32, %c0_i32_0 : i32, i32
  }
  func.func @transform_3(%arg0: i32) -> (i32, i32) {
    %c0_i32 = arith.constant 0 : i32
    %c0_i32_0 = arith.constant 0 : i32
    %c0_i32_1 = arith.constant 0 : i32
    return %c0_i32, %c0_i32_0 : i32, i32
  }
  func.func @transform_4(%arg0: i32) -> (i32, i32) {
    %c0_i32 = arith.constant 0 : i32
    %c0_i32_0 = arith.constant 0 : i32
    %c0_i32_1 = arith.constant 0 : i32
    return %c0_i32, %c0_i32_0 : i32, i32
  }
  func.func @transform_5(%arg0: i32) -> (i32, i32, i32, i32) {
    %c0_i32 = arith.constant 0 : i32
    %c0_i32_0 = arith.constant 0 : i32
    %c0_i32_1 = arith.constant 0 : i32
    %c0_i32_2 = arith.constant 0 : i32
    return %arg0, %c0_i32, %c0_i32_0, %c0_i32_1 : i32, i32, i32, i32
  }
}

</mosaic_0001>

<bundles_post_ra>
// kernel: boundary_refine_nhwc.1
= control target key start
LH: loop header
LB: loop body
LE: loop exit
PB: predicated region body
PF: predicated region fallthrough
CT: control target
= control target key end

     0   :  { %s3616_s18 = smov 0   ;;  %s6433_s0 = inlined_call_operand.vmem [shape: f32[2,16,16,128], index: 0, kind: input, shape index: {}]   ;;  %s6434_s1 = inlined_call_operand.vmem [shape: f32[1152,128], index: 1, kind: input, shape index: {}]   ;;  %s6435_s2 = inlined_call_operand.vmem [shape: f32[1,128], index: 2, kind: input, shape index: {}]   ;;  %s6436_s3 = inlined_call_operand.vmem [shape: f32[1152,128], index: 3, kind: input, shape index: {}]   ;;  %s6437_s4 = inlined_call_operand.vmem [shape: f32[1,128], index: 4, kind: input, shape index: {}]   ;;  %s6438_s5 = inlined_call_operand.vmem [shape: f32[2,16,16,128], index: 5, kind: output, shape index: {}]  }
   0x1 LB: > { %s3500_s19 = sadd.s32 4294967295, %s3583_s18   ;;  %p3504_p0 = scmp.ge.s32.totalorder %s3583_s18, 1  ;;  %s3583_s18 = sphi %s3616_s18, %s15_s18  }
   0x2   : > { %p187_p1 = scmp.lt.s32.totalorder %s3583_s18, 3 }
   0x4   : > { %p188_p2 = pnand %p3504_p0, %p187_p1 }
   0x6   : > { %191 = sbr.rel (%p188_p2) target bundleno = 1504 (0x5e0), region = 40 }
   0xb   : > { %v680_v0 = vld [vmem:[%s6434_s1 + $0x78] sm:$0xff]  ;;  %v679_v2 = vld [vmem:[%s6434_s1 + $0x70] sm:$0xff]  ;;  %v3585_v4 = vmov 0.0   ;;  %v678_v5 = vld [vmem:[%s6434_s1 + $0x68] sm:$0xff]  ;;  %p3707_p3 = scmp.lt.s32.totalorder %s3500_s19, 1 }
   0xc   : > { %v696_v1 = vld [vmem:[%s6434_s1 + $0xf8] sm:$0xff]  ;;  %813 = vmatpush.msra.mxu0 %v680_v0  ;;  %3513 = vmatpush.msra.mxu2 %v680_v0  ;;  %v695_v3 = vld [vmem:[%s6434_s1 + $0xf0] sm:$0xff]  ;;  %225 = vst [vmem:[#allocation2] sm:$0xff] %v3585_v4  ;;  %v694_v6 = vld [vmem:[%s6434_s1 + $0xe8] sm:$0xff] }
   0xd   : > { %3529 = vmatpush.msra.mxu3 %v696_v1  ;;  %926 = vmatpush.msra.mxu1 %v696_v1  ;;  %232 = vst [vmem:[#allocation2] sm:$0x1] %v3585_v4  ;;  %v677_v7 = vld [vmem:[%s6434_s1 + $0x60] sm:$0xff]  ;;  %v676_v9 = vld [vmem:[%s6434_s1 + $0x58] sm:$0xff]  ;;  %v675_v11 = vld [vmem:[%s6434_s1 + $0x50] sm:$0xff]  ;;  %s6603_s19 = smov (!%p3707_p3, %s3500_s19), 1 }
   0xe   : > { %814 = vmatpush.msra.mxu0 %v679_v2  ;;  %3514 = vmatpush.msra.mxu2 %v679_v2  ;;  %226 = vst [vmem:[#allocation2 + $0x8] sm:$0xff] %v3585_v4  ;;  %v693_v8 = vld [vmem:[%s6434_s1 + $0xe0] sm:$0xff]  ;;  %v692_v10 = vld [vmem:[%s6434_s1 + $0xd8] sm:$0xff]  ;;  %v691_v12 = vld [vmem:[%s6434_s1 + $0xd0] sm:$0xff]  ;;  %s3511_s8 = sshll.u32 %s6603_s19, 8 }
   0xf   : > { %3530 = vmatpush.msra.mxu3 %v695_v3  ;;  %927 = vmatpush.msra.mxu1 %v695_v3  ;;  %227 = vst [vmem:[#allocation2 + $0x10] sm:$0x3] %v3585_v4  ;;  %v674_v13 = vld [vmem:[%s6434_s1 + $0x48] sm:$0xff]  ;;  %v673_v15 = vld [vmem:[%s6434_s1 + $0x40] sm:$0xff]  ;;  %v672_v17 = vld [vmem:[%s6434_s1 + $0x38] sm:$0xff]  ;;  %s3767_s17 = scalar_lea.vmem %s6433_s0, %s3511_s8  ;;  %s6296_s14 = scalar_lea.vmem %s6438_s5, %s3511_s8 }
  0x10   : > { %815 = vmatpush.msra.mxu0 %v678_v5  ;;  %3515 = vmatpush.msra.mxu2 %v678_v5  ;;  %229 = vst [vmem:[#allocation2 + $0x198] sm:$0xff] %v3585_v4  ;;  %v690_v14 = vld [vmem:[%s6434_s1 + $0xc8] sm:$0xff]  ;;  %v689_v16 = vld [vmem:[%s6434_s1 + $0xc0] sm:$0xff]  ;;  %v688_v18 = vld [vmem:[%s6434_s1 + $0xb8] sm:$0xff] }
  0x11   : > { %3531 = vmatpush.msra.mxu3 %v694_v6  ;;  %928 = vmatpush.msra.mxu1 %v694_v6  ;;  %230 = vst [vmem:[#allocation2 + $0x1a0] sm:$0xff] %v3585_v4  ;;  %v671_v19 = vld [vmem:[%s6434_s1 + $0x30] sm:$0xff]  ;;  %v670_v21 = vld [vmem:[%s6434_s1 + $0x28] sm:$0xff]  ;;  %v669_v23 = vld [vmem:[%s6434_s1 + $0x20] sm:$0xff] }
  0x12   : > { %816 = vmatpush.msra.mxu0 %v677_v7  ;;  %3516 = vmatpush.msra.mxu2 %v677_v7  ;;  %231 = vst [vmem:[#allocation2 + $0x1a8] sm:$0x3] %v3585_v4  ;;  %v687_v20 = vld [vmem:[%s6434_s1 + $0xb0] sm:$0xff]  ;;  %v686_v22 = vld [vmem:[%s6434_s1 + $0xa8] sm:$0xff]  ;;  %v685_v24 = vld [vmem:[%s6434_s1 + $0xa0] sm:$0xff] }
  0x13   : > { %3532 = vmatpush.msra.mxu3 %v693_v8  ;;  %929 = vmatpush.msra.mxu1 %v693_v8  ;;  %233 = vst [vmem:[#allocation2 + $0x18] sm:$0x1] %v3585_v4  ;;  %v668_v25 = vld [vmem:[%s6434_s1 + $0x18] sm:$0xff]  ;;  %v667_v27 = vld [vmem:[%s6434_s1 + $0x10] sm:$0xff]  ;;  %v666_v29 = vld [vmem:[%s6434_s1 + $0x8] sm:$0xff] }
  0x14   : > { %817 = vmatpush.msra.mxu0 %v676_v9  ;;  %3517 = vmatpush.msra.mxu2 %v676_v9  ;;  %234 = vst [vmem:[#allocation2 + $0x30] sm:$0x1] %v3585_v4  ;;  %v684_v26 = vld [vmem:[%s6434_s1 + $0x98] sm:$0xff]  ;;  %v683_v28 = vld [vmem:[%s6434_s1 + $0x90] sm:$0xff]  ;;  %v682_v30 = vld [vmem:[%s6434_s1 + $0x88] sm:$0xff] }
  0x15   : > { %3533 = vmatpush.msra.mxu3 %v692_v10  ;;  %930 = vmatpush.msra.mxu1 %v692_v10  ;;  %235 = vst [vmem:[#allocation2 + $0x48] sm:$0x1] %v3585_v4  ;;  %v665_v31 = vld [vmem:[%s6434_s1] sm:$0xff]  ;;  %v3773_v34 = vld [vmem:[%s3767_s17 + $0x70] sm:$0xff]  ;;  %v3799_v35 = vld [vmem:[%s3767_s17 + $0x78] sm:$0xff] }
  0x16   : > { %818 = vmatpush.msra.mxu0 %v675_v11  ;;  %3518 = vmatpush.msra.mxu2 %v675_v11  ;;  %236 = vst [vmem:[#allocation2 + $0x60] sm:$0x1] %v3585_v4  ;;  %v681_v32 = vld [vmem:[%s6434_s1 + $0x80] sm:$0xff]  ;;  %v712_v36 = vld [vmem:[%s6434_s1 + $0x178] sm:$0xff]  ;;  %v711_v39 = vld [vmem:[%s6434_s1 + $0x170] sm:$0xff] }
  0x17   : > { %3534 = vmatpush.msra.mxu3 %v691_v12  ;;  %931 = vmatpush.msra.mxu1 %v691_v12  ;;  %237 = vst [vmem:[#allocation2 + $0x78] sm:$0x1] %v3585_v4  ;;  %v376_v33 = vld [vmem:[#allocation2] sm:$0xff]  ;;  %v728_v37 = vld [vmem:[%s6434_s1 + $0x1f8] sm:$0xff]  ;;  %v727_v40 = vld [vmem:[%s6434_s1 + $0x1f0] sm:$0xff] }
  0x18   : > { %819 = vmatpush.msra.mxu0 %v674_v13  ;;  %3519 = vmatpush.msra.mxu2 %v674_v13  ;;  %238 = vst [vmem:[#allocation2 + $0x90] sm:$0x1] %v3585_v4  ;;  %v3817_v38 = vld [vmem:[%s3767_s17 + $0x80] sm:$0xff]  ;;  %v744_v41 = vld [vmem:[%s6434_s1 + $0x278] sm:$0xff]  ;;  %v328_v43 = vld [vmem:[%s3767_s17 + $0x88] sm:$0xff] }
  0x19   : > { %3535 = vmatpush.msra.mxu3 %v690_v14  ;;  %932 = vmatpush.msra.mxu1 %v690_v14  ;;  %239 = vst [vmem:[#allocation2 + $0xa8] sm:$0x1] %v3585_v4  ;;  %v408_v42 = vld [vmem:[#allocation2 + $0x1] sm:$0xff]  ;;  %v743_v46 = vld [vmem:[%s6434_s1 + $0x270] sm:$0xff]  ;;  %v330_v55 = vld [vmem:[%s3767_s17 + $0x98] sm:$0xff] }
  0x1a   : > { %820 = vmatpush.msra.mxu0 %v673_v15  ;;  %3520 = vmatpush.msra.mxu2 %v673_v15  ;;  %240 = vst [vmem:[#allocation2 + $0xc0] sm:$0x1] %v3585_v4  ;;  %v710_v44 = vld [vmem:[%s6434_s1 + $0x168] sm:$0xff]  ;;  %v329_v48 = vld [vmem:[%s3767_s17 + $0x90] sm:$0xff]  ;;  %v709_v49 = vld [vmem:[%s6434_s1 + $0x160] sm:$0xff] }
  0x1b   : > { %3536 = vmatpush.msra.mxu3 %v689_v16  ;;  %933 = vmatpush.msra.mxu1 %v689_v16  ;;  %241 = vst [vmem:[#allocation2 + $0xd8] sm:$0x1] %v3585_v4  ;;  %v726_v45 = vld [vmem:[%s6434_s1 + $0x1e8] sm:$0xff]  ;;  %v725_v50 = vld [vmem:[%s6434_s1 + $0x1e0] sm:$0xff]  ;;  %v708_v56 = vld [vmem:[%s6434_s1 + $0x158] sm:$0xff] }
  0x1c   : > { %821 = vmatpush.msra.mxu0 %v672_v17  ;;  %3521 = vmatpush.msra.mxu2 %v672_v17  ;;  %242 = vst [vmem:[#allocation2 + $0xf0] sm:$0x1] %v3585_v4  ;;  %v409_v47 = vld [vmem:[#allocation2 + $0x9] sm:$0xff]  ;;  %v3868_v52 = vld [vmem:[%s3767_s17] sm:$0xff]  ;;  %v724_v57 = vld [vmem:[%s6434_s1 + $0x1d8] sm:$0xff] }
  0x1d   : > { %3537 = vmatpush.msra.mxu3 %v688_v18  ;;  %934 = vmatpush.msra.mxu1 %v688_v18  ;;  %243 = vst [vmem:[#allocation2 + $0x108] sm:$0x1] %v3585_v4  ;;  %v742_v51 = vld [vmem:[%s6434_s1 + $0x268] sm:$0xff]  ;;  %v741_v58 = vld [vmem:[%s6434_s1 + $0x260] sm:$0xff]  ;;  %v3894_v59 = vld [vmem:[%s3767_s17 + $0x10] sm:$0xff] }
  0x1e   : > { %822 = vmatpush.msra.mxu0 %v671_v19  ;;  %3522 = vmatpush.msra.mxu2 %v671_v19  ;;  %244 = vst [vmem:[#allocation2 + $0x120] sm:$0x1] %v3585_v4  ;;  %v3878_v54 = vld [vmem:[%s3767_s17 + $0x8] sm:$0xff]  ;;  %v3899_v60 = vld [vmem:[%s3767_s17 + $0x18] sm:$0xff]  ;;  %v3904_v62 = vld [vmem:[%s3767_s17 + $0x20] sm:$0xff] }
  0x1f   : > { %3538 = vmatpush.msra.mxu3 %v687_v20  ;;  %935 = vmatpush.msra.mxu1 %v687_v20  ;;  %245 = vst [vmem:[#allocation2 + $0x138] sm:$0x1] %v3585_v4  ;;  %v331_v63 = vld [vmem:[%s3767_s17 + $0xa0] sm:$0xff]  ;;  %v707_v1 = vld [vmem:[%s6434_s1 + $0x150] sm:$0xff]  ;;  %v740_v3 = vld [vmem:[%s6434_s1 + $0x258] sm:$0xff] }
  0x20   : > { %823 = vmatpush.msra.mxu0 %v670_v21  ;;  %3523 = vmatpush.msra.mxu2 %v670_v21  ;;  %246 = vst [vmem:[#allocation2 + $0x150] sm:$0x1] %v3585_v4  ;;  %v723_v2 = vld [vmem:[%s6434_s1 + $0x1d0] sm:$0xff]  ;;  %v3924_v6 = vld [vmem:[%s3767_s17 + $0x28] sm:$0xff]  ;;  %v705_v15 = vld [vmem:[%s6434_s1 + $0x140] sm:$0xff] }
  0x21   : > { %3539 = vmatpush.msra.mxu3 %v686_v22  ;;  %247 = vst [vmem:[#allocation2 + $0x168] sm:$0x1] %v3585_v4  ;;  %936 = vmatpush.msra.mxu1 %v686_v22  ;;  %v332_v7 = vld [vmem:[%s3767_s17 + $0xa8] sm:$0xff]  ;;  %v739_v10 = vld [vmem:[%s6434_s1 + $0x250] sm:$0xff]  ;;  %v721_v16 = vld [vmem:[%s6434_s1 + $0x1c0] sm:$0xff] }
  0x22   : > { %824 = vmatpush.msra.mxu0 %v669_v23  ;;  %3524 = vmatpush.msra.mxu2 %v669_v23  ;;  %248 = vst [vmem:[#allocation2 + $0x180] sm:$0x1] %v3585_v4  ;;  %v706_v8 = vld [vmem:[%s6434_s1 + $0x148] sm:$0xff]  ;;  %v3942_v13 = vld [vmem:[%s3767_s17 + $0x30] sm:$0xff]  ;;  %v3960_v20 = vld [vmem:[%s3767_s17 + $0x38] sm:$0xff] }
  0x23   : > { %3540 = vmatpush.msra.mxu3 %v685_v24  ;;  %251 = vst [vmem:[#allocation2 + $0x29] sm:$0x1] %v3585_v4  ;;  %937 = vmatpush.msra.mxu1 %v685_v24  ;;  %v722_v9 = vld [vmem:[%s6434_s1 + $0x1c8] sm:$0xff]  ;;  %v333_v14 = vld [vmem:[%s3767_s17 + $0xb0] sm:$0xff]  ;;  %v334_v21 = vld [vmem:[%s3767_s17 + $0xb8] sm:$0xff] }
  0x24   : > { %825 = vmatpush.msra.mxu0 %v668_v25  ;;  %3525 = vmatpush.msra.mxu2 %v668_v25  ;;  %252 = vst [vmem:[#allocation2 + $0x41] sm:$0x1] %v3585_v4  ;;  %v738_v17 = vld [vmem:[%s6434_s1 + $0x248] sm:$0xff]  ;;  %v704_v22 = vld [vmem:[%s6434_s1 + $0x138] sm:$0xff]  ;;  %v737_v24 = vld [vmem:[%s6434_s1 + $0x240] sm:$0xff] }
  0x25   : > { %3541 = vmatpush.msra.mxu3 %v684_v26  ;;  %253 = vst [vmem:[#allocation2 + $0x59] sm:$0x1] %v3585_v4  ;;  %938 = vmatpush.msra.mxu1 %v684_v26  ;;  %v720_v23 = vld [vmem:[%s6434_s1 + $0x1b8] sm:$0xff] }
  0x26   : > { %826 = vmatpush.msra.mxu0 %v667_v27  ;;  %3526 = vmatpush.msra.mxu2 %v667_v27  ;;  %254 = vst [vmem:[#allocation2 + $0x71] sm:$0x1] %v3585_v4  ;;  %v3978_v27 = vld [vmem:[%s3767_s17 + $0x40] sm:$0xff] }
  0x27   : > { %3542 = vmatpush.msra.mxu3 %v683_v28  ;;  %255 = vst [vmem:[#allocation2 + $0x89] sm:$0x1] %v3585_v4  ;;  %939 = vmatpush.msra.mxu1 %v683_v28  ;;  %v335_v28 = vld [vmem:[%s3767_s17 + $0xc0] sm:$0xff] }
  0x28   : > { %827 = vmatpush.msra.mxu0 %v666_v29  ;;  %3527 = vmatpush.msra.mxu2 %v666_v29  ;;  %256 = vst [vmem:[#allocation2 + $0xa1] sm:$0x1] %v3585_v4  ;;  %v703_v29 = vld [vmem:[%s6434_s1 + $0x130] sm:$0xff] }
  0x29   : > { %3543 = vmatpush.msra.mxu3 %v682_v30  ;;  %257 = vst [vmem:[#allocation2 + $0xb9] sm:$0x1] %v3585_v4  ;;  %940 = vmatpush.msra.mxu1 %v682_v30  ;;  %v719_v30 = vld [vmem:[%s6434_s1 + $0x1b0] sm:$0xff] }
  0x2a   : > { %828 = vmatpush.msra.mxu0 %v665_v31  ;;  %3528 = vmatpush.msra.mxu2 %v665_v31  ;;  %258 = vst [vmem:[#allocation2 + $0xd1] sm:$0x1] %v3585_v4  ;;  %v736_v31 = vld [vmem:[%s6434_s1 + $0x238] sm:$0xff] }
  0x2b   : > { %3544 = vmatpush.msra.mxu3 %v681_v32  ;;  %829 = vmatmul.f32.vlgmr.msra.gmra.mxu0 %v376_v33  ;;  %259 = vst [vmem:[#allocation2 + $0xe9] sm:$0x1] %v3585_v4 }
  0x2c   : > { %260 = vst [vmem:[#allocation2 + $0x101] sm:$0x1] %v3585_v4  ;;  %990 = vmatmul.f32.vlgmr.msra.gmra.mxu3 %v3773_v34  ;;  %941 = vmatpush.msra.mxu1 %v681_v32 }
  0x2d   : > { %261 = vst [vmem:[#allocation2 + $0x119] sm:$0x1] %v3585_v4  ;;  %1039 = vmatpush.msrb.mxu2 %v712_v36  ;;  %1152 = vmatpush.msrb.mxu3 %v728_v37  ;;  %v702_v36 = vld [vmem:[%s6434_s1 + $0x128] sm:$0xff] }
  0x2e   : > { %262 = vst [vmem:[#allocation2 + $0x131] sm:$0x1] %v3585_v4  ;;  %1265 = vmatpush.msrb.mxu0 %v744_v41  ;;  %942 = vmatmul.f32.vlgmr.msra.gmra.mxu1 %v408_v42  ;;  %v718_v37 = vld [vmem:[%s6434_s1 + $0x1a8] sm:$0xff]  ;;  %v4014_v41 = vld [vmem:[%s3767_s17 + $0x50] sm:$0xff] }
  0x2f   : > { %263 = vst [vmem:[#allocation2 + $0x149] sm:$0x1] %v3585_v4  ;;  %1040 = vmatpush.msrb.mxu2 %v711_v39  ;;  %1153 = vmatpush.msrb.mxu3 %v727_v40  ;;  %v337_v42 = vld [vmem:[%s3767_s17 + $0xd0] sm:$0xff] }
  0x30   : > { %264 = vst [vmem:[#allocation2 + $0x161] sm:$0x1] %v3585_v4  ;;  %1266 = vmatpush.msrb.mxu0 %v743_v46 }
  0x31   : > { %265 = vst [vmem:[#allocation2 + $0x179] sm:$0x1] %v3585_v4  ;;  %1041 = vmatpush.msrb.mxu2 %v710_v44  ;;  %1154 = vmatpush.msrb.mxu3 %v726_v45  ;;  %v717_v44 = vld [vmem:[%s6434_s1 + $0x1a0] sm:$0xff]  ;;  %v734_v45 = vld [vmem:[%s6434_s1 + $0x228] sm:$0xff] }
  0x32   : > { %266 = vst [vmem:[#allocation2 + $0x191] sm:$0x1] %v3585_v4  ;;  %1267 = vmatpush.msrb.mxu0 %v742_v51  ;;  %v716_v51 = vld [vmem:[%s6434_s1 + $0x198] sm:$0xff] }
  0x33   : > { %268 = vst [vmem:[#allocation3] sm:$0xff] %v3585_v4  ;;  %832 = vmatmul.f32.gmra.mxu0 %v3585_v4  ;;  %1042 = vmatpush.msrb.mxu2 %v709_v49  ;;  %v338_v49 = vld [vmem:[%s3767_s17 + $0xd8] sm:$0xff] }
  0x34   : > { %269 = vst [vmem:[#allocation3 + $0x8] sm:$0xff] %v3585_v4  ;;  %993 = vmatmul.f32.gmra.mxu3 %v3799_v35  ;;  %1268 = vmatpush.msrb.mxu0 %v741_v58  ;;  %v339_v58 = vld [vmem:[%s3767_s17 + $0xe0] sm:$0xff] }
  0x35   : > { %270 = vst [vmem:[#allocation3 + $0x10] sm:$0x3] %v3585_v4  ;;  %1155 = vmatpush.msrb.mxu3 %v725_v50  ;;  %1043 = vmatpush.msrb.mxu2 %v708_v56  ;;  %v700_v50 = vld [vmem:[%s6434_s1 + $0x118] sm:$0xff] }
  0x36   : > { %272 = vst [vmem:[#allocation3 + $0x198] sm:$0xff] %v3585_v4  ;;  %945 = vmatmul.f32.gmra.mxu1 %v409_v47  ;;  %1269 = vmatpush.msrb.mxu0 %v740_v3  ;;  %v759_v3 = vld [vmem:[%s6434_s1 + $0x2f0] sm:$0xff] }
  0x37   : > { %273 = vst [vmem:[#allocation3 + $0x1a0] sm:$0xff] %v3585_v4  ;;  %1156 = vmatpush.msrb.mxu3 %v724_v57  ;;  %1044 = vmatpush.msrb.mxu2 %v707_v1  ;;  %v4050_v57 = vld [vmem:[%s3767_s17 + $0x60] sm:$0xff]  ;;  %v732_v1 = vld [vmem:[%s6434_s1 + $0x218] sm:$0xff] }
  0x38   : > { %274 = vst [vmem:[#allocation3 + $0x1a8] sm:$0x3] %v3585_v4  ;;  %1270 = vmatpush.msrb.mxu0 %v739_v10  ;;  %v698_v10 = vld [vmem:[%s6434_s1 + $0x108] sm:$0xff] }
  0x39   : > { %276 = vst [vmem:[#allocation3 + $0x18] sm:$0x1] %v3585_v4  ;;  %1157 = vmatpush.msrb.mxu3 %v723_v2  ;;  %1045 = vmatpush.msrb.mxu2 %v706_v8  ;;  %v760_v2 = vld [vmem:[%s6434_s1 + $0x2f8] sm:$0xff]  ;;  %v4074_v8 = vld [vmem:[%s3767_s17 + $0x68] sm:$0xff] }
  0x3a   : > { %277 = vst [vmem:[#allocation3 + $0x30] sm:$0x1] %v3585_v4  ;;  %1271 = vmatpush.msrb.mxu0 %v738_v17  ;;  %1378 = vmatpush.msrb.mxu1 %v760_v2  ;;  %v756_v17 = vld [vmem:[%s6434_s1 + $0x2d8] sm:$0xff]  ;;  %v791_v2 = vld [vmem:[%s6434_s1 + $0x3f0] sm:$0xff] }
  0x3b   : > { %278 = vst [vmem:[#allocation3 + $0x48] sm:$0x1] %v3585_v4  ;;  %1158 = vmatpush.msrb.mxu3 %v722_v9  ;;  %1046 = vmatpush.msrb.mxu2 %v705_v15  ;;  %v340_v9 = vld [vmem:[%s3767_s17 + $0xe8] sm:$0xff]  ;;  %v731_v15 = vld [vmem:[%s6434_s1 + $0x210] sm:$0xff] }
  0x3c   : > { %279 = vst [vmem:[#allocation3 + $0x60] sm:$0x1] %v3585_v4  ;;  %996 = vmatmul.f32.gmra.mxu3 %v3817_v38  ;;  %1272 = vmatpush.msrb.mxu0 %v737_v24  ;;  %v754_v24 = vld [vmem:[%s6434_s1 + $0x2c8] sm:$0xff] }
  0x3d   : > { %280 = vst [vmem:[#allocation3 + $0x78] sm:$0x1] %v3585_v4  ;;  %1159 = vmatpush.msrb.mxu3 %v721_v16  ;;  %1047 = vmatpush.msrb.mxu2 %v704_v22  ;;  %v757_v16 = vld [vmem:[%s6434_s1 + $0x2e0] sm:$0xff] }
  0x3e   : > { %281 = vst [vmem:[#allocation3 + $0x90] sm:$0x1] %v3585_v4  ;;  %948 = vmatmul.f32.gmra.mxu1 %v3868_v52  ;;  %1273 = vmatpush.msrb.mxu0 %v736_v31  ;;  %v752_v31 = vld [vmem:[%s6434_s1 + $0x2b8] sm:$0xff] }
  0x3f   : > { %282 = vst [vmem:[#allocation3 + $0xa8] sm:$0x1] %v3585_v4  ;;  %1160 = vmatpush.msrb.mxu3 %v720_v23  ;;  %1048 = vmatpush.msrb.mxu2 %v703_v29  ;;  %v697_v23 = vld [vmem:[%s6434_s1 + $0x100] sm:$0xff] }
  0x40   : > { %283 = vst [vmem:[#allocation3 + $0xc0] sm:$0x1] %v3585_v4  ;;  %1379 = vmatpush.msrb.mxu1 %v759_v3  ;;  %v753_v29 = vld [vmem:[%s6434_s1 + $0x2c0] sm:$0xff] }
  0x41   : > { %284 = vst [vmem:[#allocation3 + $0xd8] sm:$0x1] %v3585_v4  ;;  %1161 = vmatpush.msrb.mxu3 %v719_v30  ;;  %1049 = vmatpush.msrb.mxu2 %v702_v36  ;;  %v729_v30 = vld [vmem:[%s6434_s1 + $0x200] sm:$0xff] }
  0x42   : > { %285 = vst [vmem:[#allocation3 + $0xf0] sm:$0x1] %v3585_v4 }
  0x43   : > { %286 = vst [vmem:[#allocation3 + $0x108] sm:$0x1] %v3585_v4  ;;  %1162 = vmatpush.msrb.mxu3 %v718_v37  ;;  %v776_v37 = vld [vmem:[%s6434_s1 + $0x378] sm:$0xff] }
  0x44   : > { %287 = vst [vmem:[#allocation3 + $0x120] sm:$0x1] %v3585_v4  ;;  %999 = vmatmul.f32.gmra.mxu3 %v328_v43 }
  0x45   : > { %288 = vst [vmem:[#allocation3 + $0x138] sm:$0x1] %v3585_v4  ;;  %1163 = vmatpush.msrb.mxu3 %v717_v44 }
  0x46   : > { %289 = vst [vmem:[#allocation3 + $0x150] sm:$0x1] %v3585_v4  ;;  %951 = vmatmul.f32.gmra.mxu1 %v3878_v54 }
  0x47   : > { %290 = vst [vmem:[#allocation3 + $0x168] sm:$0x1] %v3585_v4  ;;  %1164 = vmatpush.msrb.mxu3 %v716_v51  ;;  %v745_v51 = vld [vmem:[%s6434_s1 + $0x280] sm:$0xff] }
  0x48   : > { %291 = vst [vmem:[#allocation3 + $0x180] sm:$0x1] %v3585_v4 }
  0x49   : > { %294 = vst [vmem:[#allocation3 + $0x29] sm:$0x1] %v3585_v4 }
  0x4a   : > { %295 = vst [vmem:[#allocation3 + $0x41] sm:$0x1] %v3585_v4 }
  0x4b   : > { %296 = vst [vmem:[#allocation3 + $0x59] sm:$0x1] %v3585_v4 }
  0x4c   : > { %297 = vst [vmem:[#allocation3 + $0x71] sm:$0x1] %v3585_v4  ;;  %1002 = vmatmul.f32.gmra.mxu3 %v329_v48 }
  0x4d   : > { %298 = vst [vmem:[#allocation3 + $0x89] sm:$0x1] %v3585_v4 }
  0x4e   : > { %299 = vst [vmem:[#allocation3 + $0xa1] sm:$0x1] %v3585_v4  ;;  %954 = vmatmul.f32.gmra.mxu1 %v3894_v59 }
  0x4f   : > { %300 = vst [vmem:[#allocation3 + $0xb9] sm:$0x1] %v3585_v4 }
  0x50   : > { %301 = vst [vmem:[#allocation3 + $0xd1] sm:$0x1] %v3585_v4 }
  0x51   : > { %302 = vst [vmem:[#allocation3 + $0xe9] sm:$0x1] %v3585_v4 }
  0x52   : > { %303 = vst [vmem:[#allocation3 + $0x101] sm:$0x1] %v3585_v4 }
  0x53   : > { %304 = vst [vmem:[#allocation3 + $0x119] sm:$0x1] %v3585_v4 }
  0x54   : > { %305 = vst [vmem:[#allocation3 + $0x131] sm:$0x1] %v3585_v4  ;;  %1005 = vmatmul.f32.gmra.mxu3 %v330_v55 }
  0x55   : > { %306 = vst [vmem:[#allocation3 + $0x149] sm:$0x1] %v3585_v4 }
  0x56   : > { %307 = vst [vmem:[#allocation3 + $0x161] sm:$0x1] %v3585_v4  ;;  %957 = vmatmul.f32.gmra.mxu1 %v3899_v60 }
  0x57   : > { %308 = vst [vmem:[#allocation3 + $0x179] sm:$0x1] %v3585_v4 }
  0x58   : > { %309 = vst [vmem:[#allocation3 + $0x191] sm:$0x1] %v3585_v4 }
  0x59   : > { %358 = vst [vmem:[#allocation2 + $0xc1] sm:$0xff] %v3773_v34  ;;  %v3996_v34 = vld [vmem:[%s3767_s17 + $0x48] sm:$0xff] }
  0x5a   : > { %249 = vst [vmem:[#allocation2 + $0x198] sm:$0x1] %v3585_v4 }
  0x5b   : > { %250 = vst [vmem:[#allocation2 + $0x11] sm:$0x1] %v3585_v4 }
  0x5c   : > { %267 = vst [vmem:[#allocation2 + $0x1a9] sm:$0x1] %v3585_v4  ;;  %1008 = vmatmul.f32.gmra.mxu3 %v331_v63 }
  0x5d   : > { %275 = vst [vmem:[#allocation3] sm:$0x1] %v3585_v4 }
  0x5e   : > { %292 = vst [vmem:[#allocation3 + $0x198] sm:$0x1] %v3585_v4  ;;  %960 = vmatmul.f32.gmra.mxu1 %v3904_v62 }
  0x5f   : > { %293 = vst [vmem:[#allocation3 + $0x11] sm:$0x1] %v3585_v4 }
  0x60   : > { %v392_v53 = vld [vmem:[#allocation2 + $0xc0] sm:$0xff]  ;;  %310 = vst [vmem:[#allocation3 + $0x1a9] sm:$0x1] %v3585_v4 }
  0x61   : > { %877 = vmatmul.f32.vlgmr.msra.gmra.mxu2 %v392_v53  ;;  %359 = vst [vmem:[#allocation2 + $0xc9] sm:$0xff] %v3799_v35  ;;  %v336_v35 = vld [vmem:[%s3767_s17 + $0xc8] sm:$0xff]  ;;  %v733_v53 = vld [vmem:[%s6434_s1 + $0x220] sm:$0xff] }
  0x62   : > { %344 = vst [vmem:[#allocation2 + $0x19] sm:$0xff] %v3868_v52 }
  0x63   : > { %360 = vst [vmem:[#allocation2 + $0xd9] sm:$0xff] %v3817_v38  ;;  %v735_v38 = vld [vmem:[%s6434_s1 + $0x230] sm:$0xff] }
  0x64   : > { %345 = vst [vmem:[#allocation2 + $0x21] sm:$0xff] %v3878_v54  ;;  %1011 = vmatmul.f32.gmra.mxu3 %v332_v7  ;;  %1274 = vmatpush.msrb.mxu0 %v735_v38  ;;  %v750_v38 = vld [vmem:[%s6434_s1 + $0x2a8] sm:$0xff] }
  0x65   : > { %361 = vst [vmem:[#allocation2 + $0xe1] sm:$0xff] %v328_v43  ;;  %v701_v43 = vld [vmem:[%s6434_s1 + $0x120] sm:$0xff] }
  0x66   : > { %346 = vst [vmem:[#allocation2 + $0x31] sm:$0xff] %v3894_v59  ;;  %963 = vmatmul.f32.gmra.mxu1 %v3924_v6  ;;  %1050 = vmatpush.msrb.mxu2 %v701_v43  ;;  %v748_v43 = vld [vmem:[%s6434_s1 + $0x298] sm:$0xff] }
  0x67   : > { %362 = vst [vmem:[#allocation2 + $0xf1] sm:$0xff] %v329_v48  ;;  %1275 = vmatpush.msrb.mxu0 %v734_v45  ;;  %v4032_v48 = vld [vmem:[%s3767_s17 + $0x58] sm:$0xff] }
  0x68   : > { %v393_v61 = vld [vmem:[#allocation2 + $0xc8] sm:$0xff]  ;;  %347 = vst [vmem:[#allocation2 + $0x39] sm:$0xff] %v3899_v60  ;;  %1051 = vmatpush.msrb.mxu2 %v700_v50 }
  0x69   : > { %880 = vmatmul.f32.gmra.mxu2 %v393_v61  ;;  %v3907_v0 = vld [vmem:[#allocation2 + $0x18] sm:$0xff]  ;;  %363 = vst [vmem:[#allocation2 + $0xf9] sm:$0xff] %v330_v55  ;;  %1276 = vmatpush.msrb.mxu0 %v733_v53  ;;  %v699_v61 = vld [vmem:[%s6434_s1 + $0x110] sm:$0xff]  ;;  %v746_v50 = vld [vmem:[%s6434_s1 + $0x288] sm:$0xff] }
  0x6a   : > { %835 = vmatmul.f32.gmra.mxu0 %v3907_v0  ;;  %348 = vst [vmem:[#allocation2 + $0x49] sm:$0xff] %v3904_v62  ;;  %v394_v4 = vld [vmem:[#allocation2 + $0xd8] sm:$0xff]  ;;  %1052 = vmatpush.msrb.mxu2 %v699_v61 }
  0x6b   : > { %364 = vst [vmem:[#allocation2 + $0x109] sm:$0xff] %v331_v63  ;;  %v3921_v5 = vld [vmem:[#allocation2 + $0x20] sm:$0xff]  ;;  %v715_v63 = vld [vmem:[%s6434_s1 + $0x190] sm:$0xff]  ;;  %1277 = vmatpush.msrb.mxu0 %v732_v1 }
  0x6c   : > { %349 = vst [vmem:[#allocation2 + $0x51] sm:$0xff] %v3924_v6  ;;  %v395_v11 = vld [vmem:[#allocation2 + $0xe0] sm:$0xff]  ;;  %1014 = vmatmul.f32.gmra.mxu3 %v333_v14  ;;  %1053 = vmatpush.msrb.mxu2 %v698_v10 }
  0x6d   : > { %365 = vst [vmem:[#allocation2 + $0x111] sm:$0xff] %v332_v7  ;;  %v3939_v12 = vld [vmem:[#allocation2 + $0x30] sm:$0xff]  ;;  %1165 = vmatpush.msrb.mxu3 %v715_v63  ;;  %1278 = vmatpush.msrb.mxu0 %v731_v15 }
  0x6e   : > { %350 = vst [vmem:[#allocation2 + $0x61] sm:$0xff] %v3942_v13  ;;  %v396_v18 = vld [vmem:[#allocation2 + $0xf0] sm:$0xff]  ;;  %966 = vmatmul.f32.gmra.mxu1 %v3942_v13  ;;  %1054 = vmatpush.msrb.mxu2 %v697_v23 }
  0x6f   : > { %366 = vst [vmem:[#allocation2 + $0x121] sm:$0xff] %v333_v14  ;;  %v3957_v19 = vld [vmem:[#allocation2 + $0x38] sm:$0xff]  ;;  %v714_v14 = vld [vmem:[%s6434_s1 + $0x188] sm:$0xff]  ;;  %v775_v63 = vld [vmem:[%s6434_s1 + $0x370] sm:$0xff] }
  0x70   : > { %351 = vst [vmem:[#allocation2 + $0x69] sm:$0xff] %v3960_v20  ;;  %v397_v25 = vld [vmem:[#allocation2 + $0xf8] sm:$0xff]  ;;  %1166 = vmatpush.msrb.mxu3 %v714_v14  ;;  %1491 = vmatpush.msra.mxu2 %v776_v37 }
  0x71   : > { %883 = vmatmul.f32.gmra.mxu2 %v394_v4  ;;  %367 = vst [vmem:[#allocation2 + $0x129] sm:$0xff] %v334_v21  ;;  %v3975_v26 = vld [vmem:[#allocation2 + $0x48] sm:$0xff]  ;;  %v538_v15 = vld [vmem:[#allocation2 + $0x32] sm:$0xff] }
  0x72   : > { %838 = vmatmul.f32.gmra.mxu0 %v3921_v5  ;;  %352 = vst [vmem:[#allocation2 + $0x79] sm:$0xff] %v3978_v27  ;;  %v398_v32 = vld [vmem:[#allocation2 + $0x108] sm:$0xff]  ;;  %1492 = vmatpush.msra.mxu2 %v775_v63 }
  0x73   : > { %368 = vst [vmem:[#allocation2 + $0x139] sm:$0xff] %v335_v28  ;;  %v3993_v33 = vld [vmem:[#allocation2 + $0x50] sm:$0xff] }
  0x74   : > { %1017 = vmatmul.f32.gmra.mxu3 %v334_v21  ;;  %353 = vst [vmem:[#allocation2 + $0x81] sm:$0xff] %v3996_v34  ;;  %v399_v39 = vld [vmem:[#allocation2 + $0x110] sm:$0xff] }
  0x75   : > { %369 = vst [vmem:[#allocation2 + $0x141] sm:$0xff] %v336_v35  ;;  %v4011_v40 = vld [vmem:[#allocation2 + $0x60] sm:$0xff]  ;;  %v755_v21 = vld [vmem:[%s6434_s1 + $0x2d0] sm:$0xff] }
  0x76   : > { %969 = vmatmul.f32.gmra.mxu1 %v3960_v20  ;;  %354 = vst [vmem:[#allocation2 + $0x91] sm:$0xff] %v4014_v41  ;;  %v400_v46 = vld [vmem:[#allocation2 + $0x120] sm:$0xff] }
  0x77   : > { %370 = vst [vmem:[#allocation2 + $0x151] sm:$0xff] %v337_v42  ;;  %v4029_v47 = vld [vmem:[#allocation2 + $0x68] sm:$0xff] }
  0x78   : > { %355 = vst [vmem:[#allocation2 + $0x99] sm:$0xff] %v4032_v48  ;;  %v401_v55 = vld [vmem:[#allocation2 + $0x128] sm:$0xff] }
  0x79   : > { %886 = vmatmul.f32.gmra.mxu2 %v395_v11  ;;  %371 = vst [vmem:[#allocation2 + $0x159] sm:$0xff] %v338_v49  ;;  %v4047_v56 = vld [vmem:[#allocation2 + $0x78] sm:$0xff]  ;;  %v758_v11 = vld [vmem:[%s6434_s1 + $0x2e8] sm:$0xff] }
  0x7a   : > { %841 = vmatmul.f32.gmra.mxu0 %v3939_v12  ;;  %356 = vst [vmem:[#allocation2 + $0xa9] sm:$0xff] %v4050_v57  ;;  %v402_v4 = vld [vmem:[#allocation2 + $0x138] sm:$0xff]  ;;  %1380 = vmatpush.msrb.mxu1 %v758_v11  ;;  %v807_v11 = vld [vmem:[%s6434_s1 + $0x470] sm:$0xff] }
  0x7b   : > { %372 = vst [vmem:[#allocation2 + $0x169] sm:$0xff] %v339_v58  ;;  %v4071_v7 = vld [vmem:[#allocation2 + $0x80] sm:$0xff] }
  0x7c   : > { %1020 = vmatmul.f32.gmra.mxu3 %v335_v28  ;;  %357 = vst [vmem:[#allocation2 + $0xb1] sm:$0xff] %v4074_v8  ;;  %1381 = vmatpush.msrb.mxu1 %v757_v16  ;;  %v730_v28 = vld [vmem:[%s6434_s1 + $0x208] sm:$0xff] }
  0x7d   : > { %373 = vst [vmem:[#allocation2 + $0x171] sm:$0xff] %v340_v9  ;;  %v4101_v22 = vld [vmem:[#allocation2 + $0x90] sm:$0xff]  ;;  %1279 = vmatpush.msrb.mxu0 %v730_v28 }
  0x7e   : > { %972 = vmatmul.f32.gmra.mxu1 %v3978_v27  ;;  %v441_v28 = vld [vmem:[#allocation2 + $0xa] sm:$0xff] }
  0x7f   : > { %1382 = vmatpush.msrb.mxu1 %v756_v17  ;;  %1280 = vmatpush.msrb.mxu0 %v729_v30  ;;  %v4130_v36 = vld [vmem:[#allocation2 + $0x98] sm:$0xff]  ;;  %v440_v17 = vld [vmem:[#allocation2 + $0x2] sm:$0xff] }
  0x80   : > { %v405_v44 = vld [vmem:[#allocation2 + $0x158] sm:$0xff] }
  0x81   : > { %889 = vmatmul.f32.gmra.mxu2 %v396_v18  ;;  %v403_v18 = vld [vmem:[#allocation2 + $0x140] sm:$0xff]  ;;  %1383 = vmatpush.msrb.mxu1 %v755_v21  ;;  %v4152_v45 = vld [vmem:[#allocation2 + $0xa8] sm:$0xff] }
  0x82   : > { %844 = vmatmul.f32.gmra.mxu0 %v3957_v19  ;;  %v790_v21 = vld [vmem:[%s6434_s1 + $0x3e8] sm:$0xff] }
  0x83   : > { %1384 = vmatpush.msrb.mxu1 %v754_v24  ;;  %v4170_v61 = vld [vmem:[#allocation2 + $0xb0] sm:$0xff]  ;;  %v539_v24 = vld [vmem:[#allocation2 + $0x3a] sm:$0xff] }
  0x84   : > { %1023 = vmatmul.f32.gmra.mxu3 %v336_v35  ;;  %v751_v35 = vld [vmem:[%s6434_s1 + $0x2b0] sm:$0xff] }
  0x85   : > { %1385 = vmatpush.msrb.mxu1 %v753_v29 }
  0x86   : > { %975 = vmatmul.f32.gmra.mxu1 %v3996_v34 }
  0x87   : > { %1386 = vmatpush.msrb.mxu1 %v752_v31 }
  0x89   : > { %892 = vmatmul.f32.gmra.mxu2 %v397_v25  ;;  %v713_v25 = vld [vmem:[%s6434_s1 + $0x180] sm:$0xff]  ;;  %1387 = vmatpush.msrb.mxu1 %v751_v35 }
  0x8a   : > { %847 = vmatmul.f32.gmra.mxu0 %v3975_v26  ;;  %1167 = vmatpush.msrb.mxu3 %v713_v25 }
  0x8b   : > { %1388 = vmatpush.msrb.mxu1 %v750_v38 }
  0x8c   : > { %1026 = vmatmul.f32.gmra.mxu3 %v337_v42 }
  0x8e   : > { %978 = vmatmul.f32.gmra.mxu1 %v4014_v41 }
  0x91   : > { %895 = vmatmul.f32.gmra.mxu2 %v398_v32  ;;  %v404_v32 = vld [vmem:[#allocation2 + $0x150] sm:$0xff] }
  0x92   : > { %850 = vmatmul.f32.gmra.mxu0 %v3993_v33 }
  0x94   : > { %1029 = vmatmul.f32.gmra.mxu3 %v338_v49 }
  0x96   : > { %981 = vmatmul.f32.gmra.mxu1 %v4032_v48 }
  0x99   : > { %898 = vmatmul.f32.gmra.mxu2 %v399_v39  ;;  %v749_v39 = vld [vmem:[%s6434_s1 + $0x2a0] sm:$0xff] }
  0x9a   : > { %853 = vmatmul.f32.gmra.mxu0 %v4011_v40  ;;  %1389 = vmatpush.msrb.mxu1 %v749_v39  ;;  %v773_v39 = vld [vmem:[%s6434_s1 + $0x360] sm:$0xff] }
  0x9c   : > { %1032 = vmatmul.f32.gmra.mxu3 %v339_v58  ;;  %1390 = vmatpush.msrb.mxu1 %v748_v43  ;;  %v406_v58 = vld [vmem:[#allocation2 + $0x168] sm:$0xff] }
  0x9e   : > { %984 = vmatmul.f32.gmra.mxu1 %v4050_v57 }
  0xa1   : > { %901 = vmatmul.f32.gmra.mxu2 %v400_v46  ;;  %v747_v46 = vld [vmem:[%s6434_s1 + $0x290] sm:$0xff] }
  0xa2   : > { %856 = vmatmul.f32.gmra.mxu0 %v4029_v47  ;;  %1391 = vmatpush.msrb.mxu1 %v747_v46 }
  0xa4   : > { %1035 = vmatmul.f32.gmra.mxu3 %v340_v9  ;;  %1392 = vmatpush.msrb.mxu1 %v746_v50  ;;  %v407_v9 = vld [vmem:[#allocation2 + $0x170] sm:$0xff] }
  0xa6   : > { %987 = vmatmul.f32.gmra.mxu1 %v4074_v8 }
  0xa7   : > { %1393 = vmatpush.msrb.mxu1 %v745_v51 }
  0xa8   : > { %v4181_v3 = vpop.f32.mrf.mxu0 }
  0xa9   : > { %904 = vmatmul.f32.gmra.mxu2 %v401_v55  ;;  %v536_v55 = vld [vmem:[#allocation2 + $0x1a] sm:$0xff] }
  0xaa   : > { %859 = vmatmul.f32.gmra.mxu0 %v4047_v56 }
  0xab   : > { %v4157_v49 = vpop.f32.mrf.mxu1 }
  0xac   : > { %1168 = vmatmul.f32.vlgmr.msrb.gmra.mxu3 %v3907_v0  ;;  %v792_v0 = vld [vmem:[%s6434_s1 + $0x3f8] sm:$0xff] }
  0xad   : > { %1604 = vmatpush.msra.mxu3 %v792_v0 }
  0xae   : > { %1394 = vmatmul.f32.vlgmr.msrb.gmra.mxu1 %v536_v55 }
  0xaf   : > { %v4145_v42 = vpop.f32.mrf.mxu3  ;;  %1605 = vmatpush.msra.mxu3 %v791_v2 }
  0xb0   : > { %v4190_v16 = vpop.f32.mrf.mxu0 }
  0xb1   : > { %907 = vmatmul.f32.gmra.mxu2 %v402_v4  ;;  %v537_v4 = vld [vmem:[#allocation2 + $0x22] sm:$0xff]  ;;  %1606 = vmatpush.msra.mxu3 %v790_v21 }
  0xb2   : > { %862 = vmatmul.f32.gmra.mxu0 %v4071_v7 }
  0xb3   : > { %v4175_v1 = vpop.f32.mrf.mxu1 }
  0xb4   : > { %1171 = vmatmul.f32.gmra.mxu3 %v3921_v5  ;;  %v808_v5 = vld [vmem:[%s6434_s1 + $0x478] sm:$0xff] }
  0xb5   : > { %1717 = vmatpush.msra.mxu0 %v808_v5 }
  0xb6   : > { %1397 = vmatmul.f32.gmra.mxu1 %v537_v4 }
  0xb7   : > { %v994_v53 = vpop.f32.mrf.mxu3  ;;  %1718 = vmatpush.msra.mxu0 %v807_v11  ;;  %v543_v11 = vld [vmem:[#allocation2 + $0x6a] sm:$0xff] }
  0xb9   : > { %910 = vmatmul.f32.gmra.mxu2 %v403_v18  ;;  %v774_v18 = vld [vmem:[%s6434_s1 + $0x368] sm:$0xff] }
  0xba   : > { %865 = vmatmul.f32.gmra.mxu0 %v4101_v22  ;;  %1493 = vmatpush.msra.mxu2 %v774_v18 }
  0xbb   : > { %v4184_v10 = vpop.f32.mrf.mxu1 }
  0xbc   : > { %1174 = vmatmul.f32.gmra.mxu3 %v3939_v12  ;;  %1494 = vmatpush.msra.mxu2 %v773_v39 }
  0xbe   : > { %1400 = vmatmul.f32.gmra.mxu1 %v538_v15 }
  0xbf   : > { %v997_v12 = vpop.f32.mrf.mxu3 }
  0xc1   : > { %913 = vmatmul.f32.gmra.mxu2 %v404_v32 }
  0xc2   : > { %868 = vmatmul.f32.gmra.mxu0 %v4130_v36 }
  0xc4   : > { %1177 = vmatmul.f32.gmra.mxu3 %v3957_v19  ;;  %v4196_v19 = vld [vmem:[%s6435_s2] ss:$0 sm:$0xff] }
  0xc6   : > { %1403 = vmatmul.f32.gmra.mxu1 %v539_v24 }
  0xc7   : > { %v1000_v14 = vpop.f32.mrf.mxu3 }
  0xc9   : > { %916 = vmatmul.f32.gmra.mxu2 %v405_v44  ;;  %v541_v44 = vld [vmem:[#allocation2 + $0x52] sm:$0xff] }
  0xca   : > { %871 = vmatmul.f32.gmra.mxu0 %v4152_v45 }
  0xcc   : > { %1180 = vmatmul.f32.gmra.mxu3 %v3975_v26 }
  0xcf   : > { %v1003_v23 = vpop.f32.mrf.mxu3 }
  0xd1   : > { %919 = vmatmul.f32.gmra.mxu2 %v406_v58  ;;  %v542_v58 = vld [vmem:[#allocation2 + $0x62] sm:$0xff] }
  0xd2   : > { %874 = vmatmul.f32.gmra.mxu0 %v4170_v61 }
  0xd4   : > { %1183 = vmatmul.f32.gmra.mxu3 %v3993_v33  ;;  %v540_v33 = vld [vmem:[#allocation2 + $0x4a] sm:$0xff] }
  0xd5   : > { %1406 = vmatmul.f32.gmra.mxu1 %v540_v33 }
  0xd7   : > { %v1006_v35 = vpop.f32.mrf.mxu3 }
  0xd9   : > { %922 = vmatmul.f32.gmra.mxu2 %v407_v9 }
  0xda   : > { %1281 = vmatmul.f32.vlgmr.msrb.gmra.mxu0 %v3868_v52  ;;  %v4201_v52 = vpop.f32.mrf.mxu1 }
  0xdc   : > { %1186 = vmatmul.f32.gmra.mxu3 %v4011_v40 }
  0xdd   : > { %1409 = vmatmul.f32.gmra.mxu1 %v541_v44 }
  0xdf   : > { %v1009_v43 = vpop.f32.mrf.mxu3 }
  0xe1   : > { %1055 = vmatmul.f32.vlgmr.msrb.gmra.mxu2 %v440_v17 }
  0xe2   : > { %1284 = vmatmul.f32.gmra.mxu0 %v3878_v54  ;;  %v4214_v31 = vpop.f32.mrf.mxu1  ;;  %v806_v54 = vld [vmem:[%s6434_s1 + $0x468] sm:$0xff] }
  0xe3   : > { %1719 = vmatpush.msra.mxu0 %v806_v54 }
  0xe4   : > { %v878_v26 = vpop.f32.mrf.mxu2  ;;  %1189 = vmatmul.f32.gmra.mxu3 %v4029_v47 }
  0xe5   : > { %v879_v25 = vadd.f32 %v4196_v19, %v878_v26  ;;  %1412 = vmatmul.f32.gmra.mxu1 %v542_v58 }
  0xe7   : > { %v4210_v29 = vadd.f32 %v4145_v42, %v879_v25  ;;  %v4212_v30 = vpop.f32.mrf.mxu0  ;;  %v544_v25 = vld [vmem:[#allocation2 + $0x7a] sm:$0xff] }
  0xe9   : > { %1058 = vmatmul.f32.gmra.mxu2 %v441_v28  ;;  %v771_v28 = vld [vmem:[%s6434_s1 + $0x350] sm:$0xff] }
  0xea   : > { %1287 = vmatmul.f32.gmra.mxu0 %v3894_v59  ;;  %v4229_v42 = vpop.f32.mrf.mxu1  ;;  %v789_v59 = vld [vmem:[%s6434_s1 + $0x3e0] sm:$0xff] }
  0xeb   : > { %1607 = vmatpush.msra.mxu3 %v789_v59 }
  0xec   : > { %v881_v32 = vpop.f32.mrf.mxu2  ;;  %1192 = vmatmul.f32.gmra.mxu3 %v4047_v56 }
  0xed   : > { %v882_v37 = vadd.f32 %v4196_v19, %v881_v32  ;;  %1415 = vmatmul.f32.gmra.mxu1 %v543_v11 }
  0xef   : > { %v4222_v38 = vadd.f32 %v994_v53, %v882_v37  ;;  %v4224_v0 = vpop.f32.mrf.mxu0 }
  0xf1   : > { %1061 = vmatmul.f32.gmra.mxu2 %v536_v55  ;;  %v1012_v55 = vpop.f32.mrf.mxu3 }
  0xf2   : > { %1290 = vmatmul.f32.gmra.mxu0 %v3899_v60  ;;  %v4241_v51 = vpop.f32.mrf.mxu1  ;;  %v805_v60 = vld [vmem:[%s6434_s1 + $0x460] sm:$0xff] }
  0xf3   : > { %1720 = vmatpush.msra.mxu0 %v805_v60 }
  0xf4   : > { %v884_v40 = vpop.f32.mrf.mxu2  ;;  %1195 = vmatmul.f32.gmra.mxu3 %v4071_v7 }
  0xf5   : > { %v885_v46 = vadd.f32 %v4196_v19, %v884_v40  ;;  %1418 = vmatmul.f32.gmra.mxu1 %v544_v25 }
  0xf7   : > { %v4237_v50 = vadd.f32 %v997_v12, %v885_v46  ;;  %v4239_v5 = vpop.f32.mrf.mxu0  ;;  %v772_v12 = vld [vmem:[%s6434_s1 + $0x358] sm:$0xff] }
  0xf8   : > { %1495 = vmatpush.msra.mxu2 %v772_v12  ;;  %v4299_v46 = vld [vmem:[#allocation2 + $0x92] sm:$0xff] }
  0xf9   : > { %1064 = vmatmul.f32.gmra.mxu2 %v537_v4  ;;  %v1015_v9 = vpop.f32.mrf.mxu3 }
  0xfa   : > { %1293 = vmatmul.f32.gmra.mxu0 %v3904_v62  ;;  %v4256_v4 = vpop.f32.mrf.mxu1  ;;  %v788_v62 = vld [vmem:[%s6434_s1 + $0x3d8] sm:$0xff]  ;;  %1496 = vmatpush.msra.mxu2 %v771_v28 }
  0xfb   : > { %1608 = vmatpush.msra.mxu3 %v788_v62 }
  0xfc   : > { %v887_v53 = vpop.f32.mrf.mxu2  ;;  %1198 = vmatmul.f32.gmra.mxu3 %v4101_v22 }
  0xfd   : > { %v888_v47 = vadd.f32 %v4196_v19, %v887_v53  ;;  %v786_v53 = vld [vmem:[%s6434_s1 + $0x3c8] sm:$0xff] }
  0xff   : > { %v4249_v63 = vadd.f32 %v1000_v14, %v888_v47  ;;  %v4251_v2 = vpop.f32.mrf.mxu0 }
 0x101   : > { %1067 = vmatmul.f32.gmra.mxu2 %v538_v15  ;;  %v1018_v26 = vpop.f32.mrf.mxu3 }
 0x102   : > { %1296 = vmatmul.f32.gmra.mxu0 %v3924_v6  ;;  %v4268_v18 = vpop.f32.mrf.mxu1  ;;  %v804_v6 = vld [vmem:[%s6434_s1 + $0x458] sm:$0xff] }
 0x103   : > { %1721 = vmatpush.msra.mxu0 %v804_v6 }
 0x104   : > { %v890_v56 = vpop.f32.mrf.mxu2  ;;  %1201 = vmatmul.f32.gmra.mxu3 %v4130_v36 }
 0x105   : > { %v891_v14 = vadd.f32 %v4196_v19, %v890_v56 }
 0x107   : > { %v4264_v15 = vadd.f32 %v1003_v23, %v891_v14  ;;  %v4266_v17 = vpop.f32.mrf.mxu0 }
 0x109   : > { %1070 = vmatmul.f32.gmra.mxu2 %v539_v24  ;;  %v1021_v32 = vpop.f32.mrf.mxu3 }
 0x10a   : > { %1299 = vmatmul.f32.gmra.mxu0 %v3942_v13  ;;  %v787_v13 = vld [vmem:[%s6434_s1 + $0x3d0] sm:$0xff]  ;;  %v4287_v54 = vpop.f32.mrf.mxu1 }
 0x10b   : > { %1609 = vmatpush.msra.mxu3 %v787_v13  ;;  %v785_v13 = vld [vmem:[%s6434_s1 + $0x3c0] sm:$0xff] }
 0x10c   : > { %v893_v21 = vpop.f32.mrf.mxu2  ;;  %1204 = vmatmul.f32.gmra.mxu3 %v4152_v45 }
 0x10d   : > { %v894_v7 = vadd.f32 %v4196_v19, %v893_v21  ;;  %1610 = vmatpush.msra.mxu3 %v786_v53 }
 0x10f   : > { %v4276_v23 = vadd.f32 %v1006_v35, %v894_v7  ;;  %v4278_v24 = vpop.f32.mrf.mxu0  ;;  %v545_v35 = vld [vmem:[#allocation2 + $0x82] sm:$0xff]  ;;  %1611 = vmatpush.msra.mxu3 %v785_v13 }
 0x110   : > { %1421 = vmatmul.f32.gmra.mxu1 %v545_v35 }
 0x111   : > { %1073 = vmatmul.f32.gmra.mxu2 %v540_v33  ;;  %v1024_v40 = vpop.f32.mrf.mxu3 }
 0x112   : > { %1302 = vmatmul.f32.gmra.mxu0 %v3960_v20  ;;  %v803_v20 = vld [vmem:[%s6434_s1 + $0x450] sm:$0xff]  ;;  %v4302_v36 = vpop.f32.mrf.mxu1 }
 0x113   : > { %1722 = vmatpush.msra.mxu0 %v803_v20 }
 0x114   : > { %v896_v22 = vpop.f32.mrf.mxu2  ;;  %1207 = vmatmul.f32.gmra.mxu3 %v4170_v61  ;;  %v4336_v61 = vld [vmem:[#allocation2 + $0xaa] sm:$0xff] }
 0x115   : > { %v897_v37 = vadd.f32 %v4196_v19, %v896_v22 }
 0x117   : > { %v4291_v33 = vadd.f32 %v1009_v43, %v897_v37  ;;  %v4293_v39 = vpop.f32.mrf.mxu0  ;;  %v4355_v37 = vld [vmem:[#allocation2 + $0xb2] sm:$0xff] }
 0x118   : > { %1424 = vmatmul.f32.gmra.mxu1 %v4299_v46 }
 0x119   : > { %1076 = vmatmul.f32.gmra.mxu2 %v541_v44  ;;  %v4317_v47 = vpop.f32.mrf.mxu3 }
 0x11a   : > { %1305 = vmatmul.f32.gmra.mxu0 %v3978_v27  ;;  %v770_v27 = vld [vmem:[%s6434_s1 + $0x348] sm:$0xff]  ;;  %v4328_v56 = vpop.f32.mrf.mxu1 }
 0x11b   : > { %1497 = vmatpush.msra.mxu2 %v770_v27 }
 0x11c   : > { %v899_v59 = vpop.f32.mrf.mxu2 }
 0x11d   : > { %v900_v60 = vadd.f32 %v4196_v19, %v899_v59 }
 0x11f   : > { %v4306_v43 = vadd.f32 %v1012_v55, %v900_v60  ;;  %v4308_v44 = vpop.f32.mrf.mxu0  ;;  %v4319_v55 = vld [vmem:[#allocation2 + $0x9a] sm:$0xff]  ;;  %v487_v60 = vld [vmem:[#allocation2 + $0xc8] sm:$0xff] }
 0x120   : > { %1427 = vmatmul.f32.gmra.mxu1 %v4319_v55 }
 0x121   : > { %6471 = vst [vmem:[#allocation4_spill] sm:$0xff] %v4306_v43  ;;  %1079 = vmatmul.f32.gmra.mxu2 %v542_v58  ;;  %v4334_v6 = vpop.f32.mrf.mxu3 }
 0x122   : > { %1308 = vmatmul.f32.gmra.mxu0 %v3996_v34  ;;  %v802_v34 = vld [vmem:[%s6434_s1 + $0x448] sm:$0xff]  ;;  %v4344_v28 = vpop.f32.mrf.mxu1 }
 0x123   : > { %1723 = vmatpush.msra.mxu0 %v802_v34 }
 0x124   : > { %v902_v45 = vpop.f32.mrf.mxu2 }
 0x125   : > { %v903_v12 = vadd.f32 %v4196_v19, %v902_v45 }
 0x127   : > { %v4324_v58 = vadd.f32 %v1015_v9, %v903_v12  ;;  %v4326_v62 = vpop.f32.mrf.mxu0  ;;  %v4371_v12 = vld [vmem:[#allocation2 + $0xc2] sm:$0xff] }
 0x128   : > { %1430 = vmatmul.f32.gmra.mxu1 %v4336_v61 }
 0x129   : > { %6472 = vst [vmem:[#allocation5_spill] sm:$0xff] %v4324_v58  ;;  %1082 = vmatmul.f32.gmra.mxu2 %v543_v11  ;;  %v486_v11 = vld [vmem:[#allocation2 + $0xc0] sm:$0xff]  ;;  %v4353_v22 = vpop.f32.mrf.mxu3  ;;  %v4482_v58 = vld [vmem:[#allocation2 + $0x10a] sm:$0xff] }
 0x12a   : > { %1311 = vmatmul.f32.gmra.mxu0 %v4014_v41  ;;  %1210 = vmatmul.f32.gmra.mxu3 %v486_v11  ;;  %v769_v41 = vld [vmem:[%s6434_s1 + $0x340] sm:$0xff]  ;;  %v4367_v27 = vpop.f32.mrf.mxu1 }
 0x12b   : > { %1498 = vmatpush.msra.mxu2 %v769_v41  ;;  %v4389_v41 = vld [vmem:[#allocation2 + $0xca] sm:$0xff] }
 0x12c   : > { %v905_v14 = vpop.f32.mrf.mxu2 }
 0x12d   : > { %v906_v9 = vadd.f32 %v4196_v19, %v905_v14  ;;  %v488_v14 = vld [vmem:[#allocation2 + $0xd8] sm:$0xff] }
 0x12f   : > { %v4340_v21 = vadd.f32 %v1018_v26, %v906_v9  ;;  %v4342_v7 = vpop.f32.mrf.mxu0  ;;  %v784_v9 = vld [vmem:[%s6434_s1 + $0x3b8] sm:$0xff] }
 0x130   : > { %1433 = vmatmul.f32.gmra.mxu1 %v4355_v37  ;;  %1612 = vmatpush.msra.mxu3 %v784_v9 }
 0x131   : > { %6473 = vst [vmem:[#allocation6_spill] sm:$0xff] %v4340_v21  ;;  %1085 = vmatmul.f32.gmra.mxu2 %v544_v25  ;;  %v4369_v45 = vpop.f32.mrf.mxu3 }
 0x132   : > { %1314 = vmatmul.f32.gmra.mxu0 %v4032_v48  ;;  %1213 = vmatmul.f32.gmra.mxu3 %v487_v60  ;;  %v801_v48 = vld [vmem:[%s6434_s1 + $0x440] sm:$0xff]  ;;  %v4392_v13 = vpop.f32.mrf.mxu1 }
 0x133   : > { %1724 = vmatpush.msra.mxu0 %v801_v48  ;;  %v518_v60 = vld [vmem:[#allocation2 + $0xc1] sm:$0xff] }
 0x134   : > { %v908_v26 = vpop.f32.mrf.mxu2  ;;  %v489_v48 = vld [vmem:[#allocation2 + $0xe0] sm:$0xff] }
 0x135   : > { %v909_v25 = vadd.f32 %v4196_v19, %v908_v26 }
 0x137   : > { %v4359_v20 = vadd.f32 %v1021_v32, %v909_v25  ;;  %v4361_v59 = vpop.f32.mrf.mxu0 }
 0x138   : > { %1436 = vmatmul.f32.gmra.mxu1 %v4371_v12 }
 0x139   : > { %6474 = vst [vmem:[#allocation7_spill] sm:$0xff] %v4359_v20  ;;  %1088 = vmatmul.f32.gmra.mxu2 %v545_v35  ;;  %v4387_v11 = vpop.f32.mrf.mxu3 }
 0x13a   : > { %1317 = vmatmul.f32.gmra.mxu0 %v4050_v57  ;;  %1216 = vmatmul.f32.gmra.mxu3 %v488_v14  ;;  %v768_v57 = vld [vmem:[%s6434_s1 + $0x338] sm:$0xff] }
 0x13b   : > { %1499 = vmatpush.msra.mxu2 %v768_v57  ;;  %v4409_v14 = vld [vmem:[#allocation2 + $0xda] sm:$0xff] }
 0x13c   : > { %v911_v53 = vpop.f32.mrf.mxu2 }
 0x13d   : > { %v912_v32 = vadd.f32 %v4196_v19, %v911_v53  ;;  %v800_v53 = vld [vmem:[%s6434_s1 + $0x438] sm:$0xff] }
 0x13e   : > { %1725 = vmatpush.msra.mxu0 %v800_v53 }
 0x13f   : > { %v4375_v35 = vadd.f32 %v1024_v40, %v912_v32  ;;  %v4377_v34 = vpop.f32.mrf.mxu0 }
 0x140   : > { %1439 = vmatmul.f32.gmra.mxu1 %v4389_v41 }
 0x141   : > { %6475 = vst [vmem:[#allocation8_spill] sm:$0xff] %v4375_v35  ;;  %1091 = vmatmul.f32.gmra.mxu2 %v4299_v46  ;;  %v492_v35 = vld [vmem:[#allocation2 + $0x108] sm:$0xff] }
 0x142   : > { %1320 = vmatmul.f32.gmra.mxu0 %v4074_v8  ;;  %v2199_v8 = vld [vmem:[%s6436_s3 + $0x78] sm:$0xff]  ;;  %1219 = vmatmul.f32.gmra.mxu3 %v489_v48 }
 0x143   : > { %2332 = vmatpush.msra.mxu1 %v2199_v8  ;;  %v767_v8 = vld [vmem:[%s6434_s1 + $0x330] sm:$0xff] }
 0x144   : > { %v914_v40 = vpop.f32.mrf.mxu2  ;;  %1500 = vmatpush.msra.mxu2 %v767_v8  ;;  %v2198_v8 = vld [vmem:[%s6436_s3 + $0x70] sm:$0xff] }
 0x145   : > { %v915_v46 = vadd.f32 %v4196_v19, %v914_v40  ;;  %v519_v40 = vld [vmem:[#allocation2 + $0xc9] sm:$0xff]  ;;  %2333 = vmatpush.msra.mxu1 %v2198_v8  ;;  %v521_v8 = vld [vmem:[#allocation2 + $0xe1] sm:$0xff] }
 0x147   : > { %v4396_v26 = vadd.f32 %v4317_v47, %v915_v46  ;;  %v4398_v25 = vpop.f32.mrf.mxu0  ;;  %v4407_v47 = vpop.f32.mrf.mxu3 }
 0x148   : > { %1442 = vmatmul.f32.gmra.mxu1 %v4409_v14  ;;  %v4418_v46 = vpop.f32.mrf.mxu1 }
 0x149   : > { %6476 = vst [vmem:[#allocation9_spill] sm:$0xff] %v4396_v26  ;;  %1094 = vmatmul.f32.gmra.mxu2 %v4319_v55 }
 0x14a   : > { %1323 = vmatmul.f32.gmra.mxu0 %v518_v60  ;;  %v490_v60 = vld [vmem:[#allocation2 + $0xf0] sm:$0xff] }
 0x14b   : > { %1222 = vmatmul.f32.gmra.mxu3 %v490_v60 }
 0x14c   : > { %v917_v32 = vpop.f32.mrf.mxu2 }
 0x14d   : > { %v918_v57 = vadd.f32 %v4196_v19, %v917_v32  ;;  %v4429_v32 = vld [vmem:[#allocation2 + $0xe2] sm:$0xff] }
 0x14f   : > { %v4414_v9 = vadd.f32 %v4334_v6, %v918_v57  ;;  %v4416_v55 = vpop.f32.mrf.mxu0  ;;  %v783_v6 = vld [vmem:[%s6434_s1 + $0x3b0] sm:$0xff]  ;;  %v4427_v53 = vpop.f32.mrf.mxu3 }
 0x150   : > { %1613 = vmatpush.msra.mxu3 %v783_v6  ;;  %1445 = vmatmul.f32.gmra.mxu1 %v4429_v32  ;;  %v1395_v6 = vpop.f32.mrf.mxu1 }
 0x151   : > { %6477 = vst [vmem:[#allocation10_spill] sm:$0xff] %v4414_v9  ;;  %1097 = vmatmul.f32.gmra.mxu2 %v4336_v61  ;;  %v491_v9 = vld [vmem:[#allocation2 + $0xf8] sm:$0xff] }
 0x152   : > { %1326 = vmatmul.f32.gmra.mxu0 %v519_v40  ;;  %v520_v40 = vld [vmem:[#allocation2 + $0xd9] sm:$0xff] }
 0x153   : > { %1225 = vmatmul.f32.gmra.mxu3 %v491_v9 }
 0x154   : > { %v920_v48 = vpop.f32.mrf.mxu2 }
 0x155   : > { %v921_v57 = vadd.f32 %v4196_v19, %v920_v48  ;;  %v799_v48 = vld [vmem:[%s6434_s1 + $0x430] sm:$0xff] }
 0x156   : > { %1726 = vmatpush.msra.mxu0 %v799_v48  ;;  %v766_v48 = vld [vmem:[%s6434_s1 + $0x328] sm:$0xff] }
 0x157   : > { %v4434_v61 = vadd.f32 %v4353_v22, %v921_v57  ;;  %v1282_v60 = vpop.f32.mrf.mxu0  ;;  %v4443_v22 = vpop.f32.mrf.mxu3  ;;  %v4445_v57 = vld [vmem:[#allocation2 + $0xf2] sm:$0xff]  ;;  %1501 = vmatpush.msra.mxu2 %v766_v48  ;;  %v2197_v48 = vld [vmem:[%s6436_s3 + $0x68] sm:$0xff] }
 0x158   : > { %1448 = vmatmul.f32.gmra.mxu1 %v4445_v57  ;;  %v1398_v20 = vpop.f32.mrf.mxu1 }
 0x159   : > { %6478 = vst [vmem:[#allocation11_spill] sm:$0xff] %v4434_v61  ;;  %1100 = vmatmul.f32.gmra.mxu2 %v4355_v37  ;;  %v831_v37 = vadd.f32 %v4196_v19, %v4181_v3  ;;  %v782_v3 = vld [vmem:[%s6434_s1 + $0x3a8] sm:$0xff]  ;;  %2334 = vmatpush.msra.mxu1 %v2197_v48 }
 0x15a   : > { %1329 = vmatmul.f32.gmra.mxu0 %v520_v40  ;;  %1614 = vmatpush.msra.mxu3 %v782_v3  ;;  %v493_v3 = vld [vmem:[#allocation2 + $0x110] sm:$0xff] }
 0x15b   : > { %1228 = vmatmul.f32.gmra.mxu3 %v492_v35  ;;  %v834_v35 = vadd.f32 %v4196_v19, %v4190_v16  ;;  %v798_v16 = vld [vmem:[%s6434_s1 + $0x428] sm:$0xff] }
 0x15c   : > { %v923_v26 = vpop.f32.mrf.mxu2  ;;  %1727 = vmatpush.msra.mxu0 %v798_v16  ;;  %v840_v16 = vadd.f32 %v4196_v19, %v4224_v0  ;;  %v797_v0 = vld [vmem:[%s6434_s1 + $0x420] sm:$0xff] }
 0x15d   : > { %v924_v61 = vadd.f32 %v4196_v19, %v923_v26  ;;  %v944_v26 = vadd.f32 %v4157_v49, %v831_v37  ;;  %v522_v37 = vld [vmem:[#allocation2 + $0xf1] sm:$0xff] }
 0x15e   : > { %1728 = vmatpush.msra.mxu0 %v797_v0  ;;  %v2195_v0 = vld [vmem:[%s6436_s3 + $0x58] sm:$0xff] }
 0x15f   : > { %v4452_v9 = vadd.f32 %v4369_v45, %v924_v61  ;;  %v1285_v40 = vpop.f32.mrf.mxu0  ;;  %v4462_v61 = vpop.f32.mrf.mxu3 }
 0x160   : > { %v1401_v43 = vpop.f32.mrf.mxu1 }
 0x161   : > { %6479 = vst [vmem:[#allocation12_spill] sm:$0xff] %v4452_v9  ;;  %1103 = vmatmul.f32.gmra.mxu2 %v4371_v12  ;;  %v4464_v9 = vld [vmem:[#allocation2 + $0xfa] sm:$0xff] }
 0x162   : > { %1332 = vmatmul.f32.gmra.mxu0 %v521_v8  ;;  %1451 = vmatmul.f32.gmra.mxu1 %v4464_v9 }
 0x163   : > { %1231 = vmatmul.f32.gmra.mxu3 %v493_v3 }
 0x164   : > { %v1056_v45 = vpop.f32.mrf.mxu2 }
 0x165   : > { %v1057_v12 = vadd.f32 %v1056_v45, %v944_v26  ;;  %v947_v26 = vadd.f32 %v4175_v1, %v834_v35 }
 0x167   : > { %v1170_v8 = vadd.f32 %v4387_v11, %v1057_v12  ;;  %v1288_v49 = vpop.f32.mrf.mxu0  ;;  %v4480_v12 = vpop.f32.mrf.mxu3 }
 0x169   : > { %1106 = vmatmul.f32.gmra.mxu2 %v4389_v41  ;;  %v1283_v21 = vadd.f32 %v1282_v60, %v1170_v8  ;;  %v837_v41 = vadd.f32 %v4196_v19, %v4212_v30  ;;  %v523_v60 = vld [vmem:[#allocation2 + $0xf9] sm:$0xff] }
 0x16a   : > { %1335 = vmatmul.f32.gmra.mxu0 %v522_v37  ;;  %1454 = vmatmul.f32.gmra.mxu1 %v4482_v58  ;;  %v765_v8 = vld [vmem:[%s6434_s1 + $0x320] sm:$0xff] }
 0x16b   : > { %v4475_v45 = vadd.f32 %v1395_v6, %v1283_v21  ;;  %v494_v6 = vld [vmem:[#allocation2 + $0x120] sm:$0xff]  ;;  %1502 = vmatpush.msra.mxu2 %v765_v8  ;;  %v950_v37 = vadd.f32 %v4184_v10, %v837_v41 }
 0x16c   : > { %v1059_v11 = vpop.f32.mrf.mxu2  ;;  %1234 = vmatmul.f32.gmra.mxu3 %v494_v6  ;;  %v781_v30 = vld [vmem:[%s6434_s1 + $0x3a0] sm:$0xff]  ;;  %v953_v6 = vadd.f32 %v4201_v52, %v840_v16 }
 0x16d   : > { %v1060_v48 = vadd.f32 %v1059_v11, %v947_v26  ;;  %1615 = vmatpush.msra.mxu3 %v781_v30  ;;  %v524_v11 = vld [vmem:[#allocation2 + $0x109] sm:$0xff]  ;;  %v2196_v41 = vld [vmem:[%s6436_s3 + $0x60] sm:$0xff] }
 0x16e   : > { %2335 = vmatpush.msra.mxu1 %v2196_v41 }
 0x16f   : > { %v1173_v1 = vadd.f32 %v4407_v47, %v1060_v48  ;;  %v1291_v21 = vpop.f32.mrf.mxu0  ;;  %v4498_v26 = vpop.f32.mrf.mxu3 }
 0x170   : > { %v1404_v48 = vpop.f32.mrf.mxu1  ;;  %2336 = vmatpush.msra.mxu1 %v2195_v0  ;;  %v852_v0 = vadd.f32 %v4196_v19, %v4278_v24  ;;  %v795_v24 = vld [vmem:[%s6434_s1 + $0x410] sm:$0xff] }
 0x171   : > { %1109 = vmatmul.f32.gmra.mxu2 %v4409_v14  ;;  %v1286_v35 = vadd.f32 %v1285_v40, %v1173_v1  ;;  %v4500_v14 = vld [vmem:[#allocation2 + $0x112] sm:$0xff]  ;;  %v495_v1 = vld [vmem:[#allocation2 + $0x128] sm:$0xff] }
 0x172   : > { %1338 = vmatmul.f32.gmra.mxu0 %v523_v60  ;;  %1457 = vmatmul.f32.gmra.mxu1 %v4500_v14 }
 0x173   : > { %v4493_v3 = vadd.f32 %v1398_v20, %v1286_v35 }
 0x174   : > { %v1062_v47 = vpop.f32.mrf.mxu2  ;;  %1237 = vmatmul.f32.gmra.mxu3 %v495_v1 }
 0x175   : > { %v1063_v40 = vadd.f32 %v1062_v47, %v950_v37  ;;  %v4518_v37 = vld [vmem:[#allocation2 + $0x122] sm:$0xff]  ;;  %v496_v47 = vld [vmem:[#allocation2 + $0x138] sm:$0xff] }
 0x177   : > { %v1176_v10 = vadd.f32 %v4427_v53, %v1063_v40  ;;  %v1294_v20 = vpop.f32.mrf.mxu0  ;;  %v4516_v8 = vpop.f32.mrf.mxu3 }
 0x178   : > { %v1407_v16 = vpop.f32.mrf.mxu1 }
 0x179   : > { %1112 = vmatmul.f32.gmra.mxu2 %v4429_v32  ;;  %v1289_v60 = vadd.f32 %v1288_v49, %v1176_v10  ;;  %v843_v32 = vadd.f32 %v4196_v19, %v4239_v5  ;;  %v525_v49 = vld [vmem:[#allocation2 + $0x111] sm:$0xff] }
 0x17a   : > { %1341 = vmatmul.f32.gmra.mxu0 %v524_v11  ;;  %1460 = vmatmul.f32.gmra.mxu1 %v4518_v37  ;;  %v764_v10 = vld [vmem:[%s6434_s1 + $0x318] sm:$0xff] }
 0x17b   : > { %v4511_v35 = vadd.f32 %v1401_v43, %v1289_v60  ;;  %1503 = vmatpush.msra.mxu2 %v764_v10  ;;  %v956_v11 = vadd.f32 %v4214_v31, %v843_v32  ;;  %v780_v5 = vld [vmem:[%s6434_s1 + $0x398] sm:$0xff]  ;;  %v846_v60 = vadd.f32 %v4196_v19, %v4251_v2 }
 0x17c   : > { %v1065_v53 = vpop.f32.mrf.mxu2  ;;  %1240 = vmatmul.f32.gmra.mxu3 %v496_v47 }
 0x17d   : > { %v1066_v30 = vadd.f32 %v1065_v53, %v953_v6  ;;  %1616 = vmatpush.msra.mxu3 %v780_v5  ;;  %v526_v6 = vld [vmem:[#allocation2 + $0x121] sm:$0xff]  ;;  %v959_v32 = vadd.f32 %v4229_v42, %v846_v60 }
 0x17e   : > { %v497_v53 = vld [vmem:[#allocation2 + $0x140] sm:$0xff] }
 0x17f   : > { %v1179_v52 = vadd.f32 %v4443_v22, %v1066_v30  ;;  %v1297_v43 = vpop.f32.mrf.mxu0 }
 0x180   : > { %v1410_v2 = vpop.f32.mrf.mxu1 }
 0x181   : > { %1115 = vmatmul.f32.gmra.mxu2 %v4445_v57  ;;  %v1292_v40 = vadd.f32 %v1291_v21, %v1179_v52  ;;  %v4534_v57 = vpop.f32.mrf.mxu3  ;;  %v4536_v21 = vld [vmem:[#allocation2 + $0x12a] sm:$0xff] }
 0x182   : > { %1344 = vmatmul.f32.gmra.mxu0 %v525_v49  ;;  %1463 = vmatmul.f32.gmra.mxu1 %v4536_v21 }
 0x183   : > { %v4529_v41 = vadd.f32 %v1404_v48, %v1292_v40  ;;  %v4554_v40 = vld [vmem:[#allocation2 + $0x13a] sm:$0xff] }
 0x184   : > { %v1068_v22 = vpop.f32.mrf.mxu2  ;;  %1243 = vmatmul.f32.gmra.mxu3 %v497_v53 }
 0x185   : > { %v1069_v1 = vadd.f32 %v1068_v22, %v956_v11  ;;  %v498_v11 = vld [vmem:[#allocation2 + $0x150] sm:$0xff] }
 0x186   : > { %v763_v22 = vld [vmem:[%s6434_s1 + $0x310] sm:$0xff] }
 0x187   : > { %v1182_v31 = vadd.f32 %v4462_v61, %v1069_v1  ;;  %v1300_v48 = vpop.f32.mrf.mxu0  ;;  %v796_v61 = vld [vmem:[%s6434_s1 + $0x418] sm:$0xff]  ;;  %1504 = vmatpush.msra.mxu2 %v763_v22  ;;  %v500_v22 = vld [vmem:[#allocation2 + $0x168] sm:$0xff] }
 0x188   : > { %1729 = vmatpush.msra.mxu0 %v796_v61 }
 0x189   : > { %1118 = vmatmul.f32.gmra.mxu2 %v4464_v9  ;;  %v1295_v30 = vadd.f32 %v1294_v20, %v1182_v31  ;;  %v4552_v47 = vpop.f32.mrf.mxu3  ;;  %v849_v9 = vadd.f32 %v4196_v19, %v4266_v17  ;;  %v779_v17 = vld [vmem:[%s6434_s1 + $0x390] sm:$0xff] }
 0x18a   : > { %1347 = vmatmul.f32.gmra.mxu0 %v526_v6  ;;  %1466 = vmatmul.f32.gmra.mxu1 %v4554_v40  ;;  %v1413_v6 = vpop.f32.mrf.mxu1 }
 0x18b   : > { %v4547_v52 = vadd.f32 %v1407_v16, %v1295_v30  ;;  %v527_v16 = vld [vmem:[#allocation2 + $0x129] sm:$0xff]  ;;  %v962_v1 = vadd.f32 %v4241_v51, %v849_v9  ;;  %1617 = vmatpush.msra.mxu3 %v779_v17  ;;  %v528_v30 = vld [vmem:[#allocation2 + $0x139] sm:$0xff]  ;;  %1730 = vmatpush.msra.mxu0 %v795_v24 }
 0x18c   : > { %v1071_v49 = vpop.f32.mrf.mxu2  ;;  %1246 = vmatmul.f32.gmra.mxu3 %v498_v11  ;;  %v529_v11 = vld [vmem:[#allocation2 + $0x141] sm:$0xff] }
 0x18d   : > { %v1072_v10 = vadd.f32 %v1071_v49, %v959_v32  ;;  %v2194_v32 = vld [vmem:[%s6436_s3 + $0x50] sm:$0xff]  ;;  %v965_v49 = vadd.f32 %v4256_v4, %v852_v0  ;;  %v762_v17 = vld [vmem:[%s6434_s1 + $0x308] sm:$0xff]  ;;  %v858_v0 = vadd.f32 %v4196_v19, %v4308_v44 }
 0x18e   : > { %2337 = vmatpush.msra.mxu1 %v2194_v32  ;;  %1505 = vmatpush.msra.mxu2 %v762_v17  ;;  %v2193_v32 = vld [vmem:[%s6436_s3 + $0x48] sm:$0xff] }
 0x18f   : > { %v1185_v42 = vadd.f32 %v4480_v12, %v1072_v10  ;;  %v1303_v20 = vpop.f32.mrf.mxu0  ;;  %v971_v44 = vadd.f32 %v4287_v54, %v858_v0  ;;  %v531_v54 = vld [vmem:[#allocation2 + $0x159] sm:$0xff] }
 0x190   : > { %2338 = vmatpush.msra.mxu1 %v2193_v32  ;;  %v2192_v0 = vld [vmem:[%s6436_s3 + $0x40] sm:$0xff] }
 0x191   : > { %1121 = vmatmul.f32.gmra.mxu2 %v4482_v58  ;;  %v1298_v5 = vadd.f32 %v1297_v43, %v1185_v42  ;;  %v4570_v31 = vpop.f32.mrf.mxu3  ;;  %v4572_v58 = vld [vmem:[#allocation2 + $0x142] sm:$0xff]  ;;  %v4590_v42 = vld [vmem:[#allocation2 + $0x152] sm:$0xff] }
 0x192   : > { %1350 = vmatmul.f32.gmra.mxu0 %v527_v16  ;;  %1469 = vmatmul.f32.gmra.mxu1 %v4572_v58 }
 0x193   : > { %v4565_v60 = vadd.f32 %v1410_v2, %v1298_v5  ;;  %v499_v2 = vld [vmem:[#allocation2 + $0x158] sm:$0xff]  ;;  %v1416_v5 = vpop.f32.mrf.mxu1  ;;  %2339 = vmatpush.msra.mxu1 %v2192_v0  ;;  %v603_v0 = vld [vmem:[#allocation2 + $0x49] sm:$0xff] }
 0x194   : > { %v1074_v12 = vpop.f32.mrf.mxu2  ;;  %1249 = vmatmul.f32.gmra.mxu3 %v499_v2  ;;  %v501_v2 = vld [vmem:[#allocation2 + $0x170] sm:$0xff] }
 0x195   : > { %v1075_v43 = vadd.f32 %v1074_v12, %v962_v1 }
 0x197   : > { %v1188_v51 = vadd.f32 %v4498_v26, %v1075_v43  ;;  %v1306_v53 = vpop.f32.mrf.mxu0 }
 0x199   : > { %1124 = vmatmul.f32.gmra.mxu2 %v4500_v14  ;;  %v1301_v61 = vadd.f32 %v1300_v48, %v1188_v51  ;;  %v4588_v9 = vpop.f32.mrf.mxu3  ;;  %v855_v14 = vadd.f32 %v4196_v19, %v4293_v39 }
 0x19a   : > { %1353 = vmatmul.f32.gmra.mxu0 %v528_v30  ;;  %1472 = vmatmul.f32.gmra.mxu1 %v4590_v42  ;;  %v530_v30 = vld [vmem:[#allocation2 + $0x151] sm:$0xff] }
 0x19b   : > { %v4583_v10 = vadd.f32 %v1413_v6, %v1301_v61  ;;  %v968_v12 = vadd.f32 %v4268_v18, %v855_v14  ;;  %v4618_v61 = vld [vmem:[%s3767_s17 + $0xf0] sm:$0xff] }
 0x19c   : > { %v1077_v26 = vpop.f32.mrf.mxu2  ;;  %1252 = vmatmul.f32.gmra.mxu3 %v500_v22  ;;  %374 = vst [vmem:[#allocation2 + $0x181] sm:$0xff] %v4618_v61 }
 0x19d   : > { %v1078_v16 = vadd.f32 %v1077_v26, %v965_v49 }
 0x19f   : > { %v1191_v4 = vadd.f32 %v4516_v8, %v1078_v16  ;;  %v1309_v48 = vpop.f32.mrf.mxu0  ;;  %v778_v8 = vld [vmem:[%s6434_s1 + $0x388] sm:$0xff] }
 0x1a0   : > { %1618 = vmatpush.msra.mxu3 %v778_v8  ;;  %v4630_v16 = vld [vmem:[#allocation2 + $0x16a] sm:$0xff]  ;;  %v864_v8 = vadd.f32 %v4196_v19, %v4342_v7  ;;  %v793_v7 = vld [vmem:[%s6434_s1 + $0x400] sm:$0xff] }
 0x1a1   : > { %1127 = vmatmul.f32.gmra.mxu2 %v4518_v37  ;;  %v1304_v1 = vadd.f32 %v1303_v20, %v1191_v4  ;;  %v4606_v37 = vpop.f32.mrf.mxu3  ;;  %v4608_v20 = vld [vmem:[#allocation2 + $0x15a] sm:$0xff] }
 0x1a2   : > { %1356 = vmatmul.f32.gmra.mxu0 %v529_v11  ;;  %1475 = vmatmul.f32.gmra.mxu1 %v4608_v20  ;;  %v977_v32 = vadd.f32 %v4328_v56, %v864_v8 }
 0x1a3   : > { %v4601_v39 = vadd.f32 %v1416_v5, %v1304_v1  ;;  %v502_v11 = vld [vmem:[#allocation2 + $0x180] sm:$0xff]  ;;  %v4637_v5 = vld [vmem:[%s3767_s17 + $0xf8] sm:$0xff] }
 0x1a4   : > { %v1080_v43 = vpop.f32.mrf.mxu2  ;;  %1255 = vmatmul.f32.gmra.mxu3 %v501_v2  ;;  %v761_v1 = vld [vmem:[%s6434_s1 + $0x300] sm:$0xff]  ;;  %375 = vst [vmem:[#allocation2 + $0x189] sm:$0xff] %v4637_v5 }
 0x1a5   : > { %v1081_v6 = vadd.f32 %v1080_v43, %v968_v12  ;;  %1506 = vmatpush.msra.mxu2 %v761_v1 }
 0x1a7   : > { %v1194_v18 = vadd.f32 %v4534_v57, %v1081_v6  ;;  %v1312_v51 = vpop.f32.mrf.mxu0  ;;  %v794_v57 = vld [vmem:[%s6434_s1 + $0x408] sm:$0xff] }
 0x1a8   : > { %1731 = vmatpush.msra.mxu0 %v794_v57 }
 0x1a9   : > { %1130 = vmatmul.f32.gmra.mxu2 %v4536_v21  ;;  %v4621_v49 = vadd.f32 %v1306_v53, %v1194_v18  ;;  %v4628_v26 = vpop.f32.mrf.mxu3  ;;  %v861_v53 = vadd.f32 %v4196_v19, %v4326_v62 }
 0x1aa   : > { %1359 = vmatmul.f32.gmra.mxu0 %v530_v30  ;;  %1478 = vmatmul.f32.gmra.mxu1 %v4630_v16 }
 0x1ab   : > { %v974_v62 = vadd.f32 %v4302_v36, %v861_v53  ;;  %v532_v36 = vld [vmem:[#allocation2 + $0x169] sm:$0xff]  ;;  %1732 = vmatpush.msra.mxu0 %v793_v7  ;;  %v601_v53 = vld [vmem:[#allocation2 + $0x31] sm:$0xff] }
 0x1ac   : > { %v1083_v24 = vpop.f32.mrf.mxu2  ;;  %1258 = vmatmul.f32.gmra.mxu3 %v502_v11  ;;  %v503_v18 = vld [vmem:[#allocation2 + $0x188] sm:$0xff]  ;;  %v633_v7 = vld [vmem:[#allocation2 + $0x32] sm:$0xff] }
 0x1ad   : > { %v1084_v21 = vadd.f32 %v1083_v24, %v971_v44  ;;  %v566_v44 = vld [vmem:[#allocation2 + $0x182] sm:$0xff]  ;;  %v867_v24 = vadd.f32 %v4196_v19, %v4361_v59  ;;  %v567_v1 = vld [vmem:[#allocation2 + $0x18a] sm:$0xff]  ;;  %v870_v59 = vadd.f32 %v4196_v19, %v4377_v34 }
 0x1af   : > { %v1197_v14 = vadd.f32 %v4552_v47, %v1084_v21  ;;  %v1315_v4 = vpop.f32.mrf.mxu0  ;;  %v777_v47 = vld [vmem:[%s6434_s1 + $0x380] sm:$0xff]  ;;  %v533_v21 = vld [vmem:[#allocation2 + $0x171] sm:$0xff] }
 0x1b0   : > { %1619 = vmatpush.msra.mxu3 %v777_v47 }
 0x1b1   : > { %1133 = vmatmul.f32.gmra.mxu2 %v4554_v40  ;;  %v4640_v22 = vadd.f32 %v1309_v48, %v1197_v14  ;;  %v4650_v40 = vpop.f32.mrf.mxu3  ;;  %v4652_v48 = vld [vmem:[#allocation2 + $0x172] sm:$0xff]  ;;  %v980_v14 = vadd.f32 %v4344_v28, %v867_v24 }
 0x1b2   : > { %1362 = vmatmul.f32.gmra.mxu0 %v531_v54  ;;  %1481 = vmatmul.f32.gmra.mxu1 %v4652_v48 }
 0x1b4   : > { %v1086_v17 = vpop.f32.mrf.mxu2  ;;  %1261 = vmatmul.f32.gmra.mxu3 %v503_v18 }
 0x1b5   : > { %v1087_v12 = vadd.f32 %v1086_v17, %v974_v62  ;;  %v983_v17 = vadd.f32 %v4367_v27, %v870_v59 }
 0x1b7   : > { %v1200_v43 = vadd.f32 %v4570_v31, %v1087_v12  ;;  %v1318_v6 = vpop.f32.mrf.mxu0 }
 0x1b9   : > { %1136 = vmatmul.f32.gmra.mxu2 %v4572_v58  ;;  %v4662_v30 = vadd.f32 %v1312_v51, %v1200_v43  ;;  %v1214_v2 = vpop.f32.mrf.mxu3 }
 0x1ba   : > { %1365 = vmatmul.f32.gmra.mxu0 %v532_v36  ;;  %1484 = vmatmul.f32.gmra.mxu1 %v566_v44 }
 0x1bc   : > { %v1089_v31 = vpop.f32.mrf.mxu2  ;;  %1620 = vmatmul.f32.vlgmr.msra.gmra.mxu3 %v601_v53  ;;  %v605_v53 = vld [vmem:[#allocation2 + $0x61] sm:$0xff] }
 0x1bd   : > { %v1090_v57 = vadd.f32 %v1089_v31, %v977_v32  ;;  %v2190_v31 = vld [vmem:[%s6436_s3 + $0x30] sm:$0xff] }
 0x1bf   : > { %v1203_v58 = vadd.f32 %v4588_v9, %v1090_v57  ;;  %v1321_v51 = vpop.f32.mrf.mxu0 }
 0x1c1   : > { %1139 = vmatmul.f32.gmra.mxu2 %v4590_v42  ;;  %v4672_v56 = vadd.f32 %v1315_v4, %v1203_v58  ;;  %v1217_v11 = vpop.f32.mrf.mxu3  ;;  %v2191_v42 = vld [vmem:[%s6436_s3 + $0x38] sm:$0xff] }
 0x1c2   : > { %1368 = vmatmul.f32.gmra.mxu0 %v533_v21  ;;  %1487 = vmatmul.f32.gmra.mxu1 %v567_v1  ;;  %v602_v4 = vld [vmem:[#allocation2 + $0x39] sm:$0xff] }
 0x1c3   : > { %2340 = vmatpush.msra.mxu1 %v2191_v42  ;;  %v634_v21 = vld [vmem:[#allocation2 + $0x3a] sm:$0xff] }
 0x1c4   : > { %v1092_v54 = vpop.f32.mrf.mxu2  ;;  %1623 = vmatmul.f32.gmra.mxu3 %v602_v4 }
 0x1c5   : > { %v1093_v62 = vadd.f32 %v1092_v54, %v980_v14  ;;  %2341 = vmatpush.msra.mxu1 %v2190_v31 }
 0x1c7   : > { %v1206_v9 = vadd.f32 %v4606_v37, %v1093_v62  ;;  %v1324_v47 = vpop.f32.mrf.mxu0  ;;  %v873_v37 = vadd.f32 %v4196_v19, %v4398_v25  ;;  %v3556_v19 = vld [vmem:[%s6435_s2] ss:$0 sm:$0xff]  ;;  %v570_v62 = vld [vmem:[#allocation2 + $0x38] sm:$0xff] }
 0x1c8   : > { %v876_v25 = vadd.f32 %v3556_v19, %v4416_v55  ;;  %v572_v19 = vld [vmem:[#allocation2 + $0x50] sm:$0xff] }
 0x1c9   : > { %1142 = vmatmul.f32.gmra.mxu2 %v4608_v20  ;;  %v4682_v28 = vadd.f32 %v1318_v6, %v1206_v9  ;;  %v1220_v34 = vpop.f32.mrf.mxu3  ;;  %v635_v9 = vld [vmem:[#allocation2 + $0x4a] sm:$0xff] }
 0x1ca   : > { %1371 = vmatmul.f32.gmra.mxu0 %v4618_v61  ;;  %v986_v61 = vadd.f32 %v4392_v13, %v873_v37  ;;  %v989_v44 = vadd.f32 %v4418_v46, %v876_v25 }
 0x1cc   : > { %v1095_v12 = vpop.f32.mrf.mxu2  ;;  %1626 = vmatmul.f32.gmra.mxu3 %v603_v0 }
 0x1cd   : > { %v1096_v8 = vadd.f32 %v1095_v12, %v983_v17 }
 0x1cf   : > { %v1209_v43 = vadd.f32 %v4628_v26, %v1096_v8  ;;  %v1327_v36 = vpop.f32.mrf.mxu0  ;;  %v4715_v8 = vpop.f32.mrf.mxu1 }
 0x1d1   : > { %1145 = vmatmul.f32.gmra.mxu2 %v4630_v16  ;;  %v4690_v20 = vadd.f32 %v1321_v51, %v1209_v43  ;;  %v1223_v6 = vpop.f32.mrf.mxu3  ;;  %v636_v43 = vld [vmem:[#allocation2 + $0x52] sm:$0xff] }
 0x1d2   : > { %1374 = vmatmul.f32.gmra.mxu0 %v4637_v5  ;;  %v604_v5 = vld [vmem:[#allocation2 + $0x51] sm:$0xff] }
 0x1d4   : > { %v1098_v27 = vpop.f32.mrf.mxu2  ;;  %1629 = vmatmul.f32.gmra.mxu3 %v604_v5 }
 0x1d5   : > { %v1099_v18 = vadd.f32 %v1098_v27, %v986_v61 }
 0x1d7   : > { %v1212_v26 = vadd.f32 %v4650_v40, %v1099_v18  ;;  %v1330_v32 = vpop.f32.mrf.mxu0  ;;  %v569_v40 = vld [vmem:[#allocation2 + $0x30] sm:$0xff] }
 0x1d9   : > { %1148 = vmatmul.f32.gmra.mxu2 %v4652_v48  ;;  %v4703_v13 = vadd.f32 %v1324_v47, %v1212_v26  ;;  %v1226_v55 = vpop.f32.mrf.mxu3  ;;  %v606_v47 = vld [vmem:[#allocation2 + $0x69] sm:$0xff] }
 0x1da   : > { %1733 = vmatmul.f32.vlgmr.msra.gmra.mxu0 %v633_v7  ;;  %v4723_v7 = vpop.f32.mrf.mxu1 }
 0x1dc   : > { %v1101_v57 = vpop.f32.mrf.mxu2  ;;  %1632 = vmatmul.f32.gmra.mxu3 %v605_v53 }
 0x1dd   : > { %v1102_v24 = vadd.f32 %v1101_v57, %v989_v44 }
 0x1df   : > { %v1215_v58 = vadd.f32 %v1214_v2, %v1102_v24  ;;  %v1333_v51 = vpop.f32.mrf.mxu0  ;;  %v2189_v2 = vld [vmem:[%s6436_s3 + $0x28] sm:$0xff] }
 0x1e0   : > { %2342 = vmatpush.msra.mxu1 %v2189_v2 }
 0x1e1   : > { %1507 = vmatmul.f32.vlgmr.msra.gmra.mxu2 %v569_v40  ;;  %v4706_v14 = vadd.f32 %v1327_v36, %v1215_v58  ;;  %v1229_v54 = vpop.f32.mrf.mxu3  ;;  %v607_v36 = vld [vmem:[#allocation2 + $0x79] sm:$0xff]  ;;  %v638_v40 = vld [vmem:[#allocation2 + $0x6a] sm:$0xff] }
 0x1e2   : > { %1736 = vmatmul.f32.gmra.mxu0 %v634_v21  ;;  %v609_v58 = vld [vmem:[#allocation2 + $0x91] sm:$0xff]  ;;  %v4730_v21 = vpop.f32.mrf.mxu1 }
 0x1e4   : > { %v1104_v48 = vpop.f32.mrf.mxu2  ;;  %1635 = vmatmul.f32.gmra.mxu3 %v606_v47 }
 0x1e5   : > { %v1105_v1 = vadd.f32 %v1104_v48, %v4210_v29  ;;  %v571_v29 = vld [vmem:[#allocation2 + $0x48] sm:$0xff] }
 0x1e7   : > { %v1218_v59 = vadd.f32 %v1217_v11, %v1105_v1  ;;  %v1336_v46 = vpop.f32.mrf.mxu0 }
 0x1e9   : > { %1510 = vmatmul.f32.gmra.mxu2 %v570_v62  ;;  %v4712_v42 = vadd.f32 %v1330_v32, %v1218_v59  ;;  %v1232_v17 = vpop.f32.mrf.mxu3  ;;  %v608_v32 = vld [vmem:[#allocation2 + $0x81] sm:$0xff] }
 0x1ea   : > { %1739 = vmatmul.f32.gmra.mxu0 %v635_v9  ;;  %v574_v62 = vld [vmem:[#allocation2 + $0x68] sm:$0xff]  ;;  %v610_v9 = vld [vmem:[#allocation2 + $0x99] sm:$0xff] }
 0x1ec   : > { %v1107_v4 = vpop.f32.mrf.mxu2  ;;  %1638 = vmatmul.f32.gmra.mxu3 %v607_v36 }
 0x1ed   : > { %v1108_v12 = vadd.f32 %v1107_v4, %v4222_v38  ;;  %v637_v38 = vld [vmem:[#allocation2 + $0x62] sm:$0xff] }
 0x1ef   : > { %v1221_v11 = vadd.f32 %v1220_v34, %v1108_v12  ;;  %v1339_v37 = vpop.f32.mrf.mxu0  ;;  %v2188_v34 = vld [vmem:[%s6436_s3 + $0x20] sm:$0xff]  ;;  %v4738_v12 = vpop.f32.mrf.mxu1 }
 0x1f0   : > { %2343 = vmatpush.msra.mxu1 %v2188_v34 }
 0x1f1   : > { %1513 = vmatmul.f32.gmra.mxu2 %v571_v29  ;;  %v4717_v0 = vadd.f32 %v1333_v51, %v1221_v11  ;;  %v1235_v27 = vpop.f32.mrf.mxu3 }
 0x1f2   : > { %1742 = vmatmul.f32.gmra.mxu0 %v636_v43  ;;  %v611_v43 = vld [vmem:[#allocation2 + $0xa9] sm:$0xff] }
 0x1f4   : > { %v1110_v61 = vpop.f32.mrf.mxu2  ;;  %1641 = vmatmul.f32.gmra.mxu3 %v608_v32  ;;  %v612_v32 = vld [vmem:[#allocation2 + $0xb1] sm:$0xff] }
 0x1f5   : > { %v1111_v18 = vadd.f32 %v1110_v61, %v4237_v50 }
 0x1f7   : > { %v1224_v25 = vadd.f32 %v1223_v6, %v1111_v18  ;;  %v1342_v26 = vpop.f32.mrf.mxu0  ;;  %v573_v6 = vld [vmem:[#allocation2 + $0x60] sm:$0xff] }
 0x1f9   : > { %1516 = vmatmul.f32.gmra.mxu2 %v572_v19  ;;  %v4725_v31 = vadd.f32 %v1336_v46, %v1224_v25  ;;  %v1238_v44 = vpop.f32.mrf.mxu3  ;;  %v576_v25 = vld [vmem:[#allocation2 + $0x80] sm:$0xff] }
 0x1fa   : > { %1745 = vmatmul.f32.gmra.mxu0 %v637_v38 }
 0x1fc   : > { %v1113_v5 = vpop.f32.mrf.mxu2  ;;  %1644 = vmatmul.f32.gmra.mxu3 %v609_v58  ;;  %v642_v58 = vld [vmem:[#allocation2 + $0x9a] sm:$0xff] }
 0x1fd   : > { %v1114_v50 = vadd.f32 %v1113_v5, %v4249_v63  ;;  %v639_v63 = vld [vmem:[#allocation2 + $0x7a] sm:$0xff] }
 0x1ff   : > { %v1227_v57 = vadd.f32 %v1226_v55, %v1114_v50  ;;  %v1345_v24 = vpop.f32.mrf.mxu0  ;;  %v2187_v55 = vld [vmem:[%s6436_s3 + $0x18] sm:$0xff] }
 0x200   : > { %2344 = vmatpush.msra.mxu1 %v2187_v55 }
 0x201   : > { %1519 = vmatmul.f32.gmra.mxu2 %v573_v6  ;;  %v4728_v51 = vadd.f32 %v1339_v37, %v1227_v57  ;;  %v1241_v48 = vpop.f32.mrf.mxu3  ;;  %v640_v37 = vld [vmem:[#allocation2 + $0x82] sm:$0xff] }
 0x202   : > { %1748 = vmatmul.f32.gmra.mxu0 %v638_v40 }
 0x204   : > { %v1116_v53 = vpop.f32.mrf.mxu2  ;;  %1647 = vmatmul.f32.gmra.mxu3 %v610_v9  ;;  %v578_v9 = vld [vmem:[#allocation2 + $0x98] sm:$0xff] }
 0x205   : > { %v1117_v1 = vadd.f32 %v1116_v53, %v4264_v15  ;;  %v613_v53 = vld [vmem:[#allocation2 + $0xc1] sm:$0xff] }
 0x207   : > { %v1230_v59 = vadd.f32 %v1229_v54, %v1117_v1  ;;  %v1348_v46 = vpop.f32.mrf.mxu0  ;;  %v575_v54 = vld [vmem:[#allocation2 + $0x78] sm:$0xff] }
 0x209   : > { %1522 = vmatmul.f32.gmra.mxu2 %v574_v62  ;;  %v4736_v2 = vadd.f32 %v1342_v26, %v1230_v59  ;;  %v1244_v4 = vpop.f32.mrf.mxu3  ;;  %v4744_v26 = vpop.f32.mrf.mxu1 }
 0x20a   : > { %1751 = vmatmul.f32.gmra.mxu0 %v639_v63  ;;  %v6482_v63 = vld [vmem:[#allocation5_spill] sm:$0xff] }
 0x20c   : > { %v1119_v47 = vpop.f32.mrf.mxu2  ;;  %1650 = vmatmul.f32.gmra.mxu3 %v611_v43 }
 0x20d   : > { %v1120_v15 = vadd.f32 %v1119_v47, %v4276_v23  ;;  %v641_v23 = vld [vmem:[#allocation2 + $0x92] sm:$0xff] }
 0x20f   : > { %v1233_v29 = vadd.f32 %v1232_v17, %v1120_v15  ;;  %v1351_v11 = vpop.f32.mrf.mxu0  ;;  %v2186_v17 = vld [vmem:[%s6436_s3 + $0x10] sm:$0xff] }
 0x210   : > { %2345 = vmatpush.msra.mxu1 %v2186_v17  ;;  %v644_v17 = vld [vmem:[#allocation2 + $0xb2] sm:$0xff] }
 0x211   : > { %1525 = vmatmul.f32.gmra.mxu2 %v575_v54  ;;  %v4741_v36 = vadd.f32 %v1345_v24, %v1233_v29  ;;  %v1247_v18 = vpop.f32.mrf.mxu3  ;;  %v577_v24 = vld [vmem:[#allocation2 + $0x90] sm:$0xff]  ;;  %v4754_v1 = vpop.f32.mrf.mxu1 }
 0x212   : > { %1754 = vmatmul.f32.gmra.mxu0 %v640_v37  ;;  %v643_v54 = vld [vmem:[#allocation2 + $0xaa] sm:$0xff] }
 0x213   : > { %v614_v29 = vld [vmem:[#allocation2 + $0xc9] sm:$0xff] }
 0x214   : > { %v1122_v61 = vpop.f32.mrf.mxu2  ;;  %1653 = vmatmul.f32.gmra.mxu3 %v612_v32  ;;  %v615_v32 = vld [vmem:[#allocation2 + $0xd9] sm:$0xff] }
 0x215   : > { %v1123_v19 = vadd.f32 %v1122_v61, %v4291_v33  ;;  %v6480_v33 = vld [vmem:[#allocation4_spill] sm:$0xff] }
 0x217   : > { %v1236_v38 = vadd.f32 %v1235_v27, %v1123_v19  ;;  %v1354_v34 = vpop.f32.mrf.mxu0  ;;  %v6484_v19 = vld [vmem:[#allocation6_spill] sm:$0xff] }
 0x219   : > { %1528 = vmatmul.f32.gmra.mxu2 %v576_v25  ;;  %v4749_v5 = vadd.f32 %v1348_v46, %v1236_v38  ;;  %v4751_v6 = vpop.f32.mrf.mxu3  ;;  %v4766_v37 = vpop.f32.mrf.mxu1  ;;  %v579_v25 = vld [vmem:[#allocation2 + $0xa8] sm:$0xff] }
 0x21a   : > { %1757 = vmatmul.f32.gmra.mxu0 %v641_v23 }
 0x21c   : > { %v1125_v50 = vpop.f32.mrf.mxu2  ;;  %1656 = vmatmul.f32.gmra.mxu3 %v613_v53 }
 0x21d   : > { %v1126_v57 = vadd.f32 %v1125_v50, %v6480_v33 }
 0x21f   : > { %v1239_v27 = vadd.f32 %v1238_v44, %v1126_v57  ;;  %v1357_v40 = vpop.f32.mrf.mxu0  ;;  %v2185_v44 = vld [vmem:[%s6436_s3 + $0x8] sm:$0xff] }
 0x220   : > { %2346 = vmatpush.msra.mxu1 %v2185_v44  ;;  %v6488_v44 = vld [vmem:[#allocation8_spill] sm:$0xff] }
 0x221   : > { %1531 = vmatmul.f32.gmra.mxu2 %v577_v24  ;;  %v4756_v62 = vadd.f32 %v1351_v11, %v1239_v27  ;;  %v4758_v46 = vpop.f32.mrf.mxu3  ;;  %v4775_v57 = vpop.f32.mrf.mxu1  ;;  %v6486_v24 = vld [vmem:[#allocation7_spill] sm:$0xff] }
 0x222   : > { %1760 = vmatmul.f32.gmra.mxu0 %v642_v58  ;;  %v580_v58 = vld [vmem:[#allocation2 + $0xb0] sm:$0xff] }
 0x223   : > { %6481 = vst [vmem:[#allocation4_spill] sm:$0xff] %v4756_v62 }
 0x224   : > { %v1128_v59 = vpop.f32.mrf.mxu2  ;;  %1659 = vmatmul.f32.gmra.mxu3 %v614_v29 }
 0x225   : > { %v1129_v55 = vadd.f32 %v1128_v59, %v6482_v63  ;;  %v616_v63 = vld [vmem:[#allocation2 + $0xe1] sm:$0xff] }
 0x227   : > { %v1242_v47 = vadd.f32 %v1241_v48, %v1129_v55  ;;  %v1360_v15 = vpop.f32.mrf.mxu0  ;;  %v2215_v55 = vld [vmem:[%s6436_s3 + $0xf8] sm:$0xff] }
 0x228   : > { %2445 = vmatpush.msrb.mxu2 %v2215_v55 }
 0x229   : > { %1534 = vmatmul.f32.gmra.mxu2 %v578_v9  ;;  %v4764_v11 = vadd.f32 %v1354_v34, %v1242_v47  ;;  %v4768_v61 = vpop.f32.mrf.mxu3  ;;  %v3557_v9 = vld [vmem:[#allocation2 + $0xc2] sm:$0xff] }
 0x22a   : > { %1763 = vmatmul.f32.gmra.mxu0 %v643_v54 }
 0x22b   : > { %6483 = vst [vmem:[#allocation5_spill] sm:$0xff] %v4764_v11 }
 0x22c   : > { %v1131_v43 = vpop.f32.mrf.mxu2  ;;  %1662 = vmatmul.f32.gmra.mxu3 %v615_v32  ;;  %v2247_v32 = vld [vmem:[%s6436_s3 + $0x1f8] sm:$0xff] }
 0x22d   : > { %v1132_v48 = vadd.f32 %v1131_v43, %v6484_v19  ;;  %v4792_v43 = vpop.f32.mrf.mxu1  ;;  %2671 = vmatpush.msrb.mxu0 %v2247_v32 }
 0x22f   : > { %v1245_v38 = vadd.f32 %v1244_v4, %v1132_v48  ;;  %v1363_v23 = vpop.f32.mrf.mxu0  ;;  %v2184_v4 = vld [vmem:[%s6436_s3] sm:$0xff] }
 0x230   : > { %2347 = vmatpush.msra.mxu1 %v2184_v4 }
 0x231   : > { %1537 = vmatmul.f32.gmra.mxu2 %v579_v25  ;;  %v4771_v50 = vadd.f32 %v1357_v40, %v1245_v38  ;;  %v4773_v33 = vpop.f32.mrf.mxu3  ;;  %v617_v25 = vld [vmem:[#allocation2 + $0xf1] sm:$0xff] }
 0x232   : > { %1766 = vmatmul.f32.gmra.mxu0 %v644_v17  ;;  %v3558_v17 = vld [vmem:[#allocation2 + $0xca] sm:$0xff] }
 0x233   : > { %6485 = vst [vmem:[#allocation6_spill] sm:$0xff] %v4771_v50 }
 0x234   : > { %v1134_v34 = vpop.f32.mrf.mxu2  ;;  %1665 = vmatmul.f32.gmra.mxu3 %v616_v63  ;;  %v618_v63 = vld [vmem:[#allocation2 + $0xf9] sm:$0xff] }
 0x235   : > { %v1135_v27 = vadd.f32 %v1134_v34, %v6486_v24  ;;  %v4804_v55 = vpop.f32.mrf.mxu1 }
 0x237   : > { %v1248_v53 = vadd.f32 %v1247_v18, %v1135_v27  ;;  %v1366_v59 = vpop.f32.mrf.mxu0  ;;  %v2231_v18 = vld [vmem:[%s6436_s3 + $0x178] sm:$0xff]  ;;  %v1895_v27 = vld [vmem:[#allocation3] sm:$0xff] }
 0x238   : > { %2558 = vmatpush.msrb.mxu3 %v2231_v18  ;;  %2348 = vmatmul.f32.vlgmr.msra.gmra.mxu1 %v1895_v27  ;;  %v3559_v18 = vld [vmem:[#allocation2 + $0xda] sm:$0xff]  ;;  %v619_v27 = vld [vmem:[#allocation2 + $0x109] sm:$0xff] }
 0x239   : > { %1540 = vmatmul.f32.gmra.mxu2 %v580_v58  ;;  %v4781_v40 = vadd.f32 %v1360_v15, %v1248_v53  ;;  %v4789_v54 = vpop.f32.mrf.mxu3  ;;  %v581_v15 = vld [vmem:[#allocation2 + $0xc0] sm:$0xff]  ;;  %v6490_v58 = vld [vmem:[#allocation9_spill] sm:$0xff] }
 0x23a   : > { %1769 = vmatmul.f32.gmra.mxu0 %v3557_v9 }
 0x23b   : > { %6487 = vst [vmem:[#allocation7_spill] sm:$0xff] %v4781_v40 }
 0x23c   : > { %v1137_v47 = vpop.f32.mrf.mxu2  ;;  %1668 = vmatmul.f32.gmra.mxu3 %v617_v25  ;;  %v4820_v25 = vld [vmem:[#allocation2 + $0x8] sm:$0xff] }
 0x23d   : > { %v1138_v29 = vadd.f32 %v1137_v47, %v6488_v44 }
 0x23f   : > { %v1251_v19 = vadd.f32 %v4751_v6, %v1138_v29  ;;  %v1369_v48 = vpop.f32.mrf.mxu0  ;;  %v582_v6 = vld [vmem:[#allocation2 + $0xc8] sm:$0xff]  ;;  %v6492_v29 = vld [vmem:[#allocation10_spill] sm:$0xff] }
 0x240   : > { %2351 = vmatmul.f32.gmra.mxu1 %v4820_v25 }
 0x241   : > { %1543 = vmatmul.f32.gmra.mxu2 %v581_v15  ;;  %v4795_v38 = vadd.f32 %v1363_v23, %v1251_v19  ;;  %v4800_v24 = vpop.f32.mrf.mxu3  ;;  %v2263_v19 = vld [vmem:[%s6436_s3 + $0x278] sm:$0xff] }
 0x242   : > { %1772 = vmatmul.f32.gmra.mxu0 %v3558_v17  ;;  %v583_v17 = vld [vmem:[#allocation2 + $0xd8] sm:$0xff]  ;;  %2784 = vmatpush.msrb.mxu1 %v2263_v19 }
 0x243   : > { %6489 = vst [vmem:[#allocation8_spill] sm:$0xff] %v4795_v38  ;;  %v620_v19 = vld [vmem:[#allocation2 + $0x111] sm:$0xff] }
 0x244   : > { %v1140_v34 = vpop.f32.mrf.mxu2  ;;  %1671 = vmatmul.f32.gmra.mxu3 %v618_v63 }
 0x245   : > { %v1141_v53 = vadd.f32 %v1140_v34, %v6490_v58 }
 0x247   : > { %v1254_v4 = vadd.f32 %v4758_v46, %v1141_v53  ;;  %v1372_v23 = vpop.f32.mrf.mxu0  ;;  %v2214_v46 = vld [vmem:[%s6436_s3 + $0xf0] sm:$0xff]  ;;  %v3561_v53 = vld [vmem:[#allocation2 + $0xe2] sm:$0xff] }
 0x248   : > { %2446 = vmatpush.msrb.mxu2 %v2214_v46 }
 0x249   : > { %1546 = vmatmul.f32.gmra.mxu2 %v582_v6  ;;  %v4806_v9 = vadd.f32 %v1366_v59, %v1254_v4  ;;  %v4808_v44 = vpop.f32.mrf.mxu3  ;;  %v2230_v59 = vld [vmem:[%s6436_s3 + $0x170] sm:$0xff]  ;;  %v4826_v6 = vpop.f32.mrf.mxu1 }
 0x24a   : > { %1775 = vmatmul.f32.gmra.mxu0 %v3559_v18  ;;  %2559 = vmatpush.msrb.mxu3 %v2230_v59  ;;  %v6494_v18 = vld [vmem:[#allocation11_spill] sm:$0xff] }
 0x24b   : > { %6491 = vst [vmem:[#allocation9_spill] sm:$0xff] %v4806_v9  ;;  %v3562_v59 = vld [vmem:[#allocation2 + $0xf2] sm:$0xff] }
 0x24c   : > { %v1143_v47 = vpop.f32.mrf.mxu2  ;;  %1674 = vmatmul.f32.gmra.mxu3 %v619_v27 }
 0x24d   : > { %v1144_v15 = vadd.f32 %v1143_v47, %v6492_v29  ;;  %v584_v29 = vld [vmem:[#allocation2 + $0xe0] sm:$0xff] }
 0x24f   : > { %v1257_v32 = vadd.f32 %v4768_v61, %v1144_v15  ;;  %v1375_v34 = vpop.f32.mrf.mxu0  ;;  %v2246_v61 = vld [vmem:[%s6436_s3 + $0x1f0] sm:$0xff] }
 0x250   : > { %2672 = vmatpush.msrb.mxu0 %v2246_v61 }
 0x251   : > { %1549 = vmatmul.f32.gmra.mxu2 %v583_v17  ;;  %v4824_v58 = vadd.f32 %v1369_v48, %v1257_v32  ;;  %v4828_v63 = vpop.f32.mrf.mxu3  ;;  %v4839_v27 = vpop.f32.mrf.mxu1 }
 0x252   : > { %1778 = vmatmul.f32.gmra.mxu0 %v3561_v53  ;;  %v6496_v53 = vld [vmem:[#allocation12_spill] sm:$0xff] }
 0x253   : > { %6493 = vst [vmem:[#allocation10_spill] sm:$0xff] %v4824_v58 }
 0x254   : > { %v1146_v4 = vpop.f32.mrf.mxu2  ;;  %1677 = vmatmul.f32.gmra.mxu3 %v620_v19 }
 0x255   : > { %v1147_v47 = vadd.f32 %v1146_v4, %v6494_v18  ;;  %v2262_v18 = vld [vmem:[%s6436_s3 + $0x270] sm:$0xff] }
 0x256   : > { %2785 = vmatpush.msrb.mxu1 %v2262_v18  ;;  %v2245_v18 = vld [vmem:[%s6436_s3 + $0x1e8] sm:$0xff] }
 0x257   : > { %v1260_v15 = vadd.f32 %v4773_v33, %v1147_v47  ;;  %v1734_v48 = vpop.f32.mrf.mxu0  ;;  %v2213_v33 = vld [vmem:[%s6436_s3 + $0xe8] sm:$0xff]  ;;  %v585_v47 = vld [vmem:[#allocation2 + $0xf0] sm:$0xff]  ;;  %2673 = vmatpush.msrb.mxu0 %v2245_v18 }
 0x258   : > { %2447 = vmatpush.msrb.mxu2 %v2213_v33  ;;  %v586_v33 = vld [vmem:[#allocation2 + $0xf8] sm:$0xff]  ;;  %v587_v18 = vld [vmem:[#allocation2 + $0x108] sm:$0xff] }
 0x259   : > { %1552 = vmatmul.f32.gmra.mxu2 %v584_v29  ;;  %v4835_v46 = vadd.f32 %v1372_v23, %v1260_v15  ;;  %v4837_v32 = vpop.f32.mrf.mxu3  ;;  %v2229_v23 = vld [vmem:[%s6436_s3 + $0x168] sm:$0xff] }
 0x25a   : > { %1781 = vmatmul.f32.gmra.mxu0 %v3562_v59  ;;  %2560 = vmatpush.msrb.mxu3 %v2229_v23  ;;  %v621_v15 = vld [vmem:[#allocation2 + $0x121] sm:$0xff]  ;;  %v622_v23 = vld [vmem:[#allocation2 + $0x129] sm:$0xff] }
 0x25b   : > { %6495 = vst [vmem:[#allocation11_spill] sm:$0xff] %v4835_v46  ;;  %v3563_v59 = vld [vmem:[#allocation2 + $0xfa] sm:$0xff] }
 0x25c   : > { %v1149_v17 = vpop.f32.mrf.mxu2  ;;  %1680 = vmatmul.f32.gmra.mxu3 %v621_v15 }
 0x25d   : > { %v1150_v4 = vadd.f32 %v1149_v17, %v6496_v53 }
 0x25f   : > { %v1263_v61 = vadd.f32 %v4789_v54, %v1150_v4  ;;  %v1737_v29 = vpop.f32.mrf.mxu0  ;;  %v4860_v54 = vpop.f32.mrf.mxu1 }
 0x261   : > { %1555 = vmatmul.f32.gmra.mxu2 %v585_v47  ;;  %v4852_v19 = vadd.f32 %v1375_v34, %v1263_v61  ;;  %v4854_v53 = vpop.f32.mrf.mxu3  ;;  %v3564_v61 = vld [vmem:[#allocation2 + $0x10a] sm:$0xff] }
 0x262   : > { %1784 = vmatmul.f32.gmra.mxu0 %v3563_v59 }
 0x263   : > { %6497 = vst [vmem:[#allocation12_spill] sm:$0xff] %v4852_v19 }
 0x264   : > { %v1508_v17 = vpop.f32.mrf.mxu2  ;;  %1683 = vmatmul.f32.gmra.mxu3 %v622_v23 }
 0x265   : > { %v1509_v46 = vadd.f32 %v1508_v17, %v4475_v45 }
 0x267   : > { %v1622_v4 = vadd.f32 %v4800_v24, %v1509_v46  ;;  %v1740_v34 = vpop.f32.mrf.mxu0  ;;  %v2261_v24 = vld [vmem:[%s6436_s3 + $0x268] sm:$0xff]  ;;  %v2228_v46 = vld [vmem:[%s6436_s3 + $0x160] sm:$0xff]  ;;  %v4881_v23 = vpop.f32.mrf.mxu1 }
 0x268   : > { %2786 = vmatpush.msrb.mxu1 %v2261_v24  ;;  %2561 = vmatpush.msrb.mxu3 %v2228_v46 }
 0x269   : > { %v4863_v47 = vadd.f32 %v1734_v48, %v1622_v4  ;;  %1558 = vmatmul.f32.gmra.mxu2 %v586_v33  ;;  %v4866_v59 = vpop.f32.mrf.mxu3  ;;  %v2212_v48 = vld [vmem:[%s6436_s3 + $0xe0] sm:$0xff] }
 0x26a   : > { %1787 = vmatmul.f32.gmra.mxu0 %v3564_v61  ;;  %2448 = vmatpush.msrb.mxu2 %v2212_v48 }
 0x26b   : > { %v6439_v45 = vmax.f32 %v4863_v47, 0.0 }
 0x26c   : > { %v1511_v15 = vpop.f32.mrf.mxu2 }
 0x26d   : > { %1863 = vst [vmem:[#allocation3 + $0x19] sm:$0xff] %v6439_v45  ;;  %v1512_v17 = vadd.f32 %v1511_v15, %v4493_v3  ;;  %v623_v3 = vld [vmem:[#allocation2 + $0x139] sm:$0xff] }
 0x26e   : > { %1686 = vmatmul.f32.gmra.mxu3 %v623_v3  ;;  %v3565_v15 = vld [vmem:[#allocation2 + $0x112] sm:$0xff]  ;;  %v3566_v3 = vld [vmem:[#allocation2 + $0x122] sm:$0xff] }
 0x26f   : > { %v1625_v33 = vadd.f32 %v4808_v44, %v1512_v17  ;;  %v1743_v4 = vpop.f32.mrf.mxu0  ;;  %v588_v17 = vld [vmem:[#allocation2 + $0x110] sm:$0xff] }
 0x271   : > { %v4883_v61 = vadd.f32 %v1737_v29, %v1625_v33  ;;  %1561 = vmatmul.f32.gmra.mxu2 %v587_v18  ;;  %v4888_v24 = vpop.f32.mrf.mxu3  ;;  %v2244_v29 = vld [vmem:[%s6436_s3 + $0x1e0] sm:$0xff] }
 0x272   : > { %1790 = vmatmul.f32.gmra.mxu0 %v3565_v15  ;;  %v624_v18 = vld [vmem:[#allocation2 + $0x141] sm:$0xff]  ;;  %v4900_v15 = vpop.f32.mrf.mxu1 }
 0x273   : > { %v6440_v45 = vmax.f32 %v4883_v61, 0.0  ;;  %2674 = vmatpush.msrb.mxu0 %v2244_v29  ;;  %v2227_v29 = vld [vmem:[%s6436_s3 + $0x158] sm:$0xff] }
 0x274   : > { %v1514_v19 = vpop.f32.mrf.mxu2  ;;  %v4886_v58 = vld [vmem:[#allocation3 + $0x18] sm:$0xff]  ;;  %2562 = vmatpush.msrb.mxu3 %v2227_v29 }
 0x275   : > { %1864 = vst [vmem:[#allocation3 + $0x21] sm:$0xff] %v6440_v45  ;;  %v1515_v44 = vadd.f32 %v1514_v19, %v4511_v35  ;;  %2354 = vmatmul.f32.gmra.mxu1 %v4886_v58 }
 0x276   : > { %1689 = vmatmul.f32.gmra.mxu3 %v624_v18  ;;  %v625_v18 = vld [vmem:[#allocation2 + $0x151] sm:$0xff] }
 0x277   : > { %v1628_v48 = vadd.f32 %v4828_v63, %v1515_v44  ;;  %v1746_v46 = vpop.f32.mrf.mxu0  ;;  %v2211_v44 = vld [vmem:[%s6436_s3 + $0xd8] sm:$0xff] }
 0x278   : > { %2449 = vmatpush.msrb.mxu2 %v2211_v44 }
 0x279   : > { %v4898_v33 = vadd.f32 %v1740_v34, %v1628_v48  ;;  %1564 = vmatmul.f32.gmra.mxu2 %v588_v17  ;;  %v4905_v9 = vpop.f32.mrf.mxu3  ;;  %v2260_v34 = vld [vmem:[%s6436_s3 + $0x260] sm:$0xff] }
 0x27a   : > { %1793 = vmatmul.f32.gmra.mxu0 %v3566_v3  ;;  %v589_v17 = vld [vmem:[#allocation2 + $0x120] sm:$0xff]  ;;  %2787 = vmatpush.msrb.mxu1 %v2260_v34  ;;  %v4928_v34 = vpop.f32.mrf.mxu1 }
 0x27b   : > { %v6441_v35 = vmax.f32 %v4898_v33, 0.0  ;;  %6498 = vst [vmem:[#allocation13_spill] sm:$0xff] %v4928_v34 }
 0x27c   : > { %v1517_v19 = vpop.f32.mrf.mxu2  ;;  %v4903_v45 = vld [vmem:[#allocation3 + $0x20] sm:$0xff] }
 0x27d   : > { %1865 = vst [vmem:[#allocation3 + $0x31] sm:$0xff] %v6441_v35  ;;  %v1518_v63 = vadd.f32 %v1517_v19, %v4529_v41  ;;  %2357 = vmatmul.f32.gmra.mxu1 %v4903_v45  ;;  %v3567_v19 = vld [vmem:[#allocation2 + $0x12a] sm:$0xff] }
 0x27e   : > { %1692 = vmatmul.f32.gmra.mxu3 %v625_v18  ;;  %v3568_v18 = vld [vmem:[#allocation2 + $0x13a] sm:$0xff] }
 0x27f   : > { %v1631_v48 = vadd.f32 %v4837_v32, %v1518_v63  ;;  %v1749_v41 = vpop.f32.mrf.mxu0  ;;  %v590_v63 = vld [vmem:[#allocation2 + $0x128] sm:$0xff] }
 0x281   : > { %v4921_v3 = vadd.f32 %v1743_v4, %v1631_v48  ;;  %1567 = vmatmul.f32.gmra.mxu2 %v589_v17  ;;  %v4926_v50 = vpop.f32.mrf.mxu3  ;;  %v2243_v4 = vld [vmem:[%s6436_s3 + $0x1d8] sm:$0xff] }
 0x282   : > { %1796 = vmatmul.f32.gmra.mxu0 %v3567_v19  ;;  %v626_v17 = vld [vmem:[#allocation2 + $0x159] sm:$0xff] }
 0x283   : > { %v6442_v35 = vmax.f32 %v4921_v3, 0.0  ;;  %2675 = vmatpush.msrb.mxu0 %v2243_v4  ;;  %v2226_v4 = vld [vmem:[%s6436_s3 + $0x150] sm:$0xff] }
 0x284   : > { %v1520_v38 = vpop.f32.mrf.mxu2  ;;  %v4924_v40 = vld [vmem:[#allocation3 + $0x30] sm:$0xff]  ;;  %2563 = vmatpush.msrb.mxu3 %v2226_v4  ;;  %v628_v4 = vld [vmem:[#allocation2 + $0x171] sm:$0xff] }
 0x285   : > { %1866 = vst [vmem:[#allocation3 + $0x39] sm:$0xff] %v6442_v35  ;;  %v1521_v32 = vadd.f32 %v1520_v38, %v4547_v52  ;;  %2360 = vmatmul.f32.gmra.mxu1 %v4924_v40 }
 0x286   : > { %1695 = vmatmul.f32.gmra.mxu3 %v626_v17 }
 0x287   : > { %v1634_v44 = vadd.f32 %v4854_v53, %v1521_v32  ;;  %v1752_v29 = vpop.f32.mrf.mxu0  ;;  %v2210_v32 = vld [vmem:[%s6436_s3 + $0xd0] sm:$0xff] }
 0x288   : > { %2450 = vmatpush.msrb.mxu2 %v2210_v32 }
 0x289   : > { %v4938_v48 = vadd.f32 %v1746_v46, %v1634_v44  ;;  %1570 = vmatmul.f32.gmra.mxu2 %v590_v63  ;;  %v4943_v35 = vpop.f32.mrf.mxu3  ;;  %v2259_v46 = vld [vmem:[%s6436_s3 + $0x258] sm:$0xff]  ;;  %v4958_v44 = vpop.f32.mrf.mxu1 }
 0x28a   : > { %1799 = vmatmul.f32.gmra.mxu0 %v3568_v18  ;;  %v591_v63 = vld [vmem:[#allocation2 + $0x138] sm:$0xff]  ;;  %2788 = vmatpush.msrb.mxu1 %v2259_v46  ;;  %6499 = vst [vmem:[#allocation14_spill] sm:$0xff] %v4958_v44  ;;  %v627_v18 = vld [vmem:[#allocation2 + $0x169] sm:$0xff] }
 0x28b   : > { %v6443_v52 = vmax.f32 %v4938_v48, 0.0 }
 0x28c   : > { %v1523_v38 = vpop.f32.mrf.mxu2  ;;  %v4941_v19 = vld [vmem:[#allocation3 + $0x38] sm:$0xff] }
 0x28d   : > { %1867 = vst [vmem:[#allocation3 + $0x49] sm:$0xff] %v6443_v52  ;;  %v1524_v53 = vadd.f32 %v1523_v38, %v4565_v60  ;;  %2363 = vmatmul.f32.gmra.mxu1 %v4941_v19  ;;  %v3569_v52 = vld [vmem:[#allocation2 + $0x142] sm:$0xff] }
 0x28e   : > { %1698 = vmatmul.f32.gmra.mxu3 %v627_v18  ;;  %v3570_v18 = vld [vmem:[#allocation2 + $0x152] sm:$0xff] }
 0x28f   : > { %v1637_v60 = vadd.f32 %v4866_v59, %v1524_v53  ;;  %v1755_v17 = vpop.f32.mrf.mxu0  ;;  %v592_v53 = vld [vmem:[#allocation2 + $0x140] sm:$0xff] }
 0x291   : > { %v4961_v38 = vadd.f32 %v1749_v41, %v1637_v60  ;;  %1573 = vmatmul.f32.gmra.mxu2 %v591_v63  ;;  %v4966_v46 = vpop.f32.mrf.mxu3  ;;  %v2242_v41 = vld [vmem:[%s6436_s3 + $0x1d0] sm:$0xff]  ;;  %v4976_v63 = vpop.f32.mrf.mxu1 }
 0x292   : > { %1802 = vmatmul.f32.gmra.mxu0 %v3569_v52  ;;  %6500 = vst [vmem:[#allocation15_spill] sm:$0xff] %v4976_v63 }
 0x293   : > { %v6444_v11 = vmax.f32 %v4961_v38, 0.0  ;;  %2676 = vmatpush.msrb.mxu0 %v2242_v41  ;;  %v2225_v41 = vld [vmem:[%s6436_s3 + $0x148] sm:$0xff] }
 0x294   : > { %v1526_v34 = vpop.f32.mrf.mxu2  ;;  %v4964_v62 = vld [vmem:[#allocation3 + $0x48] sm:$0xff]  ;;  %2564 = vmatpush.msrb.mxu3 %v2225_v41 }
 0x295   : > { %1868 = vst [vmem:[#allocation3 + $0x51] sm:$0xff] %v6444_v11  ;;  %v1527_v59 = vadd.f32 %v1526_v34, %v4583_v10  ;;  %2366 = vmatmul.f32.gmra.mxu1 %v4964_v62 }
 0x296   : > { %1701 = vmatmul.f32.gmra.mxu3 %v628_v4  ;;  %v629_v4 = vld [vmem:[#allocation2 + $0x181] sm:$0xff] }
 0x297   : > { %v1640_v52 = vadd.f32 %v4888_v24, %v1527_v59  ;;  %v1758_v32 = vpop.f32.mrf.mxu0  ;;  %v2209_v59 = vld [vmem:[%s6436_s3 + $0xc8] sm:$0xff] }
 0x298   : > { %2451 = vmatpush.msrb.mxu2 %v2209_v59 }
 0x299   : > { %v4978_v60 = vadd.f32 %v1752_v29, %v1640_v52  ;;  %1576 = vmatmul.f32.gmra.mxu2 %v592_v53  ;;  %v4983_v44 = vpop.f32.mrf.mxu3  ;;  %v2258_v29 = vld [vmem:[%s6436_s3 + $0x250] sm:$0xff]  ;;  %v5003_v63 = vpop.f32.mrf.mxu1 }
 0x29a   : > { %1805 = vmatmul.f32.gmra.mxu0 %v3570_v18  ;;  %v593_v53 = vld [vmem:[#allocation2 + $0x150] sm:$0xff]  ;;  %2789 = vmatpush.msrb.mxu1 %v2258_v29 }
 0x29b   : > { %6501 = vst [vmem:[#allocation16_spill] sm:$0xff] %v4978_v60  ;;  %v6445_v10 = vmax.f32 %v4978_v60, 0.0 }
 0x29c   : > { %v1529_v34 = vpop.f32.mrf.mxu2  ;;  %v4981_v11 = vld [vmem:[#allocation3 + $0x50] sm:$0xff] }
 0x29d   : > { %1869 = vst [vmem:[#allocation3 + $0x61] sm:$0xff] %v6445_v10  ;;  %v1530_v24 = vadd.f32 %v1529_v34, %v4601_v39  ;;  %2369 = vmatmul.f32.gmra.mxu1 %v4981_v11  ;;  %v3571_v34 = vld [vmem:[#allocation2 + $0x15a] sm:$0xff]  ;;  %v1420_v10 = vadd.f32 %v4715_v8, %v4621_v49 }
 0x29e   : > { %1704 = vmatmul.f32.gmra.mxu3 %v629_v4  ;;  %v594_v49 = vld [vmem:[#allocation2 + $0x158] sm:$0xff] }
 0x29f   : > { %v1643_v52 = vadd.f32 %v4905_v9, %v1530_v24  ;;  %v1761_v39 = vpop.f32.mrf.mxu0  ;;  %v2241_v24 = vld [vmem:[%s6436_s3 + $0x1c8] sm:$0xff] }
 0x2a0   : > { %2677 = vmatpush.msrb.mxu0 %v2241_v24 }
 0x2a1   : > { %v4999_v18 = vadd.f32 %v1755_v17, %v1643_v52  ;;  %1579 = vmatmul.f32.gmra.mxu2 %v593_v53  ;;  %v5008_v9 = vpop.f32.mrf.mxu3  ;;  %v630_v53 = vld [vmem:[#allocation2 + $0x189] sm:$0xff] }
 0x2a2   : > { %1808 = vmatmul.f32.gmra.mxu0 %v3571_v34 }
 0x2a3   : > { %v6449_v60 = vmax.f32 %v4999_v18, 0.0 }
 0x2a4   : > { %v1532_v29 = vpop.f32.mrf.mxu2  ;;  %v5006_v59 = vld [vmem:[#allocation3 + $0x60] sm:$0xff] }
 0x2a5   : > { %1870 = vst [vmem:[#allocation3 + $0x69] sm:$0xff] %v6449_v60  ;;  %v1533_v17 = vadd.f32 %v1532_v29, %v1420_v10  ;;  %2372 = vmatmul.f32.gmra.mxu1 %v5006_v59  ;;  %v1423_v10 = vadd.f32 %v4723_v7, %v4640_v22  ;;  %v2208_v22 = vld [vmem:[%s6436_s3 + $0xc0] sm:$0xff] }
 0x2a6   : > { %1707 = vmatmul.f32.gmra.mxu3 %v630_v53  ;;  %v2224_v7 = vld [vmem:[%s6436_s3 + $0x140] sm:$0xff]  ;;  %2452 = vmatpush.msrb.mxu2 %v2208_v22  ;;  %v3572_v22 = vld [vmem:[#allocation2 + $0x172] sm:$0xff] }
 0x2a7   : > { %v1646_v8 = vadd.f32 %v4926_v50, %v1533_v17  ;;  %v5017_v41 = vpop.f32.mrf.mxu0  ;;  %v5029_v50 = vpop.f32.mrf.mxu1  ;;  %v595_v17 = vld [vmem:[#allocation2 + $0x168] sm:$0xff]  ;;  %2565 = vmatpush.msrb.mxu3 %v2224_v7  ;;  %v2240_v53 = vld [vmem:[%s6436_s3 + $0x1c0] sm:$0xff] }
 0x2a8   : > { %2678 = vmatpush.msrb.mxu0 %v2240_v53  ;;  %v2238_v53 = vld [vmem:[%s6436_s3 + $0x1b0] sm:$0xff] }
 0x2a9   : > { %v5019_v52 = vadd.f32 %v1758_v32, %v1646_v8  ;;  %1582 = vmatmul.f32.gmra.mxu2 %v594_v49  ;;  %v5027_v24 = vpop.f32.mrf.mxu3 }
 0x2aa   : > { %1811 = vmatmul.f32.gmra.mxu0 %v4630_v16  ;;  %v2257_v16 = vld [vmem:[%s6436_s3 + $0x248] sm:$0xff] }
 0x2ab   : > { %v6448_v4 = vmax.f32 %v5019_v52, 0.0  ;;  %2790 = vmatpush.msrb.mxu1 %v2257_v16  ;;  %v2207_v16 = vld [vmem:[%s6436_s3 + $0xb8] sm:$0xff] }
 0x2ac   : > { %v1535_v34 = vpop.f32.mrf.mxu2  ;;  %v5025_v29 = vld [vmem:[#allocation3 + $0x68] sm:$0xff]  ;;  %2453 = vmatpush.msrb.mxu2 %v2207_v16 }
 0x2ad   : > { %1871 = vst [vmem:[#allocation3 + $0x79] sm:$0xff] %v6448_v4  ;;  %v1536_v32 = vadd.f32 %v1535_v34, %v1423_v10  ;;  %2375 = vmatmul.f32.gmra.mxu1 %v5025_v29  ;;  %v631_v10 = vld [vmem:[#allocation2 + $0x199] sm:$0xff] }
 0x2ae   : > { %1710 = vmatmul.f32.gmra.mxu3 %v631_v10  ;;  %v2220_v4 = vld [vmem:[%s6436_s3 + $0x120] sm:$0xff] }
 0x2af   : > { %v1649_v49 = vadd.f32 %v4943_v35, %v1536_v32  ;;  %v5044_v8 = vpop.f32.mrf.mxu0  ;;  %v2223_v35 = vld [vmem:[%s6436_s3 + $0x138] sm:$0xff] }
 0x2b0   : > { %v2239_v32 = vld [vmem:[%s6436_s3 + $0x1b8] sm:$0xff]  ;;  %2566 = vmatpush.msrb.mxu3 %v2223_v35  ;;  %v2205_v35 = vld [vmem:[%s6436_s3 + $0xa8] sm:$0xff] }
 0x2b1   : > { %v5049_v34 = vadd.f32 %v1761_v39, %v1649_v49  ;;  %1585 = vmatmul.f32.gmra.mxu2 %v595_v17  ;;  %v1426_v39 = vadd.f32 %v4730_v21, %v4662_v30  ;;  %2679 = vmatpush.msrb.mxu0 %v2239_v32  ;;  %v2206_v17 = vld [vmem:[%s6436_s3 + $0xb0] sm:$0xff]  ;;  %v5074_v30 = vpop.f32.mrf.mxu3  ;;  %v2221_v32 = vld [vmem:[%s6436_s3 + $0x128] sm:$0xff] }
 0x2b2   : > { %1814 = vmatmul.f32.gmra.mxu0 %v3572_v22  ;;  %v2222_v49 = vld [vmem:[%s6436_s3 + $0x130] sm:$0xff]  ;;  %2454 = vmatpush.msrb.mxu2 %v2206_v17  ;;  %v2237_v22 = vld [vmem:[%s6436_s3 + $0x1a8] sm:$0xff] }
 0x2b3   : > { %v6447_v7 = vmax.f32 %v5049_v34, 0.0  ;;  %2567 = vmatpush.msrb.mxu3 %v2222_v49  ;;  %v596_v17 = vld [vmem:[#allocation2 + $0x170] sm:$0xff]  ;;  %2680 = vmatpush.msrb.mxu0 %v2238_v53  ;;  %v2236_v53 = vld [vmem:[%s6436_s3 + $0x1a0] sm:$0xff] }
 0x2b4   : > { %v1538_v10 = vpop.f32.mrf.mxu2  ;;  %v5072_v16 = vld [vmem:[#allocation3 + $0x78] sm:$0xff]  ;;  %2455 = vmatpush.msrb.mxu2 %v2205_v35 }
 0x2b5   : > { %1872 = vst [vmem:[#allocation3 + $0x81] sm:$0xff] %v6447_v7  ;;  %v1539_v21 = vadd.f32 %v1538_v10, %v1426_v39  ;;  %2378 = vmatmul.f32.gmra.mxu1 %v5072_v16  ;;  %v5088_v7 = vpop.f32.mrf.mxu1  ;;  %2568 = vmatpush.msrb.mxu3 %v2221_v32  ;;  %v2204_v10 = vld [vmem:[%s6436_s3 + $0xa0] sm:$0xff]  ;;  %v2219_v32 = vld [vmem:[%s6436_s3 + $0x118] sm:$0xff] }
 0x2b6   : > { %6502 = vst [vmem:[#allocation17_spill] sm:$0xff] %v5088_v7  ;;  %2681 = vmatpush.msrb.mxu0 %v2237_v22  ;;  %2456 = vmatpush.msrb.mxu2 %v2204_v10  ;;  %v632_v35 = vld [vmem:[#allocation2 + $0x1a1] sm:$0xff]  ;;  %v2235_v10 = vld [vmem:[%s6436_s3 + $0x198] sm:$0xff] }
 0x2b7   : > { %v1652_v39 = vadd.f32 %v4966_v46, %v1539_v21  ;;  %v5091_v49 = vpop.f32.mrf.mxu0  ;;  %2569 = vmatpush.msrb.mxu3 %v2220_v4  ;;  %v2203_v21 = vld [vmem:[%s6436_s3 + $0x98] sm:$0xff]  ;;  %v3573_v22 = vld [vmem:[#allocation2 + $0x182] sm:$0xff] }
 0x2b8   : > { %1713 = vmatmul.f32.gmra.mxu3 %v632_v35  ;;  %2682 = vmatpush.msrb.mxu0 %v2236_v53  ;;  %v2256_v53 = vld [vmem:[%s6436_s3 + $0x240] sm:$0xff]  ;;  %v2217_v7 = vld [vmem:[%s6436_s3 + $0x108] sm:$0xff] }
 0x2b9   : > { %v5103_v46 = vadd.f32 %v5017_v41, %v1652_v39  ;;  %1588 = vmatmul.f32.gmra.mxu2 %v596_v17  ;;  %v1429_v41 = vadd.f32 %v4738_v12, %v4672_v56  ;;  %v2202_v17 = vld [vmem:[%s6436_s3 + $0x90] sm:$0xff]  ;;  %2570 = vmatpush.msrb.mxu3 %v2219_v32  ;;  %v5122_v35 = vpop.f32.mrf.mxu3  ;;  %v597_v32 = vld [vmem:[#allocation2 + $0x180] sm:$0xff] }
 0x2ba   : > { %1817 = vmatmul.f32.gmra.mxu0 %v3573_v22  ;;  %2457 = vmatpush.msrb.mxu2 %v2203_v21  ;;  %v2218_v22 = vld [vmem:[%s6436_s3 + $0x110] sm:$0xff]  ;;  %v2201_v21 = vld [vmem:[%s6436_s3 + $0x88] sm:$0xff] }
 0x2bb   : > { %6503 = vst [vmem:[#allocation18_spill] sm:$0xff] %v5103_v46  ;;  %v6450_v4 = vmax.f32 %v5103_v46, 0.0  ;;  %v2234_v56 = vld [vmem:[%s6436_s3 + $0x190] sm:$0xff]  ;;  %2683 = vmatpush.msrb.mxu0 %v2235_v10  ;;  %2791 = vmatpush.msrb.mxu1 %v2256_v53  ;;  %v2200_v10 = vld [vmem:[%s6436_s3 + $0x80] sm:$0xff] }
 0x2bc   : > { %v1541_v39 = vpop.f32.mrf.mxu2  ;;  %v5120_v60 = vld [vmem:[#allocation3 + $0x80] sm:$0xff]  ;;  %2458 = vmatpush.msrb.mxu2 %v2202_v17  ;;  %2571 = vmatpush.msrb.mxu3 %v2218_v22  ;;  %v2216_v17 = vld [vmem:[%s6436_s3 + $0x100] sm:$0xff] }
 0x2bd   : > { %1873 = vst [vmem:[#allocation3 + $0x91] sm:$0xff] %v6450_v4  ;;  %v1542_v12 = vadd.f32 %v1541_v39, %v1429_v41  ;;  %2381 = vmatmul.f32.gmra.mxu1 %v5120_v60  ;;  %2684 = vmatpush.msrb.mxu0 %v2234_v56  ;;  %v2233_v4 = vld [vmem:[%s6436_s3 + $0x188] sm:$0xff]  ;;  %v5152_v53 = vpop.f32.mrf.mxu1  ;;  %v1959_v22 = vld [vmem:[#allocation3 + $0x2] sm:$0xff] }
 0x2be   : > { %2459 = vmatpush.msrb.mxu2 %v2201_v21  ;;  %6504 = vst [vmem:[#allocation19_spill] sm:$0xff] %v5152_v53  ;;  %2572 = vmatpush.msrb.mxu3 %v2217_v7  ;;  %v3574_v56 = vld [vmem:[#allocation2 + $0x18a] sm:$0xff]  ;;  %v1432_v21 = vadd.f32 %v4744_v26, %v4682_v28 }
 0x2bf   : > { %v1655_v41 = vadd.f32 %v4983_v44, %v1542_v12  ;;  %v1773_v39 = vpop.f32.mrf.mxu0  ;;  %v2232_v12 = vld [vmem:[%s6436_s3 + $0x180] sm:$0xff]  ;;  %2685 = vmatpush.msrb.mxu0 %v2233_v4 }
 0x2c0   : > { %2460 = vmatpush.msrb.mxu2 %v2200_v10  ;;  %2573 = vmatpush.msrb.mxu3 %v2216_v17  ;;  %v663_v10 = vld [vmem:[#allocation2 + $0x19a] sm:$0xff] }
 0x2c1   : > { %v5155_v44 = vadd.f32 %v5044_v8, %v1655_v41  ;;  %1591 = vmatmul.f32.gmra.mxu2 %v597_v32  ;;  %2574 = vmatmul.f32.vlgmr.msrb.gmra.mxu3 %v1959_v22  ;;  %v5165_v7 = vpop.f32.mrf.mxu3  ;;  %v598_v41 = vld [vmem:[#allocation2 + $0x188] sm:$0xff]  ;;  %v1960_v17 = vld [vmem:[#allocation3 + $0xa] sm:$0xff]  ;;  %v1435_v22 = vadd.f32 %v4754_v1, %v4690_v20 }
 0x2c2   : > { %1820 = vmatmul.f32.gmra.mxu0 %v3574_v56  ;;  %v2255_v20 = vld [vmem:[%s6436_s3 + $0x238] sm:$0xff] }
 0x2c3   : > { %v6453_v46 = vmax.f32 %v5155_v44, 0.0  ;;  %2686 = vmatpush.msrb.mxu0 %v2232_v12  ;;  %v599_v1 = vld [vmem:[#allocation2 + $0x198] sm:$0xff]  ;;  %2792 = vmatpush.msrb.mxu1 %v2255_v20  ;;  %v1441_v20 = vadd.f32 %v4775_v57, %v4706_v14 }
 0x2c4   : > { %v1544_v53 = vpop.f32.mrf.mxu2  ;;  %v5163_v8 = vld [vmem:[#allocation3 + $0x90] sm:$0xff]  ;;  %v1927_v14 = vld [vmem:[#allocation3 + $0x1] sm:$0xff] }
 0x2c5   : > { %1874 = vst [vmem:[#allocation3 + $0x99] sm:$0xff] %v6453_v46  ;;  %v1545_v32 = vadd.f32 %v1544_v53, %v1432_v21  ;;  %2384 = vmatmul.f32.gmra.mxu1 %v5163_v8  ;;  %v5176_v56 = vpop.f32.mrf.mxu1 }
 0x2c6   : > { %6505 = vst [vmem:[#allocation20_spill] sm:$0xff] %v5176_v56 }
 0x2c7   : > { %v1658_v28 = vadd.f32 %v5008_v9, %v1545_v32  ;;  %v1776_v26 = vpop.f32.mrf.mxu0 }
 0x2c9   : > { %v5172_v4 = vadd.f32 %v5091_v49, %v1658_v28  ;;  %1594 = vmatmul.f32.gmra.mxu2 %v598_v41  ;;  %2577 = vmatmul.f32.gmra.mxu3 %v1960_v17  ;;  %v5181_v9 = vpop.f32.mrf.mxu3  ;;  %v664_v28 = vld [vmem:[#allocation2 + $0x1a2] sm:$0xff]  ;;  %v1438_v17 = vadd.f32 %v4766_v37, %v4703_v13 }
 0x2ca   : > { %1823 = vmatmul.f32.gmra.mxu0 %v663_v10 }
 0x2cb   : > { %v6452_v53 = vmax.f32 %v5172_v4, 0.0 }
 0x2cc   : > { %v1547_v21 = vpop.f32.mrf.mxu2  ;;  %v5179_v12 = vld [vmem:[#allocation3 + $0x98] sm:$0xff] }
 0x2cd   : > { %1875 = vst [vmem:[#allocation3 + $0xa9] sm:$0xff] %v6452_v53  ;;  %v1548_v49 = vadd.f32 %v1547_v21, %v1435_v22  ;;  %2387 = vmatmul.f32.gmra.mxu1 %v5179_v12  ;;  %v1961_v21 = vld [vmem:[#allocation3 + $0x1a] sm:$0xff] }
 0x2cf   : > { %v1661_v32 = vadd.f32 %v5027_v24, %v1548_v49  ;;  %v1779_v41 = vpop.f32.mrf.mxu0 }
 0x2d1   : > { %v5190_v10 = vadd.f32 %v1773_v39, %v1661_v32  ;;  %1597 = vmatmul.f32.gmra.mxu2 %v599_v1  ;;  %2580 = vmatmul.f32.gmra.mxu3 %v1961_v21  ;;  %v5197_v56 = vpop.f32.mrf.mxu3  ;;  %v5202_v39 = vpop.f32.mrf.mxu1  ;;  %v1962_v32 = vld [vmem:[#allocation3 + $0x22] sm:$0xff] }
 0x2d2   : > { %1826 = vmatmul.f32.gmra.mxu0 %v664_v28 }
 0x2d3   : > { %v6467_v22 = vmax.f32 %v5190_v10, 0.0 }
 0x2d4   : > { %v1550_v53 = vpop.f32.mrf.mxu2  ;;  %v5195_v46 = vld [vmem:[#allocation3 + $0xa8] sm:$0xff] }
 0x2d5   : > { %1876 = vst [vmem:[#allocation3 + $0xb1] sm:$0xff] %v6467_v22  ;;  %v1551_v24 = vadd.f32 %v1550_v53, %v1438_v17  ;;  %2390 = vmatmul.f32.gmra.mxu1 %v5195_v46 }
 0x2d7   : > { %v1664_v49 = vadd.f32 %v5074_v30, %v1551_v24  ;;  %v1782_v13 = vpop.f32.mrf.mxu0  ;;  %v1444_v24 = vadd.f32 %v4792_v43, %v4712_v42 }
 0x2d9   : > { %v5205_v37 = vadd.f32 %v1776_v26, %v1664_v49  ;;  %1600 = vmatmul.f32.gmra.mxu2 %v4820_v25  ;;  %2583 = vmatmul.f32.gmra.mxu3 %v1962_v32  ;;  %v5214_v17 = vpop.f32.mrf.mxu3  ;;  %v2254_v25 = vld [vmem:[%s6436_s3 + $0x230] sm:$0xff]  ;;  %v5222_v57 = vpop.f32.mrf.mxu1 }
 0x2da   : > { %2687 = vmatmul.f32.vlgmr.msrb.gmra.mxu0 %v4886_v58  ;;  %2793 = vmatpush.msrb.mxu1 %v2254_v25  ;;  %v1447_v25 = vadd.f32 %v4804_v55, %v4717_v0 }
 0x2db   : > { %v6454_v1 = vmax.f32 %v5205_v37, 0.0 }
 0x2dc   : > { %v1553_v53 = vpop.f32.mrf.mxu2  ;;  %v5212_v28 = vld [vmem:[#allocation3 + $0xb0] sm:$0xff] }
 0x2dd   : > { %1877 = vst [vmem:[#allocation3 + $0xc1] sm:$0xff] %v6454_v1  ;;  %v1554_v30 = vadd.f32 %v1553_v53, %v1441_v20  ;;  %2393 = vmatmul.f32.gmra.mxu1 %v5212_v28  ;;  %v1963_v20 = vld [vmem:[#allocation3 + $0x32] sm:$0xff] }
 0x2df   : > { %v1667_v58 = vadd.f32 %v5122_v35, %v1554_v30  ;;  %v1785_v26 = vpop.f32.mrf.mxu0 }
 0x2e1   : > { %v5225_v21 = vadd.f32 %v1779_v41, %v1667_v58  ;;  %2461 = vmatmul.f32.vlgmr.msrb.gmra.mxu2 %v1927_v14  ;;  %2586 = vmatmul.f32.gmra.mxu3 %v1963_v20  ;;  %v5233_v1 = vpop.f32.mrf.mxu3  ;;  %v1928_v41 = vld [vmem:[#allocation3 + $0x9] sm:$0xff]  ;;  %v5239_v42 = vpop.f32.mrf.mxu1  ;;  %v1964_v58 = vld [vmem:[#allocation3 + $0x3a] sm:$0xff] }
 0x2e2   : > { %2690 = vmatmul.f32.gmra.mxu0 %v4903_v45 }
 0x2e3   : > { %v6466_v49 = vmax.f32 %v5225_v21, 0.0 }
 0x2e4   : > { %v1556_v32 = vpop.f32.mrf.mxu2  ;;  %v5231_v53 = vld [vmem:[#allocation3 + $0xc0] sm:$0xff] }
 0x2e5   : > { %1878 = vst [vmem:[#allocation3 + $0xc9] sm:$0xff] %v6466_v49  ;;  %v1557_v35 = vadd.f32 %v1556_v32, %v1444_v24  ;;  %2396 = vmatmul.f32.gmra.mxu1 %v5231_v53 }
 0x2e7   : > { %v1670_v45 = vadd.f32 %v5165_v7, %v1557_v35  ;;  %v1788_v30 = vpop.f32.mrf.mxu0  ;;  %v6506_v35 = vmax.f32 %v4863_v47, 0.0 }
 0x2e9   : > { %v5241_v43 = vadd.f32 %v1782_v13, %v1670_v45  ;;  %2464 = vmatmul.f32.gmra.mxu2 %v1928_v41  ;;  %2589 = vmatmul.f32.gmra.mxu3 %v1964_v58  ;;  %v5249_v32 = vpop.f32.mrf.mxu3  ;;  %v1450_v45 = vadd.f32 %v4826_v6, %v4725_v31  ;;  %v1965_v58 = vld [vmem:[#allocation3 + $0x4a] sm:$0xff]  ;;  %v6507_v31 = vmax.f32 %v4883_v61, 0.0 }
 0x2ea   : > { %2693 = vmatmul.f32.gmra.mxu0 %v4924_v40  ;;  %v2253_v40 = vld [vmem:[%s6436_s3 + $0x228] sm:$0xff] }
 0x2eb   : > { %v6465_v14 = vmax.f32 %v5241_v43, 0.0  ;;  %2794 = vmatpush.msrb.mxu1 %v2253_v40 }
 0x2ec   : > { %v1559_v24 = vpop.f32.mrf.mxu2  ;;  %v5247_v20 = vld [vmem:[#allocation3 + $0xc8] sm:$0xff] }
 0x2ed   : > { %1879 = vst [vmem:[#allocation3 + $0xd9] sm:$0xff] %v6465_v14  ;;  %v1560_v7 = vadd.f32 %v1559_v24, %v1447_v25  ;;  %2399 = vmatmul.f32.gmra.mxu1 %v5247_v20 }
 0x2ef   : > { %v1673_v0 = vadd.f32 %v5181_v9, %v1560_v7  ;;  %v1791_v55 = vpop.f32.mrf.mxu0 }
 0x2f1   : > { %v5258_v13 = vadd.f32 %v1785_v26, %v1673_v0  ;;  %2467 = vmatmul.f32.gmra.mxu2 %v6506_v35  ;;  %2592 = vmatmul.f32.gmra.mxu3 %v1965_v58  ;;  %v5270_v9 = vpop.f32.mrf.mxu3  ;;  %v1453_v0 = vadd.f32 %v4839_v27, %v4728_v51 }
 0x2f2   : > { %v5262_v41 = vpop.f32.mrf.mxu1  ;;  %2696 = vmatmul.f32.gmra.mxu0 %v4941_v19 }
 0x2f3   : > { %v6461_v25 = vmax.f32 %v5258_v13, 0.0 }
 0x2f4   : > { %v1562_v24 = vpop.f32.mrf.mxu2  ;;  %v5268_v40 = vld [vmem:[#allocation3 + $0xd8] sm:$0xff] }
 0x2f5   : > { %1880 = vst [vmem:[#allocation3 + $0xe1] sm:$0xff] %v6461_v25  ;;  %v1563_v47 = vadd.f32 %v1562_v24, %v1450_v45  ;;  %2402 = vmatmul.f32.gmra.mxu1 %v5268_v40  ;;  %v1966_v45 = vld [vmem:[#allocation3 + $0x52] sm:$0xff] }
 0x2f7   : > { %v1676_v19 = vadd.f32 %v5197_v56, %v1563_v47  ;;  %v1794_v26 = vpop.f32.mrf.mxu0  ;;  %v6508_v47 = vmax.f32 %v4898_v33, 0.0 }
 0x2f9   : > { %v5276_v7 = vadd.f32 %v1788_v30, %v1676_v19  ;;  %2470 = vmatmul.f32.gmra.mxu2 %v6507_v31  ;;  %2595 = vmatmul.f32.gmra.mxu3 %v1966_v45  ;;  %v5288_v56 = vpop.f32.mrf.mxu3  ;;  %v1456_v31 = vadd.f32 %v4860_v54, %v4736_v2  ;;  %v1967_v45 = vld [vmem:[#allocation3 + $0x62] sm:$0xff]  ;;  %v6509_v2 = vmax.f32 %v4921_v3, 0.0 }
 0x2fa   : > { %v5280_v6 = vpop.f32.mrf.mxu1  ;;  %2699 = vmatmul.f32.gmra.mxu0 %v4964_v62  ;;  %v2252_v62 = vld [vmem:[%s6436_s3 + $0x220] sm:$0xff] }
 0x2fb   : > { %v6459_v35 = vmax.f32 %v5276_v7, 0.0  ;;  %2795 = vmatpush.msrb.mxu1 %v2252_v62 }
 0x2fc   : > { %v1565_v58 = vpop.f32.mrf.mxu2  ;;  %v5286_v24 = vld [vmem:[#allocation3 + $0xe0] sm:$0xff] }
 0x2fd   : > { %1881 = vst [vmem:[#allocation3 + $0xf1] sm:$0xff] %v6459_v35  ;;  %v1566_v61 = vadd.f32 %v1565_v58, %v1453_v0  ;;  %2405 = vmatmul.f32.gmra.mxu1 %v5286_v24 }
 0x2ff   : > { %v1679_v51 = vadd.f32 %v5214_v17, %v1566_v61  ;;  %v1797_v27 = vpop.f32.mrf.mxu0 }
 0x301   : > { %v5297_v30 = vadd.f32 %v1791_v55, %v1679_v51  ;;  %2473 = vmatmul.f32.gmra.mxu2 %v6508_v47  ;;  %2598 = vmatmul.f32.gmra.mxu3 %v1967_v45  ;;  %v5309_v17 = vpop.f32.mrf.mxu3  ;;  %v1459_v51 = vadd.f32 %v4881_v23, %v4741_v36 }
 0x302   : > { %v5301_v19 = vpop.f32.mrf.mxu1  ;;  %2702 = vmatmul.f32.gmra.mxu0 %v4981_v11 }
 0x303   : > { %v6458_v0 = vmax.f32 %v5297_v30, 0.0 }
 0x304   : > { %v1568_v58 = vpop.f32.mrf.mxu2  ;;  %v5307_v62 = vld [vmem:[#allocation3 + $0xf0] sm:$0xff] }
 0x305   : > { %1882 = vst [vmem:[#allocation3 + $0xf9] sm:$0xff] %v6458_v0  ;;  %v1569_v33 = vadd.f32 %v1568_v58, %v1456_v31  ;;  %2408 = vmatmul.f32.gmra.mxu1 %v5307_v62  ;;  %v1968_v31 = vld [vmem:[#allocation3 + $0x6a] sm:$0xff]  ;;  %v1971_v0 = vld [vmem:[#allocation3 + $0x92] sm:$0xff] }
 0x307   : > { %v1682_v11 = vadd.f32 %v5233_v1, %v1569_v33  ;;  %v1800_v55 = vpop.f32.mrf.mxu0  ;;  %v6510_v33 = vmax.f32 %v4938_v48, 0.0 }
 0x309   : > { %v5315_v61 = vadd.f32 %v1794_v26, %v1682_v11  ;;  %2476 = vmatmul.f32.gmra.mxu2 %v6509_v2  ;;  %2601 = vmatmul.f32.gmra.mxu3 %v1968_v31  ;;  %v5327_v1 = vpop.f32.mrf.mxu3  ;;  %v1462_v2 = vadd.f32 %v4900_v15, %v4749_v5  ;;  %v1969_v31 = vld [vmem:[#allocation3 + $0x7a] sm:$0xff]  ;;  %v6511_v5 = vmax.f32 %v4961_v38, 0.0 }
 0x30a   : > { %v5319_v54 = vpop.f32.mrf.mxu1  ;;  %2705 = vmatmul.f32.gmra.mxu0 %v5006_v59  ;;  %v2251_v59 = vld [vmem:[%s6436_s3 + $0x218] sm:$0xff] }
 0x30b   : > { %v6456_v47 = vmax.f32 %v5315_v61, 0.0  ;;  %2796 = vmatpush.msrb.mxu1 %v2251_v59 }
 0x30c   : > { %v1571_v45 = vpop.f32.mrf.mxu2  ;;  %v5325_v58 = vld [vmem:[#allocation3 + $0xf8] sm:$0xff] }
 0x30d   : > { %1883 = vst [vmem:[#allocation3 + $0x109] sm:$0xff] %v6456_v47  ;;  %v1572_v3 = vadd.f32 %v1571_v45, %v1459_v51  ;;  %2411 = vmatmul.f32.gmra.mxu1 %v5325_v58 }
 0x30f   : > { %v1685_v36 = vadd.f32 %v5249_v32, %v1572_v3  ;;  %v1803_v23 = vpop.f32.mrf.mxu0 }
 0x311   : > { %v5336_v26 = vadd.f32 %v1797_v27, %v1685_v36  ;;  %2479 = vmatmul.f32.gmra.mxu2 %v6510_v33  ;;  %2604 = vmatmul.f32.gmra.mxu3 %v1969_v31  ;;  %v5348_v32 = vpop.f32.mrf.mxu3  ;;  %v6512_v36 = vld [vmem:[#allocation4_spill] sm:$0xff]  ;;  %v6513_v33 = vld [vmem:[#allocation13_spill] sm:$0xff] }
 0x312   : > { %v5340_v11 = vpop.f32.mrf.mxu1  ;;  %2708 = vmatmul.f32.gmra.mxu0 %v5025_v29  ;;  %v1465_v31 = vadd.f32 %v6513_v33, %v6512_v36 }
 0x313   : > { %v6455_v51 = vmax.f32 %v5336_v26, 0.0 }
 0x314   : > { %v1574_v45 = vpop.f32.mrf.mxu2  ;;  %v5346_v59 = vld [vmem:[#allocation3 + $0x108] sm:$0xff] }
 0x315   : > { %1884 = vst [vmem:[#allocation3 + $0x111] sm:$0xff] %v6455_v51  ;;  %v1575_v48 = vadd.f32 %v1574_v45, %v1462_v2  ;;  %2414 = vmatmul.f32.gmra.mxu1 %v5346_v59  ;;  %v1970_v2 = vld [vmem:[#allocation3 + $0x82] sm:$0xff] }
 0x317   : > { %v1688_v29 = vadd.f32 %v5270_v9, %v1575_v48  ;;  %v1806_v27 = vpop.f32.mrf.mxu0 }
 0x319   : > { %v5354_v3 = vadd.f32 %v1800_v55, %v1688_v29  ;;  %2482 = vmatmul.f32.gmra.mxu2 %v6511_v5  ;;  %2607 = vmatmul.f32.gmra.mxu3 %v1970_v2  ;;  %v5366_v9 = vpop.f32.mrf.mxu3  ;;  %v6514_v5 = vld [vmem:[#allocation16_spill] sm:$0xff]  ;;  %v6517_v2 = vld [vmem:[#allocation14_spill] sm:$0xff] }
 0x31a   : > { %v5358_v15 = vpop.f32.mrf.mxu1  ;;  %2711 = vmatmul.f32.gmra.mxu0 %v5072_v16  ;;  %v2250_v16 = vld [vmem:[%s6436_s3 + $0x210] sm:$0xff]  ;;  %v6515_v36 = vmax.f32 %v6514_v5, 0.0  ;;  %v6518_v5 = vmax.f32 %v4999_v18, 0.0 }
 0x31b   : > { %v6457_v51 = vmax.f32 %v5354_v3, 0.0  ;;  %2797 = vmatpush.msrb.mxu1 %v2250_v16 }
 0x31c   : > { %v1577_v45 = vpop.f32.mrf.mxu2  ;;  %v5364_v47 = vld [vmem:[#allocation3 + $0x110] sm:$0xff] }
 0x31d   : > { %1885 = vst [vmem:[#allocation3 + $0x121] sm:$0xff] %v6457_v51  ;;  %v1578_v38 = vadd.f32 %v1577_v45, %v1465_v31  ;;  %2417 = vmatmul.f32.gmra.mxu1 %v5364_v47  ;;  %v6516_v31 = vld [vmem:[#allocation5_spill] sm:$0xff] }
 0x31e   : > { %v1468_v45 = vadd.f32 %v6517_v2, %v6516_v31  ;;  %v6520_v31 = vld [vmem:[#allocation15_spill] sm:$0xff] }
 0x31f   : > { %v1691_v55 = vadd.f32 %v5288_v56, %v1578_v38  ;;  %v1809_v48 = vpop.f32.mrf.mxu0 }
 0x321   : > { %v5375_v29 = vadd.f32 %v1803_v23, %v1691_v55  ;;  %2485 = vmatmul.f32.gmra.mxu2 %v6515_v36  ;;  %2610 = vmatmul.f32.gmra.mxu3 %v1971_v0  ;;  %v5387_v56 = vpop.f32.mrf.mxu3  ;;  %v6519_v0 = vld [vmem:[#allocation6_spill] sm:$0xff] }
 0x322   : > { %v5379_v33 = vpop.f32.mrf.mxu1  ;;  %2714 = vmatmul.f32.gmra.mxu0 %v5120_v60  ;;  %v1471_v2 = vadd.f32 %v6520_v31, %v6519_v0  ;;  %v6522_v31 = vld [vmem:[#allocation7_spill] sm:$0xff] }
 0x323   : > { %v6460_v51 = vmax.f32 %v5375_v29, 0.0 }
 0x324   : > { %v1580_v35 = vpop.f32.mrf.mxu2  ;;  %v5385_v16 = vld [vmem:[#allocation3 + $0x120] sm:$0xff] }
 0x325   : > { %1886 = vst [vmem:[#allocation3 + $0x129] sm:$0xff] %v6460_v51  ;;  %v1581_v23 = vadd.f32 %v1580_v35, %v1468_v45  ;;  %2420 = vmatmul.f32.gmra.mxu1 %v5385_v16  ;;  %v1972_v35 = vld [vmem:[#allocation3 + $0x9a] sm:$0xff] }
 0x327   : > { %v1694_v60 = vadd.f32 %v5309_v17, %v1581_v23  ;;  %v1812_v38 = vpop.f32.mrf.mxu0 }
 0x329   : > { %v5393_v55 = vadd.f32 %v1806_v27, %v1694_v60  ;;  %2488 = vmatmul.f32.gmra.mxu2 %v6518_v5  ;;  %2613 = vmatmul.f32.gmra.mxu3 %v1972_v35  ;;  %v5405_v17 = vpop.f32.mrf.mxu3  ;;  %v6521_v5 = vmax.f32 %v5019_v52, 0.0 }
 0x32a   : > { %v5397_v36 = vpop.f32.mrf.mxu1  ;;  %2717 = vmatmul.f32.gmra.mxu0 %v5163_v8  ;;  %v2249_v8 = vld [vmem:[%s6436_s3 + $0x208] sm:$0xff] }
 0x32b   : > { %v6462_v51 = vmax.f32 %v5393_v55, 0.0  ;;  %2798 = vmatpush.msrb.mxu1 %v2249_v8 }
 0x32c   : > { %v1583_v45 = vpop.f32.mrf.mxu2  ;;  %v5403_v25 = vld [vmem:[#allocation3 + $0x128] sm:$0xff] }
 0x32d   : > { %1887 = vst [vmem:[#allocation3 + $0x139] sm:$0xff] %v6462_v51  ;;  %v1584_v18 = vadd.f32 %v1583_v45, %v1471_v2  ;;  %2423 = vmatmul.f32.gmra.mxu1 %v5403_v25  ;;  %v1474_v2 = vadd.f32 %v5003_v63, %v6522_v31  ;;  %v1973_v45 = vld [vmem:[#allocation3 + $0xaa] sm:$0xff]  ;;  %v6523_v63 = vmax.f32 %v5049_v34, 0.0 }
 0x32e   : > { %v2248_v34 = vld [vmem:[%s6436_s3 + $0x200] sm:$0xff] }
 0x32f   : > { %v1697_v27 = vadd.f32 %v5327_v1, %v1584_v18  ;;  %v1815_v23 = vpop.f32.mrf.mxu0  ;;  %2799 = vmatpush.msrb.mxu1 %v2248_v34  ;;  %v1975_v34 = vld [vmem:[#allocation3 + $0xc2] sm:$0xff] }
 0x331   : > { %v5414_v60 = vadd.f32 %v1809_v48, %v1697_v27  ;;  %2491 = vmatmul.f32.gmra.mxu2 %v6521_v5  ;;  %2616 = vmatmul.f32.gmra.mxu3 %v1973_v45  ;;  %v5426_v1 = vpop.f32.mrf.mxu3  ;;  %v6524_v5 = vld [vmem:[#allocation8_spill] sm:$0xff] }
 0x332   : > { %v5418_v0 = vpop.f32.mrf.mxu1  ;;  %2720 = vmatmul.f32.gmra.mxu0 %v5179_v12  ;;  %v1477_v31 = vadd.f32 %v5029_v50, %v6524_v5  ;;  %v2279_v50 = vld [vmem:[%s6436_s3 + $0x2f8] sm:$0xff]  ;;  %v6525_v5 = vld [vmem:[#allocation18_spill] sm:$0xff] }
 0x333   : > { %v6463_v35 = vmax.f32 %v5414_v60, 0.0  ;;  %2897 = vmatpush.msra.mxu2 %v2279_v50 }
 0x334   : > { %v1586_v51 = vpop.f32.mrf.mxu2  ;;  %v5424_v8 = vld [vmem:[#allocation3 + $0x138] sm:$0xff] }
 0x335   : > { %1888 = vst [vmem:[#allocation3 + $0x141] sm:$0xff] %v6463_v35  ;;  %v1587_v52 = vadd.f32 %v1586_v51, %v1474_v2  ;;  %2426 = vmatmul.f32.gmra.mxu1 %v5424_v8  ;;  %v1974_v51 = vld [vmem:[#allocation3 + $0xb2] sm:$0xff] }
 0x337   : > { %v1700_v12 = vadd.f32 %v5348_v32, %v1587_v52  ;;  %v1818_v48 = vpop.f32.mrf.mxu0 }
 0x339   : > { %v5432_v18 = vadd.f32 %v1812_v38, %v1700_v12  ;;  %2494 = vmatmul.f32.gmra.mxu2 %v6523_v63  ;;  %2619 = vmatmul.f32.gmra.mxu3 %v1974_v51 }
 0x33a   : > { %v5436_v27 = vpop.f32.mrf.mxu1  ;;  %2723 = vmatmul.f32.gmra.mxu0 %v5195_v46  ;;  %v2295_v46 = vld [vmem:[%s6436_s3 + $0x378] sm:$0xff] }
 0x33b   : > { %v6464_v45 = vmax.f32 %v5432_v18, 0.0  ;;  %v5456_v38 = vpop.f32.mrf.mxu3  ;;  %3010 = vmatpush.msra.mxu3 %v2295_v46  ;;  %v2327_v46 = vld [vmem:[%s6436_s3 + $0x478] sm:$0xff] }
 0x33c   : > { %v1589_v2 = vpop.f32.mrf.mxu2  ;;  %v5442_v35 = vld [vmem:[#allocation3 + $0x140] sm:$0xff]  ;;  %3236 = vmatpush.msra.mxu1 %v2327_v46 }
 0x33d   : > { %1889 = vst [vmem:[#allocation3 + $0x151] sm:$0xff] %v6464_v45  ;;  %v1590_v32 = vadd.f32 %v1589_v2, %v1477_v31  ;;  %2429 = vmatmul.f32.gmra.mxu1 %v5442_v35  ;;  %v6526_v31 = vmax.f32 %v6525_v5, 0.0  ;;  %v6527_v2 = vld [vmem:[#allocation9_spill] sm:$0xff]  ;;  %v2278_v5 = vld [vmem:[%s6436_s3 + $0x2f0] sm:$0xff] }
 0x33e   : > { %v6528_v45 = vld [vmem:[#allocation17_spill] sm:$0xff]  ;;  %2898 = vmatpush.msra.mxu2 %v2278_v5 }
 0x33f   : > { %v1703_v52 = vadd.f32 %v5366_v9, %v1590_v32  ;;  %v1821_v12 = vpop.f32.mrf.mxu0  ;;  %v1480_v14 = vadd.f32 %v6528_v45, %v6527_v2  ;;  %v6531_v2 = vld [vmem:[#allocation19_spill] sm:$0xff] }
 0x341   : > { %v5459_v63 = vadd.f32 %v1815_v23, %v1703_v52  ;;  %2497 = vmatmul.f32.gmra.mxu2 %v6526_v31  ;;  %2622 = vmatmul.f32.gmra.mxu3 %v1975_v34 }
 0x342   : > { %v5463_v51 = vpop.f32.mrf.mxu1  ;;  %2726 = vmatmul.f32.gmra.mxu0 %v5212_v28  ;;  %v2311_v28 = vld [vmem:[%s6436_s3 + $0x3f8] sm:$0xff] }
 0x343   : > { %v1857_v49 = vmax.f32 %v5459_v63, 0.0  ;;  %3123 = vmatpush.msra.mxu0 %v2311_v28 }
 0x344   : > { %v1592_v50 = vpop.f32.mrf.mxu2  ;;  %v5469_v22 = vld [vmem:[#allocation3 + $0x150] sm:$0xff]  ;;  %v5478_v32 = vpop.f32.mrf.mxu3 }
 0x345   : > { %1890 = vst [vmem:[#allocation3 + $0x159] sm:$0xff] %v1857_v49  ;;  %v1593_v9 = vadd.f32 %v1592_v50, %v1480_v14  ;;  %2432 = vmatmul.f32.gmra.mxu1 %v5469_v22  ;;  %v6529_v14 = vmax.f32 %v5155_v44, 0.0  ;;  %v2294_v44 = vld [vmem:[%s6436_s3 + $0x370] sm:$0xff] }
 0x346   : > { %3011 = vmatpush.msra.mxu3 %v2294_v44  ;;  %v1977_v44 = vld [vmem:[#allocation3 + $0xda] sm:$0xff] }
 0x347   : > { %v1706_v23 = vadd.f32 %v5387_v56, %v1593_v9  ;;  %v1824_v45 = vpop.f32.mrf.mxu0  ;;  %v6530_v56 = vld [vmem:[#allocation10_spill] sm:$0xff]  ;;  %v1976_v9 = vld [vmem:[#allocation3 + $0xca] sm:$0xff] }
 0x348   : > { %v1483_v34 = vadd.f32 %v6531_v2, %v6530_v56  ;;  %v6532_v56 = vmax.f32 %v5172_v4, 0.0 }
 0x349   : > { %v5483_v52 = vadd.f32 %v1818_v48, %v1706_v23  ;;  %2500 = vmatmul.f32.gmra.mxu2 %v6529_v14  ;;  %2625 = vmatmul.f32.gmra.mxu3 %v1976_v9  ;;  %v6533_v9 = vld [vmem:[#allocation11_spill] sm:$0xff] }
 0x34a   : > { %v5490_v31 = vpop.f32.mrf.mxu1  ;;  %2729 = vmatmul.f32.gmra.mxu0 %v5231_v53 }
 0x34b   : > { %v6468_v50 = vmax.f32 %v5483_v52, 0.0 }
 0x34c   : > { %v1595_v48 = vpop.f32.mrf.mxu2  ;;  %v5499_v28 = vld [vmem:[#allocation3 + $0x158] sm:$0xff]  ;;  %v5505_v14 = vpop.f32.mrf.mxu3 }
 0x34d   : > { %1891 = vst [vmem:[#allocation3 + $0x169] sm:$0xff] %v6468_v50  ;;  %v1596_v23 = vadd.f32 %v1595_v48, %v1483_v34  ;;  %2435 = vmatmul.f32.gmra.mxu1 %v5499_v28  ;;  %v6534_v50 = vld [vmem:[#allocation20_spill] sm:$0xff] }
 0x34e   : > { %v1486_v34 = vadd.f32 %v6534_v50, %v6533_v9 }
 0x34f   : > { %v1709_v53 = vadd.f32 %v5405_v17, %v1596_v23  ;;  %v1827_v46 = vpop.f32.mrf.mxu0  ;;  %v2310_v17 = vld [vmem:[%s6436_s3 + $0x3f0] sm:$0xff] }
 0x350   : > { %3124 = vmatpush.msra.mxu0 %v2310_v17 }
 0x351   : > { %v5507_v5 = vadd.f32 %v1821_v12, %v1709_v53  ;;  %2503 = vmatmul.f32.gmra.mxu2 %v6532_v56  ;;  %2628 = vmatmul.f32.gmra.mxu3 %v1977_v44  ;;  %v2326_v56 = vld [vmem:[%s6436_s3 + $0x470] sm:$0xff]  ;;  %v6535_v44 = vmax.f32 %v5190_v10, 0.0 }
 0x352   : > { %v5511_v2 = vpop.f32.mrf.mxu1  ;;  %2732 = vmatmul.f32.gmra.mxu0 %v5247_v20  ;;  %3237 = vmatpush.msra.mxu1 %v2326_v56 }
 0x353   : > { %v6469_v48 = vmax.f32 %v5507_v5, 0.0 }
 0x354   : > { %v1598_v23 = vpop.f32.mrf.mxu2  ;;  %v5520_v12 = vld [vmem:[#allocation3 + $0x168] sm:$0xff]  ;;  %v5526_v53 = vpop.f32.mrf.mxu3 }
 0x355   : > { %1892 = vst [vmem:[#allocation3 + $0x171] sm:$0xff] %v6469_v48  ;;  %v1599_v4 = vadd.f32 %v1598_v23, %v1486_v34  ;;  %2438 = vmatmul.f32.gmra.mxu1 %v5520_v12  ;;  %v2277_v34 = vld [vmem:[%s6436_s3 + $0x2e8] sm:$0xff]  ;;  %v1978_v48 = vld [vmem:[#allocation3 + $0xe2] sm:$0xff] }
 0x356   : > { %2899 = vmatpush.msra.mxu2 %v2277_v34 }
 0x357   : > { %v1712_v20 = vadd.f32 %v5426_v1, %v1599_v4  ;;  %v2688_v50 = vpop.f32.mrf.mxu0  ;;  %v6536_v1 = vld [vmem:[#allocation12_spill] sm:$0xff] }
 0x358   : > { %v1489_v23 = vadd.f32 %v5202_v39, %v6536_v1  ;;  %v6537_v1 = vmax.f32 %v5205_v37, 0.0 }
 0x359   : > { %v1825_v9 = vadd.f32 %v1824_v45, %v1712_v20  ;;  %2506 = vmatmul.f32.gmra.mxu2 %v6535_v44  ;;  %v2293_v45 = vld [vmem:[%s6436_s3 + $0x368] sm:$0xff]  ;;  %2631 = vmatmul.f32.gmra.mxu3 %v1978_v48 }
 0x35a   : > { %v5536_v17 = vpop.f32.mrf.mxu1  ;;  %2735 = vmatmul.f32.gmra.mxu0 %v5268_v40  ;;  %3012 = vmatpush.msra.mxu3 %v2293_v45  ;;  %v5550_v40 = vld [vmem:[%s6437_s4] ss:$0 sm:$0xff]  ;;  %v1979_v45 = vld [vmem:[#allocation3 + $0xf2] sm:$0xff] }
 0x35b   : > { %v1860_v4 = vmax.f32 %v1825_v9, 0.0 }
 0x35c   : > { %v1601_v10 = vpop.f32.mrf.mxu2  ;;  %v5544_v20 = vld [vmem:[#allocation3 + $0x170] sm:$0xff]  ;;  %v5553_v44 = vpop.f32.mrf.mxu3 }
 0x35d   : > { %1893 = vst [vmem:[#allocation3 + $0x181] sm:$0xff] %v1860_v4  ;;  %v1602_v56 = vadd.f32 %v1601_v10, %v1489_v23  ;;  %2441 = vmatmul.f32.gmra.mxu1 %v5544_v20  ;;  %v2350_v23 = vadd.f32 %v5550_v40, %v5222_v57  ;;  %v2325_v57 = vld [vmem:[%s6436_s3 + $0x468] sm:$0xff] }
 0x35e   : > { %3238 = vmatpush.msra.mxu1 %v2325_v57 }
 0x35f   : > { %v1715_v39 = vadd.f32 %v5456_v38, %v1602_v56  ;;  %v2691_v9 = vpop.f32.mrf.mxu0  ;;  %v2309_v38 = vld [vmem:[%s6436_s3 + $0x3e8] sm:$0xff] }
 0x360   : > { %v2023_v56 = vld [vmem:[#allocation3 + $0x19] sm:$0xff]  ;;  %3125 = vmatpush.msra.mxu0 %v2309_v38 }
 0x361   : > { %v1828_v34 = vadd.f32 %v1827_v46, %v1715_v39  ;;  %2509 = vmatmul.f32.gmra.mxu2 %v6537_v1  ;;  %2634 = vmatmul.f32.gmra.mxu3 %v1979_v45  ;;  %v2276_v1 = vld [vmem:[%s6436_s3 + $0x2e0] sm:$0xff]  ;;  %v1980_v45 = vld [vmem:[#allocation3 + $0xfa] sm:$0xff] }
 0x362   : > { %v5557_v48 = vpop.f32.mrf.mxu1  ;;  %2738 = vmatmul.f32.gmra.mxu0 %v5286_v24  ;;  %2900 = vmatpush.msra.mxu2 %v2276_v1  ;;  %v1981_v1 = vld [vmem:[#allocation3 + $0x10a] sm:$0xff] }
 0x363   : > { %v1861_v4 = vmax.f32 %v1828_v34, 0.0  ;;  %v6538_v34 = vmax.f32 %v5225_v21, 0.0  ;;  %v2292_v21 = vld [vmem:[%s6436_s3 + $0x360] sm:$0xff] }
 0x364   : > { %v2462_v10 = vpop.f32.mrf.mxu2  ;;  %v5566_v24 = vpop.f32.mrf.mxu3  ;;  %3013 = vmatpush.msra.mxu3 %v2292_v21 }
 0x365   : > { %1894 = vst [vmem:[#allocation3 + $0x189] sm:$0xff] %v1861_v4  ;;  %v2463_v37 = vadd.f32 %v2462_v10, %v2350_v23  ;;  %2800 = vmatmul.f32.vlgmr.msrb.gmra.mxu1 %v2023_v56  ;;  %v2024_v10 = vld [vmem:[#allocation3 + $0x21] sm:$0xff] }
 0x367   : > { %v2576_v46 = vadd.f32 %v5478_v32, %v2463_v37  ;;  %v2694_v39 = vpop.f32.mrf.mxu0  ;;  %v2353_v32 = vadd.f32 %v5550_v40, %v5239_v42 }
 0x369   : > { %2512 = vmatmul.f32.gmra.mxu2 %v6538_v34  ;;  %v5576_v4 = vadd.f32 %v2688_v50, %v2576_v46  ;;  %2637 = vmatmul.f32.gmra.mxu3 %v1980_v45  ;;  %v2356_v34 = vadd.f32 %v5550_v40, %v5262_v41  ;;  %v5601_v45 = vld [vmem:[#allocation3 + $0x31] sm:$0xff] }
 0x36a   : > { %v5578_v23 = vpop.f32.mrf.mxu1  ;;  %2741 = vmatmul.f32.gmra.mxu0 %v5307_v62  ;;  %v6539_v62 = vmax.f32 %v5241_v43, 0.0  ;;  %v2324_v41 = vld [vmem:[%s6436_s3 + $0x460] sm:$0xff] }
 0x36b   : > { %3239 = vmatpush.msra.mxu1 %v2324_v41  ;;  %v2362_v41 = vadd.f32 %v5550_v40, %v5301_v19  ;;  %v2323_v19 = vld [vmem:[%s6436_s3 + $0x458] sm:$0xff] }
 0x36c   : > { %v2465_v38 = vpop.f32.mrf.mxu2  ;;  %v5587_v46 = vpop.f32.mrf.mxu3 }
 0x36d   : > { %v2466_v56 = vadd.f32 %v2465_v38, %v2353_v32  ;;  %2803 = vmatmul.f32.gmra.mxu1 %v2024_v10  ;;  %v6540_v38 = vmax.f32 %v5258_v13, 0.0  ;;  %v2275_v10 = vld [vmem:[%s6436_s3 + $0x2d8] sm:$0xff] }
 0x36e   : > { %2901 = vmatpush.msra.mxu2 %v2275_v10  ;;  %v2291_v13 = vld [vmem:[%s6436_s3 + $0x358] sm:$0xff]  ;;  %3240 = vmatpush.msra.mxu1 %v2323_v19  ;;  %v2368_v19 = vadd.f32 %v5550_v40, %v5340_v11  ;;  %v2322_v11 = vld [vmem:[%s6436_s3 + $0x450] sm:$0xff] }
 0x36f   : > { %v2579_v50 = vadd.f32 %v5505_v14, %v2466_v56  ;;  %v2697_v37 = vpop.f32.mrf.mxu0  ;;  %v2308_v14 = vld [vmem:[%s6436_s3 + $0x3e0] sm:$0xff]  ;;  %3014 = vmatpush.msra.mxu3 %v2291_v13  ;;  %v6542_v13 = vmax.f32 %v5297_v30, 0.0  ;;  %v2290_v30 = vld [vmem:[%s6436_s3 + $0x350] sm:$0xff] }
 0x370   : > { %3126 = vmatpush.msra.mxu0 %v2308_v14  ;;  %3241 = vmatpush.msra.mxu1 %v2322_v11  ;;  %v2374_v11 = vadd.f32 %v5550_v40, %v5379_v33  ;;  %v2321_v33 = vld [vmem:[%s6436_s3 + $0x448] sm:$0xff] }
 0x371   : > { %2515 = vmatmul.f32.gmra.mxu2 %v6539_v62  ;;  %v5591_v42 = vadd.f32 %v2691_v9, %v2579_v50  ;;  %2640 = vmatmul.f32.gmra.mxu3 %v1981_v1  ;;  %v1982_v62 = vld [vmem:[#allocation3 + $0x112] sm:$0xff] }
 0x372   : > { %v5593_v57 = vpop.f32.mrf.mxu1  ;;  %2744 = vmatmul.f32.gmra.mxu0 %v5325_v58  ;;  %v5625_v1 = vld [vmem:[#allocation3 + $0x39] sm:$0xff]  ;;  %3015 = vmatpush.msra.mxu3 %v2290_v30  ;;  %v6544_v30 = vmax.f32 %v5336_v26, 0.0 }
 0x373   : > { %v2289_v26 = vld [vmem:[%s6436_s3 + $0x348] sm:$0xff]  ;;  %3242 = vmatpush.msra.mxu1 %v2321_v33 }
 0x374   : > { %v2468_v32 = vpop.f32.mrf.mxu2  ;;  %v5605_v58 = vpop.f32.mrf.mxu3  ;;  %3016 = vmatpush.msra.mxu3 %v2289_v26  ;;  %v6546_v26 = vmax.f32 %v5375_v29, 0.0  ;;  %v2288_v29 = vld [vmem:[%s6436_s3 + $0x340] sm:$0xff] }
 0x375   : > { %v2469_v43 = vadd.f32 %v2468_v32, %v2356_v34  ;;  %2806 = vmatmul.f32.gmra.mxu1 %v5601_v45 }
 0x376   : > { %3017 = vmatpush.msra.mxu3 %v2288_v29  ;;  %v2286_v29 = vld [vmem:[%s6436_s3 + $0x330] sm:$0xff] }
 0x377   : > { %v2582_v9 = vadd.f32 %v5526_v53, %v2469_v43  ;;  %v2700_v21 = vpop.f32.mrf.mxu0  ;;  %v2359_v53 = vadd.f32 %v5550_v40, %v5280_v6  ;;  %v6541_v6 = vmax.f32 %v5276_v7, 0.0 }
 0x379   : > { %2518 = vmatmul.f32.gmra.mxu2 %v6540_v38  ;;  %v5615_v56 = vadd.f32 %v2694_v39, %v2582_v9  ;;  %2643 = vmatmul.f32.gmra.mxu3 %v1982_v62  ;;  %v1983_v38 = vld [vmem:[#allocation3 + $0x122] sm:$0xff] }
 0x37a   : > { %v5617_v50 = vpop.f32.mrf.mxu1  ;;  %2747 = vmatmul.f32.gmra.mxu0 %v5346_v59 }
 0x37c   : > { %v2471_v34 = vpop.f32.mrf.mxu2  ;;  %v5629_v32 = vpop.f32.mrf.mxu3 }
 0x37d   : > { %v2472_v14 = vadd.f32 %v2471_v34, %v2359_v53  ;;  %2809 = vmatmul.f32.gmra.mxu1 %v5625_v1  ;;  %v5643_v53 = vld [vmem:[#allocation3 + $0x49] sm:$0xff]  ;;  %v2274_v34 = vld [vmem:[%s6436_s3 + $0x2d0] sm:$0xff] }
 0x37e   : > { %2902 = vmatpush.msra.mxu2 %v2274_v34 }
 0x37f   : > { %v2585_v39 = vadd.f32 %v5553_v44, %v2472_v14  ;;  %v2703_v59 = vpop.f32.mrf.mxu0  ;;  %v2307_v44 = vld [vmem:[%s6436_s3 + $0x3d8] sm:$0xff] }
 0x380   : > { %3127 = vmatpush.msra.mxu0 %v2307_v44 }
 0x381   : > { %2521 = vmatmul.f32.gmra.mxu2 %v6541_v6  ;;  %v5633_v43 = vadd.f32 %v2697_v37, %v2585_v39  ;;  %2646 = vmatmul.f32.gmra.mxu3 %v1983_v38  ;;  %v1984_v6 = vld [vmem:[#allocation3 + $0x12a] sm:$0xff] }
 0x382   : > { %v5635_v9 = vpop.f32.mrf.mxu1  ;;  %2750 = vmatmul.f32.gmra.mxu0 %v5364_v47  ;;  %v5667_v38 = vld [vmem:[#allocation3 + $0x51] sm:$0xff] }
 0x384   : > { %v2474_v10 = vpop.f32.mrf.mxu2  ;;  %v5647_v47 = vpop.f32.mrf.mxu3 }
 0x385   : > { %v2475_v7 = vadd.f32 %v2474_v10, %v2362_v41  ;;  %2812 = vmatmul.f32.gmra.mxu1 %v5643_v53 }
 0x387   : > { %v2588_v37 = vadd.f32 %v5566_v24, %v2475_v7  ;;  %v2706_v62 = vpop.f32.mrf.mxu0  ;;  %v2365_v24 = vadd.f32 %v5550_v40, %v5319_v54  ;;  %v6543_v54 = vmax.f32 %v5315_v61, 0.0 }
 0x389   : > { %2524 = vmatmul.f32.gmra.mxu2 %v6542_v13  ;;  %v5657_v14 = vadd.f32 %v2700_v21, %v2588_v37  ;;  %2649 = vmatmul.f32.gmra.mxu3 %v1984_v6  ;;  %v1985_v13 = vld [vmem:[#allocation3 + $0x13a] sm:$0xff] }
 0x38a   : > { %v5659_v39 = vpop.f32.mrf.mxu1  ;;  %2753 = vmatmul.f32.gmra.mxu0 %v5385_v16 }
 0x38c   : > { %v2477_v41 = vpop.f32.mrf.mxu2  ;;  %v5671_v10 = vpop.f32.mrf.mxu3 }
 0x38d   : > { %v2478_v44 = vadd.f32 %v2477_v41, %v2365_v24  ;;  %2815 = vmatmul.f32.gmra.mxu1 %v5667_v38  ;;  %v5685_v24 = vld [vmem:[#allocation3 + $0x61] sm:$0xff]  ;;  %v2273_v41 = vld [vmem:[%s6436_s3 + $0x2c8] sm:$0xff] }
 0x38e   : > { %2903 = vmatpush.msra.mxu2 %v2273_v41 }
 0x38f   : > { %v2591_v21 = vadd.f32 %v5587_v46, %v2478_v44  ;;  %v2709_v16 = vpop.f32.mrf.mxu0  ;;  %v2306_v46 = vld [vmem:[%s6436_s3 + $0x3d0] sm:$0xff] }
 0x390   : > { %3128 = vmatpush.msra.mxu0 %v2306_v46 }
 0x391   : > { %2527 = vmatmul.f32.gmra.mxu2 %v6543_v54  ;;  %v5675_v7 = vadd.f32 %v2703_v59, %v2591_v21  ;;  %2652 = vmatmul.f32.gmra.mxu3 %v1985_v13  ;;  %v1986_v54 = vld [vmem:[#allocation3 + $0x142] sm:$0xff] }
 0x392   : > { %v5677_v37 = vpop.f32.mrf.mxu1  ;;  %2756 = vmatmul.f32.gmra.mxu0 %v5403_v25  ;;  %v5709_v13 = vld [vmem:[#allocation3 + $0x69] sm:$0xff] }
 0x394   : > { %v2480_v34 = vpop.f32.mrf.mxu2  ;;  %v5689_v25 = vpop.f32.mrf.mxu3 }
 0x395   : > { %v2481_v61 = vadd.f32 %v2480_v34, %v2368_v19  ;;  %2818 = vmatmul.f32.gmra.mxu1 %v5685_v24 }
 0x397   : > { %v2594_v59 = vadd.f32 %v5605_v58, %v2481_v61  ;;  %v2712_v6 = vpop.f32.mrf.mxu0  ;;  %v2371_v58 = vadd.f32 %v5550_v40, %v5358_v15  ;;  %v6545_v15 = vmax.f32 %v5354_v3, 0.0 }
 0x399   : > { %2530 = vmatmul.f32.gmra.mxu2 %v6544_v30  ;;  %v5699_v44 = vadd.f32 %v2706_v62, %v2594_v59  ;;  %2655 = vmatmul.f32.gmra.mxu3 %v1986_v54  ;;  %v1987_v30 = vld [vmem:[#allocation3 + $0x152] sm:$0xff] }
 0x39a   : > { %v5701_v21 = vpop.f32.mrf.mxu1  ;;  %2759 = vmatmul.f32.gmra.mxu0 %v5424_v8 }
 0x39c   : > { %v2483_v19 = vpop.f32.mrf.mxu2  ;;  %v5713_v34 = vpop.f32.mrf.mxu3 }
 0x39d   : > { %v2484_v46 = vadd.f32 %v2483_v19, %v2371_v58  ;;  %2821 = vmatmul.f32.gmra.mxu1 %v5709_v13  ;;  %v5727_v58 = vld [vmem:[#allocation3 + $0x79] sm:$0xff]  ;;  %v2272_v19 = vld [vmem:[%s6436_s3 + $0x2c0] sm:$0xff] }
 0x39e   : > { %2904 = vmatpush.msra.mxu2 %v2272_v19  ;;  %v2271_v19 = vld [vmem:[%s6436_s3 + $0x2b8] sm:$0xff] }
 0x39f   : > { %v2597_v62 = vadd.f32 %v5629_v32, %v2484_v46  ;;  %v2715_v8 = vpop.f32.mrf.mxu0  ;;  %v2305_v32 = vld [vmem:[%s6436_s3 + $0x3c8] sm:$0xff] }
 0x3a0   : > { %3129 = vmatpush.msra.mxu0 %v2305_v32  ;;  %2905 = vmatpush.msra.mxu2 %v2271_v19  ;;  %v2284_v19 = vld [vmem:[%s6436_s3 + $0x320] sm:$0xff] }
 0x3a1   : > { %2533 = vmatmul.f32.gmra.mxu2 %v6545_v15  ;;  %v5717_v61 = vadd.f32 %v2709_v16, %v2597_v62  ;;  %2658 = vmatmul.f32.gmra.mxu3 %v1987_v30  ;;  %v1988_v15 = vld [vmem:[#allocation3 + $0x15a] sm:$0xff] }
 0x3a2   : > { %v5719_v59 = vpop.f32.mrf.mxu1  ;;  %2762 = vmatmul.f32.gmra.mxu0 %v5442_v35  ;;  %v5751_v30 = vld [vmem:[#allocation3 + $0x81] sm:$0xff] }
 0x3a4   : > { %v2486_v41 = vpop.f32.mrf.mxu2  ;;  %v5731_v35 = vpop.f32.mrf.mxu3 }
 0x3a5   : > { %v2487_v3 = vadd.f32 %v2486_v41, %v2374_v11  ;;  %2824 = vmatmul.f32.gmra.mxu1 %v5727_v58 }
 0x3a7   : > { %v2600_v16 = vadd.f32 %v5647_v47, %v2487_v3  ;;  %v2718_v54 = vpop.f32.mrf.mxu0  ;;  %v2377_v47 = vadd.f32 %v5550_v40, %v5397_v36  ;;  %v2304_v36 = vld [vmem:[%s6436_s3 + $0x3c0] sm:$0xff]  ;;  %v6547_v3 = vmax.f32 %v5393_v55, 0.0  ;;  %v2303_v55 = vld [vmem:[%s6436_s3 + $0x3b8] sm:$0xff] }
 0x3a8   : > { %3130 = vmatpush.msra.mxu0 %v2304_v36 }
 0x3a9   : > { %2536 = vmatmul.f32.gmra.mxu2 %v6546_v26  ;;  %v5741_v46 = vadd.f32 %v2712_v6, %v2600_v16  ;;  %2661 = vmatmul.f32.gmra.mxu3 %v1988_v15  ;;  %v1989_v26 = vld [vmem:[#allocation3 + $0x16a] sm:$0xff] }
 0x3aa   : > { %v5743_v62 = vpop.f32.mrf.mxu1  ;;  %2765 = vmatmul.f32.gmra.mxu0 %v5469_v22  ;;  %v5780_v15 = vld [vmem:[#allocation3 + $0x91] sm:$0xff] }
 0x3ab   : > { %3131 = vmatpush.msra.mxu0 %v2303_v55  ;;  %v2268_v55 = vld [vmem:[%s6436_s3 + $0x2a0] sm:$0xff] }
 0x3ac   : > { %v2489_v11 = vpop.f32.mrf.mxu2  ;;  %v5757_v41 = vpop.f32.mrf.mxu3 }
 0x3ad   : > { %v2490_v32 = vadd.f32 %v2489_v11, %v2377_v47  ;;  %2827 = vmatmul.f32.gmra.mxu1 %v5751_v30  ;;  %v2287_v47 = vld [vmem:[%s6436_s3 + $0x338] sm:$0xff]  ;;  %v2302_v11 = vld [vmem:[%s6436_s3 + $0x3b0] sm:$0xff] }
 0x3ae   : > { %3018 = vmatpush.msra.mxu3 %v2287_v47  ;;  %3132 = vmatpush.msra.mxu0 %v2302_v11  ;;  %v6549_v47 = vmax.f32 %v5414_v60, 0.0  ;;  %v2383_v60 = vadd.f32 %v5550_v40, %v5436_v27  ;;  %v2283_v11 = vld [vmem:[%s6436_s3 + $0x318] sm:$0xff] }
 0x3af   : > { %v2603_v6 = vadd.f32 %v5671_v10, %v2490_v32  ;;  %v5755_v22 = vpop.f32.mrf.mxu0  ;;  %v2380_v10 = vadd.f32 %v5550_v40, %v5418_v0  ;;  %v2270_v0 = vld [vmem:[%s6436_s3 + $0x2b0] sm:$0xff]  ;;  %v2299_v27 = vld [vmem:[%s6436_s3 + $0x398] sm:$0xff] }
 0x3b0   : > { %2906 = vmatpush.msra.mxu2 %v2270_v0  ;;  %3019 = vmatpush.msra.mxu3 %v2286_v29  ;;  %v2300_v0 = vld [vmem:[%s6436_s3 + $0x3a0] sm:$0xff] }
 0x3b1   : > { %2539 = vmatmul.f32.gmra.mxu2 %v6547_v3  ;;  %v5764_v16 = vadd.f32 %v2715_v8, %v2603_v6  ;;  %2664 = vmatmul.f32.gmra.mxu3 %v1989_v26  ;;  %v2320_v3 = vld [vmem:[%s6436_s3 + $0x440] sm:$0xff]  ;;  %v2269_v26 = vld [vmem:[%s6436_s3 + $0x2a8] sm:$0xff] }
 0x3b2   : > { %v5766_v33 = vpop.f32.mrf.mxu1  ;;  %2768 = vmatmul.f32.gmra.mxu0 %v5499_v28  ;;  %3243 = vmatpush.msra.mxu1 %v2320_v3  ;;  %v1990_v29 = vld [vmem:[#allocation3 + $0x172] sm:$0xff] }
 0x3b3   : > { %6548 = vst [vmem:[#allocation4_spill] sm:$0xff] %v5764_v16  ;;  %2907 = vmatpush.msra.mxu2 %v2269_v26  ;;  %v2266_v26 = vld [vmem:[%s6436_s3 + $0x290] sm:$0xff]  ;;  %v6066_v16 = vld [vmem:[#allocation3 + $0x92] sm:$0xff] }
 0x3b4   : > { %v2492_v8 = vpop.f32.mrf.mxu2  ;;  %v5795_v36 = vpop.f32.mrf.mxu3 }
 0x3b5   : > { %v2493_v28 = vadd.f32 %v2492_v8, %v2380_v10  ;;  %2830 = vmatmul.f32.gmra.mxu1 %v5780_v15  ;;  %v2285_v10 = vld [vmem:[%s6436_s3 + $0x328] sm:$0xff]  ;;  %2908 = vmatpush.msra.mxu2 %v2268_v55 }
 0x3b6   : > { %3020 = vmatpush.msra.mxu3 %v2285_v10  ;;  %v2282_v10 = vld [vmem:[%s6436_s3 + $0x310] sm:$0xff] }
 0x3b7   : > { %v2606_v32 = vadd.f32 %v5689_v25, %v2493_v28  ;;  %v5793_v6 = vpop.f32.mrf.mxu0  ;;  %v2301_v25 = vld [vmem:[%s6436_s3 + $0x3a8] sm:$0xff] }
 0x3b8   : > { %3133 = vmatpush.msra.mxu0 %v2301_v25  ;;  %3021 = vmatpush.msra.mxu3 %v2284_v19  ;;  %v2298_v25 = vld [vmem:[%s6436_s3 + $0x390] sm:$0xff] }
 0x3b9   : > { %2542 = vmatmul.f32.gmra.mxu2 %v6549_v47  ;;  %v5817_v8 = vadd.f32 %v2718_v54, %v2606_v32  ;;  %v2267_v54 = vld [vmem:[%s6436_s3 + $0x298] sm:$0xff]  ;;  %v5833_v32 = vld [vmem:[#allocation3 + $0x99] sm:$0xff]  ;;  %2667 = vmatmul.f32.gmra.mxu3 %v1990_v29 }
 0x3ba   : > { %v5819_v28 = vpop.f32.mrf.mxu1  ;;  %2771 = vmatmul.f32.gmra.mxu0 %v5520_v12  ;;  %2909 = vmatpush.msra.mxu2 %v2267_v54  ;;  %v2297_v29 = vld [vmem:[%s6436_s3 + $0x388] sm:$0xff]  ;;  %v2264_v54 = vld [vmem:[%s6436_s3 + $0x280] sm:$0xff] }
 0x3bb   : > { %6550 = vst [vmem:[#allocation13_spill] sm:$0xff] %v5817_v8  ;;  %3134 = vmatpush.msra.mxu0 %v2300_v0  ;;  %3022 = vmatpush.msra.mxu3 %v2283_v11  ;;  %v2265_v0 = vld [vmem:[%s6436_s3 + $0x288] sm:$0xff] }
 0x3bc   : > { %v2495_v12 = vpop.f32.mrf.mxu2  ;;  %v5849_v55 = vpop.f32.mrf.mxu3  ;;  %2910 = vmatpush.msra.mxu2 %v2266_v26  ;;  %v5879_v26 = vld [vmem:[#allocation3 + $0xa9] sm:$0xff] }
 0x3bd   : > { %v2496_v3 = vadd.f32 %v2495_v12, %v2383_v60  ;;  %2833 = vmatmul.f32.gmra.mxu1 %v5833_v32  ;;  %3135 = vmatpush.msra.mxu0 %v2299_v27  ;;  %v2281_v60 = vld [vmem:[%s6436_s3 + $0x308] sm:$0xff]  ;;  %v2280_v27 = vld [vmem:[%s6436_s3 + $0x300] sm:$0xff] }
 0x3be   : > { %3023 = vmatpush.msra.mxu3 %v2282_v10  ;;  %2911 = vmatpush.msra.mxu2 %v2265_v0  ;;  %v2319_v0 = vld [vmem:[%s6436_s3 + $0x438] sm:$0xff] }
 0x3bf   : > { %v2609_v19 = vadd.f32 %v5713_v34, %v2496_v3  ;;  %v2727_v47 = vpop.f32.mrf.mxu0  ;;  %v6551_v34 = vmax.f32 %v5432_v18, 0.0  ;;  %3136 = vmatpush.msra.mxu0 %v2298_v25  ;;  %v2386_v18 = vadd.f32 %v5550_v40, %v5463_v51  ;;  %v2296_v3 = vld [vmem:[%s6436_s3 + $0x380] sm:$0xff]  ;;  %3244 = vmatpush.msra.mxu1 %v2319_v0 }
 0x3c0   : > { %3024 = vmatpush.msra.mxu3 %v2281_v60  ;;  %2912 = vmatpush.msra.mxu2 %v2264_v54  ;;  %v2021_v60 = vld [vmem:[#allocation3 + $0x180] sm:$0xff] }
 0x3c1   : > { %2545 = vmatmul.f32.gmra.mxu2 %v6551_v34  ;;  %v5866_v11 = vadd.f32 %v5755_v22, %v2609_v19  ;;  %3137 = vmatpush.msra.mxu0 %v2297_v29 }
 0x3c2   : > { %v5868_v12 = vpop.f32.mrf.mxu1  ;;  %2774 = vmatmul.f32.gmra.mxu0 %v5544_v20  ;;  %3025 = vmatpush.msra.mxu3 %v2280_v27  ;;  %v2088_v20 = vld [vmem:[#allocation3 + $0x30] sm:$0xff] }
 0x3c3   : > { %6552 = vst [vmem:[#allocation16_spill] sm:$0xff] %v5866_v11  ;;  %3138 = vmatpush.msra.mxu0 %v2296_v3  ;;  %3026 = vmatmul.f32.vlgmr.msra.gmra.mxu3 %v2088_v20  ;;  %v5895_v27 = vld [vmem:[#allocation3 + $0xb1] sm:$0xff] }
 0x3c4   : > { %v2498_v22 = vpop.f32.mrf.mxu2  ;;  %v2623_v19 = vpop.f32.mrf.mxu3  ;;  %v2089_v3 = vld [vmem:[#allocation3 + $0x38] sm:$0xff] }
 0x3c5   : > { %v2499_v10 = vadd.f32 %v2498_v22, %v2386_v18  ;;  %2836 = vmatmul.f32.gmra.mxu1 %v5879_v26 }
 0x3c7   : > { %v2612_v25 = vadd.f32 %v5731_v35, %v2499_v10  ;;  %v2730_v51 = vpop.f32.mrf.mxu0  ;;  %v2389_v35 = vadd.f32 %v5550_v40, %v5490_v31  ;;  %v2022_v10 = vld [vmem:[#allocation3 + $0x188] sm:$0xff]  ;;  %v2392_v31 = vadd.f32 %v5550_v40, %v5511_v2 }
 0x3c9   : > { %2548 = vmatmul.f32.gmra.mxu2 %v1857_v49  ;;  %v5889_v29 = vadd.f32 %v5793_v6, %v2612_v25  ;;  %v6554_v6 = vmax.f32 %v5483_v52, 0.0 }
 0x3ca   : > { %v5891_v34 = vpop.f32.mrf.mxu1  ;;  %2777 = vmatmul.f32.gmra.mxu0 %v2021_v60  ;;  %v5907_v60 = vld [vmem:[#allocation3 + $0xc1] sm:$0xff] }
 0x3cb   : > { %6553 = vst [vmem:[#allocation5_spill] sm:$0xff] %v5889_v29  ;;  %3029 = vmatmul.f32.gmra.mxu3 %v2089_v3  ;;  %v6556_v3 = vmax.f32 %v5507_v5, 0.0  ;;  %v6008_v29 = vld [vmem:[#allocation3 + $0x62] sm:$0xff] }
 0x3cc   : > { %v2501_v54 = vpop.f32.mrf.mxu2  ;;  %v2626_v22 = vpop.f32.mrf.mxu3 }
 0x3cd   : > { %v2502_v18 = vadd.f32 %v2501_v54, %v2389_v35  ;;  %2839 = vmatmul.f32.gmra.mxu1 %v5895_v27 }
 0x3cf   : > { %v2615_v49 = vadd.f32 %v5757_v41, %v2502_v18  ;;  %v2733_v63 = vpop.f32.mrf.mxu0  ;;  %v2090_v41 = vld [vmem:[#allocation3 + $0x48] sm:$0xff] }
 0x3d1   : > { %2551 = vmatmul.f32.gmra.mxu2 %v6554_v6  ;;  %v5901_v20 = vadd.f32 %v2727_v47, %v2615_v49  ;;  %v2318_v47 = vld [vmem:[%s6436_s3 + $0x430] sm:$0xff]  ;;  %v2395_v6 = vadd.f32 %v5550_v40, %v5536_v17  ;;  %v2398_v17 = vadd.f32 %v5550_v40, %v5557_v48 }
 0x3d2   : > { %v5903_v25 = vpop.f32.mrf.mxu1  ;;  %2780 = vmatmul.f32.gmra.mxu0 %v2022_v10  ;;  %3245 = vmatpush.msra.mxu1 %v2318_v47  ;;  %v5923_v10 = vld [vmem:[#allocation3 + $0xc9] sm:$0xff] }
 0x3d3   : > { %6555 = vst [vmem:[#allocation14_spill] sm:$0xff] %v5901_v20  ;;  %3032 = vmatmul.f32.gmra.mxu3 %v2090_v41  ;;  %v2055_v41 = vld [vmem:[#allocation3 + $0x1a] sm:$0xff] }
 0x3d4   : > { %v2504_v0 = vpop.f32.mrf.mxu2  ;;  %v2629_v18 = vpop.f32.mrf.mxu3 }
 0x3d5   : > { %v2505_v35 = vadd.f32 %v2504_v0, %v2392_v31  ;;  %2842 = vmatmul.f32.gmra.mxu1 %v5907_v60  ;;  %v2091_v0 = vld [vmem:[#allocation3 + $0x50] sm:$0xff] }
 0x3d7   : > { %v2618_v52 = vadd.f32 %v5795_v36, %v2505_v35  ;;  %v2736_v54 = vpop.f32.mrf.mxu0 }
 0x3d9   : > { %2554 = vmatmul.f32.gmra.mxu2 %v6556_v3  ;;  %v5916_v2 = vadd.f32 %v2730_v51, %v2618_v52  ;;  %v5934_v3 = vld [vmem:[#allocation3 + $0xd9] sm:$0xff] }
 0x3da   : > { %v5918_v49 = vpop.f32.mrf.mxu1  ;;  %3139 = vmatmul.f32.vlgmr.msra.gmra.mxu0 %v5601_v45 }
 0x3db   : > { %6557 = vst [vmem:[#allocation6_spill] sm:$0xff] %v5916_v2  ;;  %3035 = vmatmul.f32.gmra.mxu3 %v2091_v0 }
 0x3dc   : > { %v2507_v36 = vpop.f32.mrf.mxu2  ;;  %v2632_v51 = vpop.f32.mrf.mxu3 }
 0x3dd   : > { %v2508_v31 = vadd.f32 %v2507_v36, %v2395_v6  ;;  %2845 = vmatmul.f32.gmra.mxu1 %v5923_v10 }
 0x3df   : > { %v2621_v5 = vadd.f32 %v5849_v55, %v2508_v31  ;;  %v2739_v35 = vpop.f32.mrf.mxu0  ;;  %v2092_v55 = vld [vmem:[#allocation3 + $0x60] sm:$0xff] }
 0x3e1   : > { %2913 = vmatmul.f32.vlgmr.msra.gmra.mxu2 %v2055_v41  ;;  %v5927_v52 = vadd.f32 %v2733_v63, %v2621_v5  ;;  %v2317_v63 = vld [vmem:[%s6436_s3 + $0x428] sm:$0xff]  ;;  %v2056_v5 = vld [vmem:[#allocation3 + $0x22] sm:$0xff]  ;;  %v2401_v41 = vadd.f32 %v5550_v40, %v5578_v23  ;;  %v2404_v23 = vadd.f32 %v5550_v40, %v5593_v57 }
 0x3e2   : > { %v5929_v45 = vpop.f32.mrf.mxu1  ;;  %3142 = vmatmul.f32.gmra.mxu0 %v5625_v1  ;;  %3246 = vmatpush.msra.mxu1 %v2317_v63 }
 0x3e3   : > { %6558 = vst [vmem:[#allocation15_spill] sm:$0xff] %v5927_v52  ;;  %3038 = vmatmul.f32.gmra.mxu3 %v2092_v55 }
 0x3e4   : > { %v2510_v47 = vpop.f32.mrf.mxu2  ;;  %v2635_v0 = vpop.f32.mrf.mxu3 }
 0x3e5   : > { %v2511_v6 = vadd.f32 %v2510_v47, %v2398_v17  ;;  %2848 = vmatmul.f32.gmra.mxu1 %v5934_v3 }
 0x3e7   : > { %v2624_v36 = vadd.f32 %v2623_v19, %v2511_v6  ;;  %v2742_v31 = vpop.f32.mrf.mxu0  ;;  %v5947_v19 = vld [vmem:[#allocation3 + $0xe1] sm:$0xff] }
 0x3e8   : > { %v2093_v6 = vld [vmem:[#allocation3 + $0x68] sm:$0xff] }
 0x3e9   : > { %2916 = vmatmul.f32.gmra.mxu2 %v2056_v5  ;;  %v5940_v1 = vadd.f32 %v2736_v54, %v2624_v36  ;;  %v5950_v54 = vld [vmem:[#allocation3 + $0x32] sm:$0xff] }
 0x3ea   : > { %v5942_v48 = vpop.f32.mrf.mxu1  ;;  %3145 = vmatmul.f32.gmra.mxu0 %v5643_v53 }
 0x3eb   : > { %6559 = vst [vmem:[#allocation7_spill] sm:$0xff] %v5940_v1  ;;  %3041 = vmatmul.f32.gmra.mxu3 %v2093_v6 }
 0x3ec   : > { %v2513_v17 = vpop.f32.mrf.mxu2  ;;  %v2638_v5 = vpop.f32.mrf.mxu3 }
 0x3ed   : > { %v2514_v47 = vadd.f32 %v2513_v17, %v2401_v41  ;;  %2851 = vmatmul.f32.gmra.mxu1 %v5947_v19  ;;  %v5960_v17 = vld [vmem:[#allocation3 + $0xf1] sm:$0xff] }
 0x3ef   : > { %v2627_v55 = vadd.f32 %v2626_v22, %v2514_v47  ;;  %v2745_v63 = vpop.f32.mrf.mxu0  ;;  %v2094_v22 = vld [vmem:[#allocation3 + $0x78] sm:$0xff] }
 0x3f1   : > { %2919 = vmatmul.f32.gmra.mxu2 %v5950_v54  ;;  %v5953_v36 = vadd.f32 %v2739_v35, %v2627_v55  ;;  %v2316_v35 = vld [vmem:[%s6436_s3 + $0x420] sm:$0xff]  ;;  %v5966_v55 = vld [vmem:[#allocation3 + $0x3a] sm:$0xff] }
 0x3f2   : > { %v5955_v53 = vpop.f32.mrf.mxu1  ;;  %3148 = vmatmul.f32.gmra.mxu0 %v5667_v38  ;;  %3247 = vmatpush.msra.mxu1 %v2316_v35 }
 0x3f3   : > { %6560 = vst [vmem:[#allocation8_spill] sm:$0xff] %v5953_v36  ;;  %3044 = vmatmul.f32.gmra.mxu3 %v2094_v22  ;;  %v2095_v22 = vld [vmem:[#allocation3 + $0x80] sm:$0xff] }
 0x3f4   : > { %v2516_v41 = vpop.f32.mrf.mxu2  ;;  %v2641_v52 = vpop.f32.mrf.mxu3 }
 0x3f5   : > { %v2517_v6 = vadd.f32 %v2516_v41, %v2404_v23  ;;  %2854 = vmatmul.f32.gmra.mxu1 %v5960_v17  ;;  %v5976_v41 = vld [vmem:[#allocation3 + $0xf9] sm:$0xff] }
 0x3f7   : > { %v2630_v47 = vadd.f32 %v2629_v18, %v2517_v6  ;;  %v2748_v1 = vpop.f32.mrf.mxu0  ;;  %v2407_v18 = vadd.f32 %v5550_v40, %v5617_v50  ;;  %v2410_v50 = vadd.f32 %v5550_v40, %v5635_v9 }
 0x3f9   : > { %2922 = vmatmul.f32.gmra.mxu2 %v5966_v55  ;;  %v5969_v57 = vadd.f32 %v2742_v31, %v2630_v47  ;;  %v5979_v31 = vld [vmem:[#allocation3 + $0x4a] sm:$0xff] }
 0x3fa   : > { %v5971_v38 = vpop.f32.mrf.mxu1  ;;  %3151 = vmatmul.f32.gmra.mxu0 %v5685_v24 }
 0x3fb   : > { %6561 = vst [vmem:[#allocation18_spill] sm:$0xff] %v5969_v57  ;;  %3047 = vmatmul.f32.gmra.mxu3 %v2095_v22 }
 0x3fc   : > { %v2519_v23 = vpop.f32.mrf.mxu2  ;;  %v2644_v2 = vpop.f32.mrf.mxu3 }
 0x3fd   : > { %v2520_v6 = vadd.f32 %v2519_v23, %v2407_v18  ;;  %2857 = vmatmul.f32.gmra.mxu1 %v5976_v41  ;;  %v5989_v23 = vld [vmem:[#allocation3 + $0x109] sm:$0xff] }
 0x3ff   : > { %v2633_v35 = vadd.f32 %v2632_v51, %v2520_v6  ;;  %v2751_v36 = vpop.f32.mrf.mxu0  ;;  %v2096_v51 = vld [vmem:[#allocation3 + $0x90] sm:$0xff] }
 0x401   : > { %2925 = vmatmul.f32.gmra.mxu2 %v5979_v31  ;;  %v5982_v47 = vadd.f32 %v2745_v63, %v2633_v35  ;;  %v2315_v63 = vld [vmem:[%s6436_s3 + $0x418] sm:$0xff]  ;;  %v5995_v35 = vld [vmem:[#allocation3 + $0x52] sm:$0xff] }
 0x402   : > { %v5984_v24 = vpop.f32.mrf.mxu1  ;;  %3154 = vmatmul.f32.gmra.mxu0 %v5709_v13  ;;  %3248 = vmatpush.msra.mxu1 %v2315_v63 }
 0x403   : > { %6562 = vst [vmem:[#allocation9_spill] sm:$0xff] %v5982_v47  ;;  %3050 = vmatmul.f32.gmra.mxu3 %v2096_v51  ;;  %v2097_v51 = vld [vmem:[#allocation3 + $0x98] sm:$0xff] }
 0x404   : > { %v2522_v18 = vpop.f32.mrf.mxu2  ;;  %v2647_v13 = vpop.f32.mrf.mxu3 }
 0x405   : > { %v2523_v22 = vadd.f32 %v2522_v18, %v2410_v50  ;;  %2860 = vmatmul.f32.gmra.mxu1 %v5989_v23  ;;  %v6005_v18 = vld [vmem:[#allocation3 + $0x111] sm:$0xff] }
 0x407   : > { %v2636_v6 = vadd.f32 %v2635_v0, %v2523_v22  ;;  %v2754_v57 = vpop.f32.mrf.mxu0  ;;  %v2413_v0 = vadd.f32 %v5550_v40, %v5659_v39 }
 0x409   : > { %2928 = vmatmul.f32.gmra.mxu2 %v5995_v35  ;;  %v5998_v9 = vadd.f32 %v2748_v1, %v2636_v6  ;;  %v2416_v6 = vadd.f32 %v5550_v40, %v5677_v37 }
 0x40a   : > { %v6000_v47 = vpop.f32.mrf.mxu1  ;;  %3157 = vmatmul.f32.gmra.mxu0 %v5727_v58 }
 0x40b   : > { %6563 = vst [vmem:[#allocation17_spill] sm:$0xff] %v5998_v9  ;;  %3053 = vmatmul.f32.gmra.mxu3 %v2097_v51 }
 0x40c   : > { %v2525_v50 = vpop.f32.mrf.mxu2  ;;  %v2650_v39 = vpop.f32.mrf.mxu3 }
 0x40d   : > { %v2526_v22 = vadd.f32 %v2525_v50, %v2413_v0  ;;  %2863 = vmatmul.f32.gmra.mxu1 %v6005_v18  ;;  %v6018_v50 = vld [vmem:[#allocation3 + $0x121] sm:$0xff] }
 0x40f   : > { %v2639_v63 = vadd.f32 %v2638_v5, %v2526_v22  ;;  %v2757_v20 = vpop.f32.mrf.mxu0  ;;  %v2098_v5 = vld [vmem:[#allocation3 + $0xa8] sm:$0xff] }
 0x411   : > { %2931 = vmatmul.f32.gmra.mxu2 %v6008_v29  ;;  %v6011_v1 = vadd.f32 %v2751_v36, %v2639_v63  ;;  %v2314_v36 = vld [vmem:[%s6436_s3 + $0x410] sm:$0xff]  ;;  %v6024_v63 = vld [vmem:[#allocation3 + $0x6a] sm:$0xff] }
 0x412   : > { %v6013_v58 = vpop.f32.mrf.mxu1  ;;  %3160 = vmatmul.f32.gmra.mxu0 %v5751_v30  ;;  %3249 = vmatpush.msra.mxu1 %v2314_v36 }
 0x413   : > { %6564 = vst [vmem:[#allocation10_spill] sm:$0xff] %v6011_v1  ;;  %3056 = vmatmul.f32.gmra.mxu3 %v2098_v5  ;;  %v2099_v1 = vld [vmem:[#allocation3 + $0xb0] sm:$0xff] }
 0x414   : > { %v2528_v0 = vpop.f32.mrf.mxu2 }
 0x415   : > { %v2529_v51 = vadd.f32 %v2528_v0, %v2416_v6  ;;  %2866 = vmatmul.f32.gmra.mxu1 %v6018_v50  ;;  %v2419_v6 = vadd.f32 %v5550_v40, %v5701_v21  ;;  %v6034_v0 = vld [vmem:[#allocation3 + $0x129] sm:$0xff]  ;;  %v2422_v21 = vadd.f32 %v5550_v40, %v5719_v59 }
 0x417   : > { %v2642_v22 = vadd.f32 %v2641_v52, %v2529_v51  ;;  %v2760_v9 = vpop.f32.mrf.mxu0  ;;  %v2653_v51 = vpop.f32.mrf.mxu3 }
 0x419   : > { %2934 = vmatmul.f32.gmra.mxu2 %v6024_v63  ;;  %v6027_v37 = vadd.f32 %v2754_v57, %v2642_v22  ;;  %v6037_v57 = vld [vmem:[#allocation3 + $0x7a] sm:$0xff] }
 0x41a   : > { %v6029_v30 = vpop.f32.mrf.mxu1  ;;  %3163 = vmatmul.f32.gmra.mxu0 %v5780_v15 }
 0x41b   : > { %6565 = vst [vmem:[#allocation19_spill] sm:$0xff] %v6027_v37  ;;  %3059 = vmatmul.f32.gmra.mxu3 %v2099_v1 }
 0x41c   : > { %v2531_v52 = vpop.f32.mrf.mxu2 }
 0x41d   : > { %v2532_v5 = vadd.f32 %v2531_v52, %v2419_v6  ;;  %2869 = vmatmul.f32.gmra.mxu1 %v6034_v0  ;;  %v6047_v52 = vld [vmem:[#allocation3 + $0x139] sm:$0xff] }
 0x41f   : > { %v2645_v36 = vadd.f32 %v2644_v2, %v2532_v5  ;;  %v2763_v11 = vpop.f32.mrf.mxu0  ;;  %v2100_v2 = vld [vmem:[#allocation3 + $0xc0] sm:$0xff]  ;;  %v2656_v1 = vpop.f32.mrf.mxu3 }
 0x421   : > { %2937 = vmatmul.f32.gmra.mxu2 %v6037_v57  ;;  %v6040_v22 = vadd.f32 %v2757_v20, %v2645_v36  ;;  %v2313_v20 = vld [vmem:[%s6436_s3 + $0x408] sm:$0xff]  ;;  %v6053_v36 = vld [vmem:[#allocation3 + $0x82] sm:$0xff] }
 0x422   : > { %v6042_v15 = vpop.f32.mrf.mxu1  ;;  %3166 = vmatmul.f32.gmra.mxu0 %v5833_v32  ;;  %3250 = vmatpush.msra.mxu1 %v2313_v20 }
 0x423   : > { %6566 = vst [vmem:[#allocation11_spill] sm:$0xff] %v6040_v22  ;;  %3062 = vmatmul.f32.gmra.mxu3 %v2100_v2  ;;  %v2101_v2 = vld [vmem:[#allocation3 + $0xc8] sm:$0xff] }
 0x424   : > { %v2534_v6 = vpop.f32.mrf.mxu2 }
 0x425   : > { %v2535_v37 = vadd.f32 %v2534_v6, %v2422_v21  ;;  %2872 = vmatmul.f32.gmra.mxu1 %v6047_v52  ;;  %v2425_v21 = vadd.f32 %v5550_v40, %v5743_v62  ;;  %v2428_v62 = vadd.f32 %v5550_v40, %v5766_v33 }
 0x427   : > { %v2648_v5 = vadd.f32 %v2647_v13, %v2535_v37  ;;  %v2766_v8 = vpop.f32.mrf.mxu0  ;;  %v6063_v37 = vld [vmem:[#allocation3 + $0x141] sm:$0xff] }
 0x429   : > { %2940 = vmatmul.f32.gmra.mxu2 %v6053_v36  ;;  %v6056_v59 = vadd.f32 %v2760_v9, %v2648_v5  ;;  %v2659_v9 = vpop.f32.mrf.mxu3 }
 0x42a   : > { %v6058_v32 = vpop.f32.mrf.mxu1  ;;  %3169 = vmatmul.f32.gmra.mxu0 %v5879_v26 }
 0x42b   : > { %6567 = vst [vmem:[#allocation20_spill] sm:$0xff] %v6056_v59  ;;  %3065 = vmatmul.f32.gmra.mxu3 %v2101_v2 }
 0x42c   : > { %v2537_v13 = vpop.f32.mrf.mxu2 }
 0x42d   : > { %v2538_v6 = vadd.f32 %v2537_v13, %v2425_v21  ;;  %2875 = vmatmul.f32.gmra.mxu1 %v6063_v37  ;;  %v6076_v13 = vld [vmem:[#allocation3 + $0x151] sm:$0xff] }
 0x42f   : > { %v2651_v20 = vadd.f32 %v2650_v39, %v2538_v6  ;;  %v2769_v22 = vpop.f32.mrf.mxu0  ;;  %v2102_v39 = vld [vmem:[#allocation3 + $0xd8] sm:$0xff] }
 0x431   : > { %2943 = vmatmul.f32.gmra.mxu2 %v6066_v16  ;;  %v6069_v5 = vadd.f32 %v2763_v11, %v2651_v20  ;;  %v2312_v11 = vld [vmem:[%s6436_s3 + $0x400] sm:$0xff]  ;;  %v6082_v20 = vld [vmem:[#allocation3 + $0x9a] sm:$0xff] }
 0x432   : > { %v6071_v26 = vpop.f32.mrf.mxu1  ;;  %3172 = vmatmul.f32.gmra.mxu0 %v5895_v27  ;;  %3251 = vmatpush.msra.mxu1 %v2312_v11 }
 0x433   : > { %6568 = vst [vmem:[#allocation12_spill] sm:$0xff] %v6069_v5  ;;  %3068 = vmatmul.f32.gmra.mxu3 %v2102_v39  ;;  %v2103_v5 = vld [vmem:[#allocation3 + $0xe0] sm:$0xff] }
 0x434   : > { %6569 = vst [vmem:[#allocation21_spill] sm:$0xff] %v6071_v26  ;;  %v2540_v21 = vpop.f32.mrf.mxu2 }
 0x435   : > { %v2541_v2 = vadd.f32 %v2540_v21, %v2428_v62  ;;  %2878 = vmatmul.f32.gmra.mxu1 %v6076_v13  ;;  %v2662_v62 = vpop.f32.mrf.mxu3 }
 0x437   : > { %v2654_v6 = vadd.f32 %v2653_v51, %v2541_v2  ;;  %v2772_v59 = vpop.f32.mrf.mxu0  ;;  %v2431_v51 = vadd.f32 %v5550_v40, %v5819_v28  ;;  %v6092_v2 = vld [vmem:[#allocation3 + $0x159] sm:$0xff]  ;;  %v3575_v40 = vld [vmem:[%s6437_s4] ss:$0 sm:$0xff] }
 0x438   : > { %v2434_v28 = vadd.f32 %v3575_v40, %v5868_v12  ;;  %v2437_v12 = vadd.f32 %v3575_v40, %v5891_v34  ;;  %v2440_v34 = vadd.f32 %v3575_v40, %v5903_v25  ;;  %v2443_v25 = vadd.f32 %v3575_v40, %v5918_v49 }
 0x439   : > { %2946 = vmatmul.f32.gmra.mxu2 %v6082_v20  ;;  %v6085_v33 = vadd.f32 %v2766_v8, %v2654_v6  ;;  %v6095_v8 = vld [vmem:[#allocation3 + $0xaa] sm:$0xff] }
 0x43a   : > { %v6087_v27 = vpop.f32.mrf.mxu1  ;;  %3175 = vmatmul.f32.gmra.mxu0 %v5907_v60 }
 0x43b   : > { %6570 = vst [vmem:[#allocation22_spill] sm:$0xff] %v6085_v33  ;;  %3071 = vmatmul.f32.gmra.mxu3 %v2103_v5  ;;  %v6107_v5 = vld [vmem:[#allocation3 + $0x169] sm:$0xff] }
 0x43c   : > { %6571 = vst [vmem:[#allocation23_spill] sm:$0xff] %v6087_v27  ;;  %v2543_v21 = vpop.f32.mrf.mxu2  ;;  %v6122_v27 = vld [vmem:[#allocation3 + $0xc2] sm:$0xff] }
 0x43d   : > { %v2544_v39 = vadd.f32 %v2543_v21, %v2431_v51  ;;  %2881 = vmatmul.f32.gmra.mxu1 %v6092_v2 }
 0x43f   : > { %v2657_v11 = vadd.f32 %v2656_v1, %v2544_v39  ;;  %v2775_v26 = vpop.f32.mrf.mxu0  ;;  %v2665_v1 = vpop.f32.mrf.mxu3  ;;  %v2104_v39 = vld [vmem:[#allocation3 + $0xf0] sm:$0xff] }
 0x441   : > { %2949 = vmatmul.f32.gmra.mxu2 %v6095_v8  ;;  %v6098_v6 = vadd.f32 %v2769_v22, %v2657_v11 }
 0x442   : > { %v6100_v60 = vpop.f32.mrf.mxu1  ;;  %3178 = vmatmul.f32.gmra.mxu0 %v5923_v10 }
 0x443   : > { %6572 = vst [vmem:[#allocation24_spill] sm:$0xff] %v6098_v6  ;;  %3074 = vmatmul.f32.gmra.mxu3 %v2104_v39  ;;  %v6110_v6 = vld [vmem:[#allocation3 + $0xb2] sm:$0xff] }
 0x444   : > { %6573 = vst [vmem:[#allocation25_spill] sm:$0xff] %v6100_v60  ;;  %v2546_v51 = vpop.f32.mrf.mxu2 }
 0x445   : > { %v2547_v21 = vadd.f32 %v2546_v51, %v2434_v28  ;;  %2884 = vmatmul.f32.gmra.mxu1 %v6107_v5  ;;  %v6119_v28 = vld [vmem:[#allocation3 + $0x171] sm:$0xff] }
 0x447   : > { %v2660_v22 = vadd.f32 %v2659_v9, %v2547_v21  ;;  %v2778_v11 = vpop.f32.mrf.mxu0  ;;  %v2105_v9 = vld [vmem:[#allocation3 + $0xf8] sm:$0xff]  ;;  %v2668_v21 = vpop.f32.mrf.mxu3 }
 0x449   : > { %2952 = vmatmul.f32.gmra.mxu2 %v6110_v6  ;;  %v6113_v10 = vadd.f32 %v2772_v59, %v2660_v22 }
 0x44a   : > { %v6115_v33 = vpop.f32.mrf.mxu1  ;;  %3181 = vmatmul.f32.gmra.mxu0 %v5934_v3 }
 0x44b   : > { %6574 = vst [vmem:[#allocation26_spill] sm:$0xff] %v6113_v10  ;;  %3077 = vmatmul.f32.gmra.mxu3 %v2105_v9  ;;  %v6134_v9 = vld [vmem:[#allocation3 + $0xca] sm:$0xff] }
 0x44c   : > { %6575 = vst [vmem:[#allocation27_spill] sm:$0xff] %v6115_v33  ;;  %v2549_v60 = vpop.f32.mrf.mxu2 }
 0x44d   : > { %v2550_v51 = vadd.f32 %v2549_v60, %v2437_v12  ;;  %2887 = vmatmul.f32.gmra.mxu1 %v6119_v28  ;;  %v6131_v12 = vld [vmem:[#allocation3 + $0x181] sm:$0xff] }
 0x44f   : > { %v2663_v39 = vadd.f32 %v2662_v62, %v2550_v51  ;;  %v2781_v59 = vpop.f32.mrf.mxu0  ;;  %v2106_v62 = vld [vmem:[#allocation3 + $0x108] sm:$0xff]  ;;  %v3027_v33 = vpop.f32.mrf.mxu3 }
 0x451   : > { %2955 = vmatmul.f32.gmra.mxu2 %v6122_v27  ;;  %v6125_v22 = vadd.f32 %v2775_v26, %v2663_v39 }
 0x452   : > { %v6127_v3 = vpop.f32.mrf.mxu1  ;;  %3184 = vmatmul.f32.gmra.mxu0 %v5947_v19 }
 0x453   : > { %6576 = vst [vmem:[#allocation28_spill] sm:$0xff] %v6125_v22  ;;  %3080 = vmatmul.f32.gmra.mxu3 %v2106_v62  ;;  %v6146_v62 = vld [vmem:[#allocation3 + $0xda] sm:$0xff] }
 0x454   : > { %v2552_v60 = vpop.f32.mrf.mxu2 }
 0x455   : > { %v2553_v10 = vadd.f32 %v2552_v60, %v2440_v34  ;;  %2890 = vmatmul.f32.gmra.mxu1 %v6131_v12  ;;  %v6143_v60 = vld [vmem:[#allocation3 + $0x189] sm:$0xff] }
 0x457   : > { %v2666_v51 = vadd.f32 %v2665_v1, %v2553_v10  ;;  %v3140_v19 = vpop.f32.mrf.mxu0  ;;  %v2107_v1 = vld [vmem:[#allocation3 + $0x110] sm:$0xff]  ;;  %v3030_v49 = vpop.f32.mrf.mxu3 }
 0x459   : > { %2958 = vmatmul.f32.gmra.mxu2 %v6134_v9  ;;  %v6137_v26 = vadd.f32 %v2778_v11, %v2666_v51 }
 0x45a   : > { %v6139_v39 = vpop.f32.mrf.mxu1  ;;  %3187 = vmatmul.f32.gmra.mxu0 %v5960_v17  ;;  %v2802_v17 = vadd.f32 %v5929_v45, %v5576_v4  ;;  %v2805_v4 = vadd.f32 %v5942_v48, %v5591_v42  ;;  %v2808_v42 = vadd.f32 %v5955_v53, %v5615_v56  ;;  %v2811_v56 = vadd.f32 %v5971_v38, %v5633_v43 }
 0x45b   : > { %3083 = vmatmul.f32.gmra.mxu3 %v2107_v1  ;;  %v6157_v1 = vld [vmem:[#allocation3 + $0xe2] sm:$0xff]  ;;  %v2814_v43 = vadd.f32 %v5984_v24, %v5657_v14  ;;  %v2817_v14 = vadd.f32 %v6000_v47, %v5675_v7  ;;  %v2820_v7 = vadd.f32 %v6013_v58, %v5699_v44  ;;  %v2823_v44 = vadd.f32 %v6029_v30, %v5717_v61 }
 0x45c   : > { %v2555_v34 = vpop.f32.mrf.mxu2  ;;  %v2116_v61 = vld [vmem:[#allocation3 + $0x180] sm:$0xff] }
 0x45d   : > { %v2556_v22 = vadd.f32 %v2555_v34, %v2443_v25  ;;  %2893 = vmatmul.f32.gmra.mxu1 %v6143_v60  ;;  %v6243_v30 = vld [vmem:[#allocation3 + $0x142] sm:$0xff] }
 0x45f   : > { %v2669_v10 = vadd.f32 %v2668_v21, %v2556_v22  ;;  %v3143_v25 = vpop.f32.mrf.mxu0  ;;  %v2108_v21 = vld [vmem:[#allocation3 + $0x120] sm:$0xff] }
 0x461   : > { %2961 = vmatmul.f32.gmra.mxu2 %v6146_v62  ;;  %v6149_v11 = vadd.f32 %v2781_v59, %v2669_v10 }
 0x462   : > { %v6151_v51 = vpop.f32.mrf.mxu1  ;;  %3190 = vmatmul.f32.gmra.mxu0 %v5976_v41  ;;  %v3033_v41 = vpop.f32.mrf.mxu3 }
 0x463   : > { %3086 = vmatmul.f32.gmra.mxu3 %v2108_v21 }
 0x464   : > { %v2914_v40 = vpop.f32.mrf.mxu2 }
 0x465   : > { %v2915_v34 = vadd.f32 %v2914_v40, %v2802_v17  ;;  %3252 = vmatmul.f32.vlgmr.msra.gmra.mxu1 %v5950_v54  ;;  %v2109_v54 = vld [vmem:[#allocation3 + $0x128] sm:$0xff] }
 0x467   : > { %v3028_v22 = vadd.f32 %v3027_v33, %v2915_v34  ;;  %v3146_v33 = vpop.f32.mrf.mxu0  ;;  %v6168_v34 = vld [vmem:[#allocation3 + $0xf2] sm:$0xff] }
 0x469   : > { %2964 = vmatmul.f32.gmra.mxu2 %v6157_v1  ;;  %v6160_v59 = vadd.f32 %v3140_v19, %v3028_v22 }
 0x46a   : > { %v6162_v10 = vpop.f32.mrf.mxu1  ;;  %3193 = vmatmul.f32.gmra.mxu0 %v5989_v23  ;;  %v3036_v22 = vpop.f32.mrf.mxu3 }
 0x46b   : > { %3089 = vmatmul.f32.gmra.mxu3 %v2109_v54  ;;  %v6190_v54 = vld [vmem:[#allocation3 + $0x10a] sm:$0xff] }
 0x46c   : > { %v2917_v45 = vpop.f32.mrf.mxu2 }
 0x46d   : > { %v2918_v17 = vadd.f32 %v2917_v45, %v2805_v4  ;;  %3255 = vmatmul.f32.gmra.mxu1 %v5966_v55  ;;  %v2110_v55 = vld [vmem:[#allocation3 + $0x138] sm:$0xff] }
 0x46e   : > { %v6179_v45 = vld [vmem:[#allocation3 + $0xfa] sm:$0xff] }
 0x46f   : > { %v3031_v40 = vadd.f32 %v3030_v49, %v2918_v17  ;;  %v3149_v4 = vpop.f32.mrf.mxu0 }
 0x471   : > { %2967 = vmatmul.f32.gmra.mxu2 %v6168_v34  ;;  %v6171_v19 = vadd.f32 %v3143_v25, %v3031_v40 }
 0x472   : > { %v6173_v21 = vpop.f32.mrf.mxu1  ;;  %3196 = vmatmul.f32.gmra.mxu0 %v6005_v18  ;;  %v2111_v18 = vld [vmem:[#allocation3 + $0x140] sm:$0xff]  ;;  %v3039_v40 = vpop.f32.mrf.mxu3 }
 0x473   : > { %3092 = vmatmul.f32.gmra.mxu3 %v2110_v55  ;;  %v6201_v55 = vld [vmem:[#allocation3 + $0x112] sm:$0xff] }
 0x474   : > { %v2920_v48 = vpop.f32.mrf.mxu2 }
 0x475   : > { %v2921_v23 = vadd.f32 %v2920_v48, %v2808_v42  ;;  %3258 = vmatmul.f32.gmra.mxu1 %v5979_v31 }
 0x477   : > { %v3034_v49 = vadd.f32 %v3033_v41, %v2921_v23  ;;  %v3152_v42 = vpop.f32.mrf.mxu0 }
 0x479   : > { %2970 = vmatmul.f32.gmra.mxu2 %v6179_v45  ;;  %v6182_v25 = vadd.f32 %v3146_v33, %v3034_v49 }
 0x47a   : > { %v6184_v17 = vpop.f32.mrf.mxu1  ;;  %3199 = vmatmul.f32.gmra.mxu0 %v6018_v50  ;;  %v2112_v50 = vld [vmem:[#allocation3 + $0x150] sm:$0xff] }
 0x47b   : > { %3095 = vmatmul.f32.gmra.mxu3 %v2111_v18 }
 0x47c   : > { %v2923_v53 = vpop.f32.mrf.mxu2 }
 0x47d   : > { %v2924_v31 = vadd.f32 %v2923_v53, %v2811_v56  ;;  %3261 = vmatmul.f32.gmra.mxu1 %v5995_v35  ;;  %v2113_v56 = vld [vmem:[#allocation3 + $0x158] sm:$0xff] }
 0x47f   : > { %v3037_v41 = vadd.f32 %v3036_v22, %v2924_v31  ;;  %v3155_v24 = vpop.f32.mrf.mxu0  ;;  %v6212_v31 = vld [vmem:[#allocation3 + $0x122] sm:$0xff] }
 0x481   : > { %2973 = vmatmul.f32.gmra.mxu2 %v6190_v54  ;;  %v6193_v33 = vadd.f32 %v3149_v4, %v3037_v41  ;;  %v3042_v4 = vpop.f32.mrf.mxu3 }
 0x482   : > { %v6195_v48 = vpop.f32.mrf.mxu1  ;;  %3202 = vmatmul.f32.gmra.mxu0 %v6034_v0 }
 0x483   : > { %3098 = vmatmul.f32.gmra.mxu3 %v2112_v50 }
 0x484   : > { %v2926_v38 = vpop.f32.mrf.mxu2 }
 0x485   : > { %v2927_v35 = vadd.f32 %v2926_v38, %v2814_v43  ;;  %3264 = vmatmul.f32.gmra.mxu1 %v6008_v29  ;;  %v6223_v38 = vld [vmem:[#allocation3 + $0x12a] sm:$0xff] }
 0x487   : > { %v3040_v23 = vadd.f32 %v3039_v40, %v2927_v35 }
 0x489   : > { %2976 = vmatmul.f32.gmra.mxu2 %v6201_v55  ;;  %v6204_v22 = vadd.f32 %v3152_v42, %v3040_v23  ;;  %v3158_v42 = vpop.f32.mrf.mxu0 }
 0x48a   : > { %v6206_v49 = vpop.f32.mrf.mxu1  ;;  %3205 = vmatmul.f32.gmra.mxu0 %v6047_v52  ;;  %v3045_v52 = vpop.f32.mrf.mxu3 }
 0x48b   : > { %3101 = vmatmul.f32.gmra.mxu3 %v2113_v56  ;;  %v6250_v56 = vld [vmem:[#allocation3 + $0x152] sm:$0xff] }
 0x48c   : > { %v2929_v0 = vpop.f32.mrf.mxu2 }
 0x48d   : > { %v2930_v29 = vadd.f32 %v2929_v0, %v2817_v14  ;;  %3267 = vmatmul.f32.gmra.mxu1 %v6024_v63  ;;  %v2114_v63 = vld [vmem:[#allocation3 + $0x168] sm:$0xff] }
 0x48f   : > { %v3043_v53 = vadd.f32 %v3042_v4, %v2930_v29 }
 0x491   : > { %2979 = vmatmul.f32.gmra.mxu2 %v6212_v31  ;;  %v6215_v18 = vadd.f32 %v3155_v24, %v3043_v53  ;;  %v3161_v14 = vpop.f32.mrf.mxu0  ;;  %v6234_v24 = vld [vmem:[#allocation3 + $0x13a] sm:$0xff] }
 0x492   : > { %v6217_v41 = vpop.f32.mrf.mxu1  ;;  %3208 = vmatmul.f32.gmra.mxu0 %v6063_v37  ;;  %v3048_v23 = vpop.f32.mrf.mxu3  ;;  %v6257_v53 = vld [vmem:[#allocation3 + $0x15a] sm:$0xff] }
 0x493   : > { %3104 = vmatmul.f32.gmra.mxu3 %v2114_v63  ;;  %v3349_v63 = vld [vmem:[%s3767_s17] sm:$0xff] }
 0x494   : > { %v2932_v47 = vpop.f32.mrf.mxu2 }
 0x495   : > { %v2933_v40 = vadd.f32 %v2932_v47, %v2820_v7  ;;  %3270 = vmatmul.f32.gmra.mxu1 %v6037_v57  ;;  %v2115_v57 = vld [vmem:[#allocation3 + $0x170] sm:$0xff] }
 0x496   : > { %v6264_v7 = vld [vmem:[#allocation3 + $0x16a] sm:$0xff]  ;;  %v6271_v47 = vld [vmem:[#allocation3 + $0x172] sm:$0xff] }
 0x497   : > { %v3046_v43 = vadd.f32 %v3045_v52, %v2933_v40  ;;  %v6277_v52 = vld [vmem:[#allocation3 + $0x182] sm:$0xff] }
 0x499   : > { %2982 = vmatmul.f32.gmra.mxu2 %v6223_v38  ;;  %v6226_v35 = vadd.f32 %v3158_v42, %v3046_v43 }
 0x49a   : > { %v6228_v50 = vpop.f32.mrf.mxu1  ;;  %3211 = vmatmul.f32.gmra.mxu0 %v6076_v13  ;;  %v2117_v13 = vld [vmem:[#allocation3 + $0x188] sm:$0xff] }
 0x49b   : > { %3107 = vmatmul.f32.gmra.mxu3 %v2115_v57  ;;  %v3164_v57 = vpop.f32.mrf.mxu0 }
 0x49c   : > { %v2935_v58 = vpop.f32.mrf.mxu2 }
 0x49d   : > { %v2936_v37 = vadd.f32 %v2935_v58, %v2823_v44  ;;  %3273 = vmatmul.f32.gmra.mxu1 %v6053_v36  ;;  %v3350_v44 = vld [vmem:[%s3767_s17 + $0x8] sm:$0xff] }
 0x49f   : > { %v3049_v4 = vadd.f32 %v3048_v23, %v2936_v37  ;;  %v3051_v37 = vpop.f32.mrf.mxu3 }
 0x4a1   : > { %2985 = vmatmul.f32.gmra.mxu2 %v6234_v24  ;;  %v6237_v0 = vadd.f32 %v3161_v14, %v3049_v4  ;;  %v3351_v14 = vld [vmem:[%s3767_s17 + $0x10] sm:$0xff] }
 0x4a2   : > { %v6239_v29 = vpop.f32.mrf.mxu1  ;;  %3214 = vmatmul.f32.gmra.mxu0 %v6092_v2 }
 0x4a3   : > { %3110 = vmatmul.f32.gmra.mxu3 %v2116_v61 }
 0x4a4   : > { %v2938_v43 = vpop.f32.mrf.mxu2 }
 0x4a5   : > { %3276 = vmatmul.f32.gmra.mxu1 %v6066_v16  ;;  %v2118_v16 = vld [vmem:[#allocation3 + $0x198] sm:$0xff] }
 0x4a9   : > { %2988 = vmatmul.f32.gmra.mxu2 %v6243_v30 }
 0x4aa   : > { %v6246_v36 = vpop.f32.mrf.mxu1  ;;  %3217 = vmatmul.f32.gmra.mxu0 %v6107_v5 }
 0x4ab   : > { %3113 = vmatmul.f32.gmra.mxu3 %v2117_v13  ;;  %v3054_v13 = vpop.f32.mrf.mxu3 }
 0x4ac   : > { %v2941_v23 = vpop.f32.mrf.mxu2 }
 0x4ad   : > { %3279 = vmatmul.f32.gmra.mxu1 %v6082_v20  ;;  %v3576_v20 = vld [vmem:[#allocation2 + $0x8] sm:$0xff] }
 0x4b1   : > { %2991 = vmatmul.f32.gmra.mxu2 %v6250_v56 }
 0x4b2   : > { %v6253_v2 = vpop.f32.mrf.mxu1  ;;  %3220 = vmatmul.f32.gmra.mxu0 %v6119_v28 }
 0x4b3   : > { %3116 = vmatmul.f32.gmra.mxu3 %v2118_v16 }
 0x4b5   : > { %3282 = vmatmul.f32.gmra.mxu1 %v6095_v8  ;;  %v2150_v8 = vld [vmem:[#allocation3 + $0x199] sm:$0xff] }
 0x4b9   : > { %2994 = vmatmul.f32.gmra.mxu2 %v6257_v53 }
 0x4ba   : > { %v6260_v5 = vpop.f32.mrf.mxu1  ;;  %3223 = vmatmul.f32.gmra.mxu0 %v6131_v12 }
 0x4bb   : > { %3119 = vmatmul.f32.gmra.mxu3 %v3576_v20  ;;  %v3167_v20 = vpop.f32.mrf.mxu0 }
 0x4bd   : > { %3285 = vmatmul.f32.gmra.mxu1 %v6110_v6  ;;  %v2151_v6 = vld [vmem:[#allocation3 + $0x1a1] sm:$0xff] }
 0x4c1   : > { %2997 = vmatmul.f32.gmra.mxu2 %v6264_v7 }
 0x4c2   : > { %v6267_v28 = vpop.f32.mrf.mxu1  ;;  %3226 = vmatmul.f32.gmra.mxu0 %v6143_v60 }
 0x4c5   : > { %3288 = vmatmul.f32.gmra.mxu1 %v6122_v27  ;;  %v6283_v27 = vld [vmem:[#allocation3 + $0x18a] sm:$0xff] }
 0x4c9   : > { %3000 = vmatmul.f32.gmra.mxu2 %v6271_v47 }
 0x4ca   : > { %v6274_v12 = vpop.f32.mrf.mxu1  ;;  %3229 = vmatmul.f32.gmra.mxu0 %v2150_v8  ;;  %v2944_v8 = vpop.f32.mrf.mxu2 }
 0x4cd   : > { %3291 = vmatmul.f32.gmra.mxu1 %v6134_v9 }
 0x4d1   : > { %3003 = vmatmul.f32.gmra.mxu2 %v6277_v52 }
 0x4d2   : > { %v6280_v60 = vpop.f32.mrf.mxu1  ;;  %3232 = vmatmul.f32.gmra.mxu0 %v2151_v6 }
 0x4d5   : > { %3294 = vmatmul.f32.gmra.mxu1 %v6146_v62 }
 0x4d9   : > { %3006 = vmatmul.f32.gmra.mxu2 %v6283_v27 }
 0x4da   : > { %v6286_v40 = vpop.f32.mrf.mxu1 }
 0x4dd   : > { %3297 = vmatmul.f32.gmra.mxu1 %v6157_v1 }
 0x4e2   : > { %v3253_v9 = vpop.f32.mrf.mxu1 }
 0x4e3   : > { %v3254_v42 = vadd.f32 %v3253_v9, %v6160_v59  ;;  %v3057_v9 = vpop.f32.mrf.mxu3 }
 0x4e5   : > { %v3381_v62 = vadd.f32 %v3349_v63, %v3254_v42  ;;  %3300 = vmatmul.f32.gmra.mxu1 %v6168_v34  ;;  %v3353_v63 = vld [vmem:[%s3767_s17 + $0x20] sm:$0xff]  ;;  %v3170_v42 = vpop.f32.mrf.mxu0 }
 0x4e7   : > { %3413 = vst [vmem:[%s6296_s14] sm:$0xff] %v3381_v62 }
 0x4ea   : > { %v3256_v1 = vpop.f32.mrf.mxu1 }
 0x4eb   : > { %v3257_v59 = vadd.f32 %v3256_v1, %v6171_v19  ;;  %v3352_v19 = vld [vmem:[%s3767_s17 + $0x18] sm:$0xff]  ;;  %v2947_v1 = vpop.f32.mrf.mxu2 }
 0x4ed   : > { %v3382_v58 = vadd.f32 %v3350_v44, %v3257_v59  ;;  %3303 = vmatmul.f32.gmra.mxu1 %v6179_v45 }
 0x4ef   : > { %3414 = vst [vmem:[%s6296_s14 + $0x8] sm:$0xff] %v3382_v58 }
 0x4f2   : > { %v3259_v4 = vpop.f32.mrf.mxu1 }
 0x4f3   : > { %v3260_v34 = vadd.f32 %v3259_v4, %v6182_v25  ;;  %v3173_v4 = vpop.f32.mrf.mxu0 }
 0x4f5   : > { %v3383_v61 = vadd.f32 %v3351_v14, %v3260_v34  ;;  %3306 = vmatmul.f32.gmra.mxu1 %v6190_v54  ;;  %v3355_v34 = vld [vmem:[%s3767_s17 + $0x30] sm:$0xff] }
 0x4f7   : > { %3415 = vst [vmem:[%s6296_s14 + $0x10] sm:$0xff] %v3383_v61 }
 0x4fa   : > { %v3262_v16 = vpop.f32.mrf.mxu1 }
 0x4fb   : > { %v3263_v45 = vadd.f32 %v3262_v16, %v6193_v33  ;;  %v3354_v33 = vld [vmem:[%s3767_s17 + $0x28] sm:$0xff] }
 0x4fd   : > { %v3384_v6 = vadd.f32 %v3352_v19, %v3263_v45  ;;  %3309 = vmatmul.f32.gmra.mxu1 %v6201_v55  ;;  %v3060_v55 = vpop.f32.mrf.mxu3 }
 0x4ff   : > { %3416 = vst [vmem:[%s6296_s14 + $0x18] sm:$0xff] %v3384_v6 }
 0x502   : > { %v3265_v25 = vpop.f32.mrf.mxu1 }
 0x503   : > { %v3266_v54 = vadd.f32 %v3265_v25, %v6204_v22  ;;  %v2950_v22 = vpop.f32.mrf.mxu2  ;;  %v3356_v25 = vld [vmem:[%s3767_s17 + $0x38] sm:$0xff] }
 0x505   : > { %v3385_v62 = vadd.f32 %v3353_v63, %v3266_v54  ;;  %3312 = vmatmul.f32.gmra.mxu1 %v6212_v31  ;;  %v3063_v16 = vpop.f32.mrf.mxu3 }
 0x507   : > { %3417 = vst [vmem:[%s6296_s14 + $0x20] sm:$0xff] %v3385_v62 }
 0x50a   : > { %v3268_v44 = vpop.f32.mrf.mxu1 }
 0x50b   : > { %v3269_v59 = vadd.f32 %v3268_v44, %v6215_v18  ;;  %v2826_v18 = vadd.f32 %v6042_v15, %v5741_v46  ;;  %v2953_v45 = vpop.f32.mrf.mxu2 }
 0x50d   : > { %v3386_v58 = vadd.f32 %v3354_v33, %v3269_v59  ;;  %3315 = vmatmul.f32.gmra.mxu1 %v6223_v38  ;;  %v2939_v19 = vadd.f32 %v2938_v43, %v2826_v18  ;;  %v3176_v38 = vpop.f32.mrf.mxu0  ;;  %v3066_v44 = vpop.f32.mrf.mxu3  ;;  %v3357_v33 = vld [vmem:[%s3767_s17 + $0x40] sm:$0xff] }
 0x50f   : > { %3418 = vst [vmem:[%s6296_s14 + $0x28] sm:$0xff] %v3386_v58  ;;  %v3052_v54 = vadd.f32 %v3051_v37, %v2939_v19  ;;  %v6578_v37 = vld [vmem:[#allocation13_spill] sm:$0xff] }
 0x511   : > { %v3165_v15 = vadd.f32 %v3164_v57, %v3052_v54  ;;  %v3358_v57 = vld [vmem:[%s3767_s17 + $0x48] sm:$0xff]  ;;  %v6580_v54 = vld [vmem:[#allocation16_spill] sm:$0xff] }
 0x512   : > { %v3271_v14 = vpop.f32.mrf.mxu1 }
 0x513   : > { %v3272_v61 = vadd.f32 %v3271_v14, %v6226_v35  ;;  %v6577_v35 = vld [vmem:[#allocation4_spill] sm:$0xff]  ;;  %v2956_v14 = vpop.f32.mrf.mxu2 }
 0x515   : > { %v3387_v31 = vadd.f32 %v3355_v34, %v3272_v61  ;;  %3318 = vmatmul.f32.gmra.mxu1 %v6234_v24  ;;  %v2829_v24 = vadd.f32 %v6058_v32, %v6577_v35  ;;  %v3179_v59 = vpop.f32.mrf.mxu0 }
 0x517   : > { %3419 = vst [vmem:[%s6296_s14 + $0x30] sm:$0xff] %v3387_v31  ;;  %v2942_v46 = vadd.f32 %v2941_v23, %v2829_v24  ;;  %v3069_v23 = vpop.f32.mrf.mxu3 }
 0x519   : > { %v3055_v34 = vadd.f32 %v3054_v13, %v2942_v46 }
 0x51a   : > { %v3274_v6 = vpop.f32.mrf.mxu1 }
 0x51b   : > { %v3275_v63 = vadd.f32 %v3274_v6, %v6237_v0  ;;  %v3168_v31 = vadd.f32 %v3167_v20, %v3055_v34  ;;  %v2959_v13 = vpop.f32.mrf.mxu2  ;;  %v3359_v20 = vld [vmem:[%s3767_s17 + $0x50] sm:$0xff] }
 0x51d   : > { %v3388_v62 = vadd.f32 %v3356_v25, %v3275_v63  ;;  %3321 = vmatmul.f32.gmra.mxu1 %v6243_v30  ;;  %v6579_v30 = vld [vmem:[#allocation21_spill] sm:$0xff]  ;;  %v3182_v25 = vpop.f32.mrf.mxu0 }
 0x51e   : > { %v2832_v61 = vadd.f32 %v6579_v30, %v6578_v37 }
 0x51f   : > { %3420 = vst [vmem:[%s6296_s14 + $0x38] sm:$0xff] %v3388_v62 }
 0x520   : > { %v2945_v32 = vadd.f32 %v2944_v8, %v2832_v61 }
 0x522   : > { %v3277_v43 = vpop.f32.mrf.mxu1  ;;  %v3058_v6 = vadd.f32 %v3057_v9, %v2945_v32  ;;  %v6582_v9 = vld [vmem:[#allocation5_spill] sm:$0xff] }
 0x523   : > { %v3278_v58 = vadd.f32 %v3277_v43, %v3165_v15  ;;  %v3072_v15 = vpop.f32.mrf.mxu3 }
 0x524   : > { %v3171_v8 = vadd.f32 %v3170_v42, %v3058_v6  ;;  %v3360_v42 = vld [vmem:[%s3767_s17 + $0x58] sm:$0xff] }
 0x525   : > { %v3389_v0 = vadd.f32 %v3357_v33, %v3278_v58  ;;  %3324 = vmatmul.f32.gmra.mxu1 %v6250_v56  ;;  %v6581_v56 = vld [vmem:[#allocation23_spill] sm:$0xff]  ;;  %v6583_v58 = vld [vmem:[#allocation25_spill] sm:$0xff]  ;;  %v3185_v34 = vpop.f32.mrf.mxu0 }
 0x526   : > { %v2835_v62 = vadd.f32 %v6581_v56, %v6580_v54 }
 0x527   : > { %3421 = vst [vmem:[%s6296_s14 + $0x40] sm:$0xff] %v3389_v0  ;;  %v2962_v0 = vpop.f32.mrf.mxu2 }
 0x528   : > { %v2948_v35 = vadd.f32 %v2947_v1, %v2835_v62 }
 0x52a   : > { %v3280_v18 = vpop.f32.mrf.mxu1  ;;  %v3061_v43 = vadd.f32 %v3060_v55, %v2948_v35 }
 0x52b   : > { %v3281_v19 = vadd.f32 %v3280_v18, %v3168_v31  ;;  %v3075_v55 = vpop.f32.mrf.mxu3  ;;  %v6584_v18 = vld [vmem:[#allocation14_spill] sm:$0xff] }
 0x52c   : > { %v3174_v1 = vadd.f32 %v3173_v4, %v3061_v43  ;;  %v3361_v4 = vld [vmem:[%s3767_s17 + $0x60] sm:$0xff] }
 0x52d   : > { %v3390_v63 = vadd.f32 %v3358_v57, %v3281_v19  ;;  %3327 = vmatmul.f32.gmra.mxu1 %v6257_v53  ;;  %v2838_v53 = vadd.f32 %v6583_v58, %v6582_v9  ;;  %v3188_v6 = vpop.f32.mrf.mxu0 }
 0x52f   : > { %3422 = vst [vmem:[%s6296_s14 + $0x48] sm:$0xff] %v3390_v63  ;;  %v2951_v37 = vadd.f32 %v2950_v22, %v2838_v53  ;;  %v2965_v22 = vpop.f32.mrf.mxu2 }
 0x531   : > { %v3064_v32 = vadd.f32 %v3063_v16, %v2951_v37  ;;  %v6586_v16 = vld [vmem:[#allocation6_spill] sm:$0xff] }
 0x532   : > { %v3283_v24 = vpop.f32.mrf.mxu1 }
 0x533   : > { %v3284_v46 = vadd.f32 %v3283_v24, %v3171_v8  ;;  %v3177_v63 = vadd.f32 %v3176_v38, %v3064_v32  ;;  %v3078_v8 = vpop.f32.mrf.mxu3 }
 0x535   : > { %v3391_v33 = vadd.f32 %v3359_v20, %v3284_v46  ;;  %3330 = vmatmul.f32.gmra.mxu1 %v6264_v7  ;;  %v6585_v7 = vld [vmem:[#allocation27_spill] sm:$0xff]  ;;  %v3362_v46 = vld [vmem:[%s3767_s17 + $0x68] sm:$0xff]  ;;  %v3191_v38 = vpop.f32.mrf.mxu0 }
 0x536   : > { %v2841_v57 = vadd.f32 %v6585_v7, %v6584_v18  ;;  %v2183_v7 = vld [vmem:[#allocation3 + $0x1a2] sm:$0xff] }
 0x537   : > { %3423 = vst [vmem:[%s6296_s14 + $0x50] sm:$0xff] %v3391_v33  ;;  %v2968_v33 = vpop.f32.mrf.mxu2 }
 0x538   : > { %v2954_v19 = vadd.f32 %v2953_v45, %v2841_v57 }
 0x53a   : > { %v3286_v30 = vpop.f32.mrf.mxu1  ;;  %v3067_v62 = vadd.f32 %v3066_v44, %v2954_v19  ;;  %v6587_v44 = vld [vmem:[#allocation15_spill] sm:$0xff] }
 0x53b   : > { %v3287_v61 = vadd.f32 %v3286_v30, %v3174_v1  ;;  %v2182_v1 = vld [vmem:[#allocation3 + $0x19a] sm:$0xff] }
 0x53c   : > { %v3180_v45 = vadd.f32 %v3179_v59, %v3067_v62  ;;  %v3363_v59 = vld [vmem:[%s3767_s17 + $0x70] sm:$0xff] }
 0x53d   : > { %v3392_v31 = vadd.f32 %v3360_v42, %v3287_v61  ;;  %3333 = vmatmul.f32.gmra.mxu1 %v6271_v47  ;;  %v2844_v47 = vadd.f32 %v6127_v3, %v6586_v16  ;;  %v3194_v61 = vpop.f32.mrf.mxu0 }
 0x53f   : > { %3424 = vst [vmem:[%s6296_s14 + $0x58] sm:$0xff] %v3392_v31  ;;  %v2957_v24 = vadd.f32 %v2956_v14, %v2844_v47  ;;  %v3081_v14 = vpop.f32.mrf.mxu3 }
 0x541   : > { %v3070_v9 = vadd.f32 %v3069_v23, %v2957_v24  ;;  %v2971_v23 = vpop.f32.mrf.mxu2 }
 0x542   : > { %v3289_v54 = vpop.f32.mrf.mxu1 }
 0x543   : > { %v3290_v56 = vadd.f32 %v3289_v54, %v3177_v63  ;;  %v3183_v53 = vadd.f32 %v3182_v25, %v3070_v9  ;;  %v6589_v54 = vld [vmem:[#allocation8_spill] sm:$0xff] }
 0x545   : > { %v3393_v35 = vadd.f32 %v3361_v4, %v3290_v56  ;;  %3336 = vmatmul.f32.gmra.mxu1 %v6277_v52  ;;  %v2847_v52 = vadd.f32 %v6139_v39, %v6587_v44  ;;  %v2853_v4 = vadd.f32 %v6162_v10, %v6589_v54  ;;  %v3197_v56 = vpop.f32.mrf.mxu0  ;;  %v3366_v44 = vld [vmem:[%s3767_s17 + $0x88] sm:$0xff] }
 0x547   : > { %3425 = vst [vmem:[%s6296_s14 + $0x60] sm:$0xff] %v3393_v35  ;;  %v2960_v3 = vadd.f32 %v2959_v13, %v2847_v52  ;;  %v3364_v13 = vld [vmem:[%s3767_s17 + $0x78] sm:$0xff]  ;;  %v3084_v19 = vpop.f32.mrf.mxu3  ;;  %v3365_v35 = vld [vmem:[%s3767_s17 + $0x80] sm:$0xff] }
 0x549   : > { %v3073_v42 = vadd.f32 %v3072_v15, %v2960_v3  ;;  %v2974_v62 = vpop.f32.mrf.mxu2  ;;  %v6591_v3 = vld [vmem:[#allocation9_spill] sm:$0xff] }
 0x54a   : > { %v3292_v20 = vpop.f32.mrf.mxu1 }
 0x54b   : > { %v3293_v43 = vadd.f32 %v3292_v20, %v3180_v45  ;;  %v3186_v18 = vadd.f32 %v3185_v34, %v3073_v42 }
 0x54d   : > { %v3394_v58 = vadd.f32 %v3362_v46, %v3293_v43  ;;  %3339 = vmatmul.f32.gmra.mxu1 %v6283_v27  ;;  %v6588_v27 = vld [vmem:[#allocation7_spill] sm:$0xff]  ;;  %v3200_v10 = vpop.f32.mrf.mxu0 }
 0x54e   : > { %v2850_v31 = vadd.f32 %v6151_v51, %v6588_v27  ;;  %v2966_v51 = vadd.f32 %v2965_v22, %v2853_v4  ;;  %v6592_v27 = vld [vmem:[#allocation17_spill] sm:$0xff]  ;;  %v3369_v4 = vld [vmem:[%s3767_s17 + $0xa0] sm:$0xff] }
 0x54f   : > { %3426 = vst [vmem:[%s6296_s14 + $0x68] sm:$0xff] %v3394_v58  ;;  %v3087_v45 = vpop.f32.mrf.mxu3 }
 0x550   : > { %v2963_v39 = vadd.f32 %v2962_v0, %v2850_v31  ;;  %v3079_v47 = vadd.f32 %v3078_v8, %v2966_v51  ;;  %v2859_v8 = vadd.f32 %v6184_v17, %v6591_v3  ;;  %v3371_v3 = vld [vmem:[%s3767_s17 + $0xb0] sm:$0xff] }
 0x551   : > { %v2977_v9 = vpop.f32.mrf.mxu2 }
 0x552   : > { %v3295_v37 = vpop.f32.mrf.mxu1  ;;  %v3076_v63 = vadd.f32 %v3075_v55, %v2963_v39  ;;  %v6590_v55 = vld [vmem:[#allocation18_spill] sm:$0xff]  ;;  %v3192_v43 = vadd.f32 %v3191_v38, %v3079_v47 }
 0x553   : > { %v3296_v30 = vadd.f32 %v3295_v37, %v3183_v53  ;;  %v2856_v20 = vadd.f32 %v6173_v21, %v6590_v55  ;;  %v2972_v37 = vadd.f32 %v2971_v23, %v2859_v8  ;;  %v3370_v55 = vld [vmem:[%s3767_s17 + $0xa8] sm:$0xff] }
 0x554   : > { %v3189_v0 = vadd.f32 %v3188_v6, %v3076_v63  ;;  %v6593_v63 = vld [vmem:[#allocation10_spill] sm:$0xff] }
 0x555   : > { %v3395_v32 = vadd.f32 %v3363_v59, %v3296_v30  ;;  %3342 = vmatmul.f32.gmra.mxu1 %v2182_v1  ;;  %v2969_v46 = vadd.f32 %v2968_v33, %v2856_v20  ;;  %v3367_v1 = vld [vmem:[%s3767_s17 + $0x90] sm:$0xff]  ;;  %v3203_v33 = vpop.f32.mrf.mxu0  ;;  %v3085_v42 = vadd.f32 %v3084_v19, %v2972_v37  ;;  %v2865_v19 = vadd.f32 %v6206_v49, %v6593_v63 }
 0x557   : > { %3427 = vst [vmem:[%s6296_s14 + $0x70] sm:$0xff] %v3395_v32  ;;  %v3082_v6 = vadd.f32 %v3081_v14, %v2969_v46  ;;  %v3090_v53 = vpop.f32.mrf.mxu3  ;;  %v2862_v14 = vadd.f32 %v6195_v48, %v6592_v27  ;;  %v3198_v17 = vadd.f32 %v3197_v56, %v3085_v42 }
 0x559   : > { %v3195_v21 = vadd.f32 %v3194_v61, %v3082_v6  ;;  %v2980_v38 = vpop.f32.mrf.mxu2  ;;  %v2975_v31 = vadd.f32 %v2974_v62, %v2862_v14 }
 0x55a   : > { %v3298_v25 = vpop.f32.mrf.mxu1 }
 0x55b   : > { %v3299_v57 = vadd.f32 %v3298_v25, %v3186_v18  ;;  %v3368_v25 = vld [vmem:[%s3767_s17 + $0x98] sm:$0xff]  ;;  %v3088_v61 = vadd.f32 %v3087_v45, %v2975_v31 }
 0x55d   : > { %v3396_v15 = vadd.f32 %v3364_v13, %v3299_v57  ;;  %3345 = vmatmul.f32.gmra.mxu1 %v2183_v7  ;;  %v3206_v13 = vpop.f32.mrf.mxu0  ;;  %v3201_v48 = vadd.f32 %v3200_v10, %v3088_v61  ;;  %v3373_v61 = vld [vmem:[%s3767_s17 + $0xc0] sm:$0xff] }
 0x55f   : > { %3428 = vst [vmem:[%s6296_s14 + $0x78] sm:$0xff] %v3396_v15  ;;  %v3093_v39 = vpop.f32.mrf.mxu3  ;;  %v2978_v15 = vadd.f32 %v2977_v9, %v2865_v19  ;;  %v6595_v9 = vld [vmem:[#allocation11_spill] sm:$0xff] }
 0x561   : > { %v2983_v57 = vpop.f32.mrf.mxu2  ;;  %v3091_v51 = vadd.f32 %v3090_v53, %v2978_v15  ;;  %v6598_v15 = vld [vmem:[#allocation22_spill] sm:$0xff] }
 0x562   : > { %v3301_v34 = vpop.f32.mrf.mxu1 }
 0x563   : > { %v3302_v16 = vadd.f32 %v3301_v34, %v3189_v0  ;;  %v6594_v34 = vld [vmem:[#allocation19_spill] sm:$0xff]  ;;  %v3204_v49 = vadd.f32 %v3203_v33, %v3091_v51 }
 0x565   : > { %v3397_v24 = vadd.f32 %v3365_v35, %v3302_v16  ;;  %v2868_v35 = vadd.f32 %v6217_v41, %v6594_v34  ;;  %v3209_v16 = vpop.f32.mrf.mxu0 }
 0x567   : > { %3429 = vst [vmem:[%s6296_s14 + $0x80] sm:$0xff] %v3397_v24  ;;  %v3096_v56 = vpop.f32.mrf.mxu3  ;;  %v2981_v24 = vadd.f32 %v2980_v38, %v2868_v35  ;;  %v3372_v38 = vld [vmem:[%s3767_s17 + $0xb8] sm:$0xff]  ;;  %v6599_v35 = vld [vmem:[#allocation24_spill] sm:$0xff] }
 0x569   : > { %v2986_v47 = vpop.f32.mrf.mxu2  ;;  %v3094_v46 = vadd.f32 %v3093_v39, %v2981_v24 }
 0x56a   : > { %v3304_v58 = vpop.f32.mrf.mxu1 }
 0x56b   : > { %v3305_v22 = vadd.f32 %v3304_v58, %v3192_v43  ;;  %v2871_v58 = vadd.f32 %v6228_v50, %v6595_v9  ;;  %v6600_v9 = vld [vmem:[#allocation26_spill] sm:$0xff] }
 0x56d   : > { %v3398_v52 = vadd.f32 %v3366_v44, %v3305_v22  ;;  %v2984_v44 = vadd.f32 %v2983_v57, %v2871_v58  ;;  %v3212_v41 = vpop.f32.mrf.mxu0  ;;  %v3207_v22 = vadd.f32 %v3206_v13, %v3094_v46  ;;  %v2886_v58 = vadd.f32 %v6267_v28, %v6600_v9 }
 0x56f   : > { %3430 = vst [vmem:[%s6296_s14 + $0x88] sm:$0xff] %v3398_v52  ;;  %v3099_v43 = vpop.f32.mrf.mxu3  ;;  %v3097_v53 = vadd.f32 %v3096_v56, %v2984_v44 }
 0x571   : > { %v2989_v6 = vpop.f32.mrf.mxu2  ;;  %v3210_v50 = vadd.f32 %v3209_v16, %v3097_v53  ;;  %v2883_v16 = vadd.f32 %v6260_v5, %v6599_v35 }
 0x572   : > { %v3307_v59 = vpop.f32.mrf.mxu1 }
 0x573   : > { %v3308_v30 = vadd.f32 %v3307_v59, %v3195_v21  ;;  %v6596_v21 = vld [vmem:[#allocation20_spill] sm:$0xff] }
 0x574   : > { %v2874_v59 = vadd.f32 %v6239_v29, %v6596_v21 }
 0x575   : > { %v3399_v32 = vadd.f32 %v3367_v1, %v3308_v30  ;;  %v3215_v42 = vpop.f32.mrf.mxu0 }
 0x576   : > { %v2987_v33 = vadd.f32 %v2986_v47, %v2874_v59 }
 0x577   : > { %3431 = vst [vmem:[%s6296_s14 + $0x90] sm:$0xff] %v3399_v32  ;;  %v3102_v1 = vpop.f32.mrf.mxu3 }
 0x578   : > { %v3100_v14 = vadd.f32 %v3099_v43, %v2987_v33 }
 0x579   : > { %v2992_v27 = vpop.f32.mrf.mxu2 }
 0x57a   : > { %v3310_v18 = vpop.f32.mrf.mxu1  ;;  %v3213_v29 = vadd.f32 %v3212_v41, %v3100_v14  ;;  %v2892_v14 = vadd.f32 %v6280_v60, %v6137_v26 }
 0x57b   : > { %v3311_v23 = vadd.f32 %v3310_v18, %v3198_v17  ;;  %v6597_v17 = vld [vmem:[#allocation12_spill] sm:$0xff] }
 0x57c   : > { %v2877_v39 = vadd.f32 %v6246_v36, %v6597_v17 }
 0x57d   : > { %v3400_v7 = vadd.f32 %v3368_v25, %v3311_v23  ;;  %v3218_v57 = vpop.f32.mrf.mxu0 }
 0x57e   : > { %v2990_v18 = vadd.f32 %v2989_v6, %v2877_v39 }
 0x57f   : > { %3432 = vst [vmem:[%s6296_s14 + $0x98] sm:$0xff] %v3400_v7  ;;  %v3105_v25 = vpop.f32.mrf.mxu3 }
 0x580   : > { %v3103_v7 = vadd.f32 %v3102_v1, %v2990_v18  ;;  %v3378_v18 = vld [vmem:[%s3767_s17 + $0xe8] sm:$0xff] }
 0x581   : > { %v2995_v19 = vpop.f32.mrf.mxu2 }
 0x582   : > { %v3313_v54 = vpop.f32.mrf.mxu1  ;;  %v3216_v36 = vadd.f32 %v3215_v42, %v3103_v7  ;;  %v2895_v7 = vadd.f32 %v6286_v40, %v6149_v11 }
 0x583   : > { %v3314_v62 = vadd.f32 %v3313_v54, %v3201_v48  ;;  %v2880_v48 = vadd.f32 %v6253_v2, %v6598_v15 }
 0x585   : > { %v3401_v0 = vadd.f32 %v3369_v4, %v3314_v62  ;;  %v2993_v54 = vadd.f32 %v2992_v27, %v2880_v48  ;;  %v3374_v62 = vld [vmem:[%s3767_s17 + $0xc8] sm:$0xff]  ;;  %v3221_v47 = vpop.f32.mrf.mxu0 }
 0x587   : > { %3433 = vst [vmem:[%s6296_s14 + $0xa0] sm:$0xff] %v3401_v0  ;;  %v3108_v51 = vpop.f32.mrf.mxu3  ;;  %v3106_v0 = vadd.f32 %v3105_v25, %v2993_v54 }
 0x589   : > { %v2998_v24 = vpop.f32.mrf.mxu2  ;;  %v3219_v2 = vadd.f32 %v3218_v57, %v3106_v0 }
 0x58a   : > { %v3316_v45 = vpop.f32.mrf.mxu1  ;;  %v2999_v5 = vadd.f32 %v2998_v24, %v2886_v58 }
 0x58b   : > { %v3317_v20 = vadd.f32 %v3316_v45, %v3204_v49  ;;  %v2996_v49 = vadd.f32 %v2995_v19, %v2883_v16  ;;  %v3379_v19 = vld [vmem:[%s3767_s17 + $0xf0] sm:$0xff] }
 0x58d   : > { %v3402_v10 = vadd.f32 %v3370_v55, %v3317_v20  ;;  %v3375_v55 = vld [vmem:[%s3767_s17 + $0xd0] sm:$0xff]  ;;  %v3109_v46 = vadd.f32 %v3108_v51, %v2996_v49  ;;  %v3224_v44 = vpop.f32.mrf.mxu0 }
 0x58f   : > { %3434 = vst [vmem:[%s6296_s14 + $0xa8] sm:$0xff] %v3402_v10  ;;  %v3111_v43 = vpop.f32.mrf.mxu3  ;;  %v3222_v41 = vadd.f32 %v3221_v47, %v3109_v46 }
 0x592   : > { %v3319_v52 = vpop.f32.mrf.mxu1 }
 0x593   : > { %v3320_v8 = vadd.f32 %v3319_v52, %v3207_v22  ;;  %v3001_v22 = vpop.f32.mrf.mxu2  ;;  %v3376_v52 = vld [vmem:[%s3767_s17 + $0xd8] sm:$0xff] }
 0x595   : > { %v3403_v37 = vadd.f32 %v3371_v3, %v3320_v8  ;;  %v3112_v8 = vadd.f32 %v3111_v43, %v2999_v5 }
 0x597   : > { %3435 = vst [vmem:[%s6296_s14 + $0xb0] sm:$0xff] %v3403_v37  ;;  %v6601_v37 = vld [vmem:[#allocation28_spill] sm:$0xff]  ;;  %v3114_v59 = vpop.f32.mrf.mxu3  ;;  %v3225_v28 = vadd.f32 %v3224_v44, %v3112_v8 }
 0x598   : > { %v2889_v21 = vadd.f32 %v6274_v12, %v6601_v37 }
 0x59a   : > { %v3322_v30 = vpop.f32.mrf.mxu1  ;;  %v3002_v1 = vadd.f32 %v3001_v22, %v2889_v21 }
 0x59b   : > { %v3323_v32 = vadd.f32 %v3322_v30, %v3210_v50  ;;  %v3377_v50 = vld [vmem:[%s3767_s17 + $0xe0] sm:$0xff]  ;;  %v3004_v42 = vpop.f32.mrf.mxu2 }
 0x59c   : > { %v3005_v12 = vadd.f32 %v3004_v42, %v2892_v14 }
 0x59d   : > { %v3404_v31 = vadd.f32 %v3372_v38, %v3323_v32  ;;  %v3227_v38 = vpop.f32.mrf.mxu0  ;;  %v3115_v32 = vadd.f32 %v3114_v59, %v3002_v1 }
 0x59f   : > { %3436 = vst [vmem:[%s6296_s14 + $0xb8] sm:$0xff] %v3404_v31  ;;  %v3117_v31 = vpop.f32.mrf.mxu3  ;;  %v3228_v17 = vadd.f32 %v3227_v38, %v3115_v32 }
 0x5a2   : > { %v3325_v23 = vpop.f32.mrf.mxu1 }
 0x5a3   : > { %v3326_v13 = vadd.f32 %v3325_v23, %v3213_v29  ;;  %v3118_v23 = vadd.f32 %v3117_v31, %v3005_v12 }
 0x5a5   : > { %v3405_v63 = vadd.f32 %v3373_v61, %v3326_v13  ;;  %v3230_v25 = vpop.f32.mrf.mxu0  ;;  %v3007_v13 = vpop.f32.mrf.mxu2 }
 0x5a6   : > { %v3231_v26 = vadd.f32 %v3230_v25, %v3118_v23  ;;  %v3008_v60 = vadd.f32 %v3007_v13, %v2895_v7 }
 0x5a7   : > { %3437 = vst [vmem:[%s6296_s14 + $0xc0] sm:$0xff] %v3405_v63  ;;  %v3120_v57 = vpop.f32.mrf.mxu3 }
 0x5a8   : > { %v3121_v48 = vadd.f32 %v3120_v57, %v3008_v60 }
 0x5aa   : > { %v3328_v4 = vpop.f32.mrf.mxu1 }
 0x5ab   : > { %v3329_v56 = vadd.f32 %v3328_v4, %v3216_v36 }
 0x5ad   : > { %v3406_v34 = vadd.f32 %v3374_v62, %v3329_v56  ;;  %v3233_v36 = vpop.f32.mrf.mxu0  ;;  %v3380_v56 = vld [vmem:[%s3767_s17 + $0xf8] sm:$0xff] }
 0x5ae   : > { %v3234_v4 = vadd.f32 %v3233_v36, %v3121_v48 }
 0x5af   : > { %3438 = vst [vmem:[%s6296_s14 + $0xc8] sm:$0xff] %v3406_v34 }
 0x5b2   : > { %v3331_v45 = vpop.f32.mrf.mxu1 }
 0x5b3   : > { %v3332_v20 = vadd.f32 %v3331_v45, %v3219_v2 }
 0x5b5   : > { %v3407_v10 = vadd.f32 %v3375_v55, %v3332_v20 }
 0x5b7   : > { %3439 = vst [vmem:[%s6296_s14 + $0xd0] sm:$0xff] %v3407_v10 }
 0x5ba   : > { %v3334_v6 = vpop.f32.mrf.mxu1 }
 0x5bb   : > { %v3335_v3 = vadd.f32 %v3334_v6, %v3222_v41 }
 0x5bd   : > { %v3408_v53 = vadd.f32 %v3376_v52, %v3335_v3 }
 0x5bf   : > { %3440 = vst [vmem:[%s6296_s14 + $0xd8] sm:$0xff] %v3408_v53 }
 0x5c2   : > { %v3337_v33 = vpop.f32.mrf.mxu1 }
 0x5c3   : > { %v3338_v30 = vadd.f32 %v3337_v33, %v3225_v28 }
 0x5c5   : > { %v3409_v27 = vadd.f32 %v3377_v50, %v3338_v30 }
 0x5c7   : > { %3441 = vst [vmem:[%s6296_s14 + $0xe0] sm:$0xff] %v3409_v27 }
 0x5ca   : > { %v3340_v39 = vpop.f32.mrf.mxu1 }
 0x5cb   : > { %v3341_v29 = vadd.f32 %v3340_v39, %v3228_v17 }
 0x5cd   : > { %v3410_v61 = vadd.f32 %v3378_v18, %v3341_v29 }
 0x5cf   : > { %3442 = vst [vmem:[%s6296_s14 + $0xe8] sm:$0xff] %v3410_v61 }
 0x5d2   : > { %v3343_v63 = vpop.f32.mrf.mxu1 }
 0x5d3   : > { %v3344_v15 = vadd.f32 %v3343_v63, %v3231_v26 }
 0x5d5   : > { %v3411_v54 = vadd.f32 %v3379_v19, %v3344_v15 }
 0x5d7   : > { %3443 = vst [vmem:[%s6296_s14 + $0xf0] sm:$0xff] %v3411_v54 }
 0x5da   : > { %v3346_v62 = vpop.f32.mrf.mxu1 }
 0x5db   : > { %v3347_v51 = vadd.f32 %v3346_v62, %v3234_v4 }
 0x5dd   : > { %v3412_v0 = vadd.f32 %v3380_v56, %v3347_v51 }
 0x5df   : > { %3444 = vst [vmem:[%s6296_s14 + $0xf8] sm:$0xff] %v3412_v0 }
 0x5e0 PF: > { %s15_s18 = sadd.s32 1, %s3583_s18  }
 0x5e1   : > { %p12_p4 = scmp.ge.s32.totalorder %s15_s18, 4  }
 0x5e3   :  { %14 = sbr.rel (!%p12_p4) target bundleno = 1 (0x1), region = 76 }

</bundles_post_ra>
